<compile_context>
chip_gen: v7x
topology: tpu7x:2x2x1
jax: 0.10.0
libtpu: 0.0.40
codegen_flags: <defaults>
</compile_context>

<pallas_src>
import math

import jax
import jax.numpy as jnp
from jax import lax
from jax.experimental import pallas as pl
from jax.experimental.pallas import tpu as pltpu

# ---- hyper-parameters implied by the PyTorch module / xLSTM config ----
D = 20           # embedding_dim
NH = 4           # num_heads
DH = D // NH     # head dim = 5
K = 4            # conv1d_kernel_size
UP = 64          # gated-FFN up dim: round_up(1.3 * 20, 64) = 64
H1 = 64          # classifier hidden width
EPS = 1e-5       # LayerNorm / GroupNorm / BatchNorm eps

NP = 32          # per-gate lane stripe width (gate values live in lanes [g*NP, g*NP+D))
GW = 4 * NP      # fused gate width = 128 lanes (i, f, z, o stripes)
NEG_INF = -1e30  # m-state init; equivalent to the vanilla-backend first-step rule

# parameter-bank row layout (rows 0..15 of the (16,128) bank input)
_R_LN1, _R_CONVB, _R_BBIG, _R_GNW, _R_LN2, _R_LNP = 0, 1, 2, 3, 4, 5
_R_B1, _R_BNG, _R_BNB, _R_BNM, _R_BNV, _R_B2 = 6, 7, 8, 9, 10, 11
_R_CONVW = 12    # rows 12..12+K-1 hold the conv taps


# ---------------- in-kernel math helpers (only exp/log/tanh/rsqrt used) ----------------
def _layernorm(v, w):
    mu = jnp.mean(v, axis=-1, keepdims=True)
    var = jnp.mean((v - mu) ** 2, axis=-1, keepdims=True)
    return (v - mu) * jax.lax.rsqrt(var + EPS) * w


def _sigmoid(x):
    return 1.0 / (1.0 + jnp.exp(-x))


def _logsigmoid(x):
    return jnp.minimum(x, 0.0) - jnp.log(1.0 + jnp.exp(-jnp.abs(x)))


def _erf(x):
    # Abramowitz & Stegun 7.1.26 (|err| < 1.5e-7 ~ f32 eps): matches torch exact-GELU.
    a1, a2, a3, a4, a5 = 0.254829592, -0.284496736, 1.421413741, -1.453152027, 1.061405429
    p = 0.3275911
    s = jnp.where(x >= 0.0, 1.0, -1.0)
    ax = jnp.abs(x)
    t = 1.0 / (1.0 + p * ax)
    poly = ((((a5 * t + a4) * t + a3) * t + a2) * t + a1) * t
    return s * (1.0 - poly * jnp.exp(-ax * ax))


def _gelu(x):
    return 0.5 * x * (1.0 + _erf(x * (1.0 / math.sqrt(2.0))))


# -------------------------------- the Pallas kernel --------------------------------
def base_xlstm_kernel(
    x_ref,        # (T, TB, D)   time-major input (one batch tile)
    bank_ref,     # (16, 128)    packed bias / LN / BN vectors + conv taps
    wbig_ref,     # (2D, GW)     fused gate projection: rows 0:D <- x_conv (i,f stripes),
                  #              rows D:2D <- xn (z,o stripes); pad columns are zero
    rbig_ref,     # (NP, GW)     fused recurrent kernel (rows D:NP zero, pad cols zero)
    gmask_ref,    # (D, D)       per-head averaging matrix (1/DH within head blocks)
    wud_ref,      # (D, 2*UP)    FFN proj_up: [gate branch | up branch], lane-dense 128
    wd_ref,       # (UP, D)      FFN proj_down
    w1_ref,       # (D, H1)      classifier Linear 1
    w2_ref,       # (H1, 1)      classifier Linear 2
    out_ref,      # (TB, 1)
    xpad_scr,     # VMEM (T+K-1, TB, D)        zero-padded normalized input for the conv
    g_scr,        # VMEM (T, TB, GW) f32/bf16  fused gate pre-activations (biases folded)
):
    T = x_ref.shape[0]
    Bb = x_ref.shape[1]

    # ---- unpack the parameter bank (static slices of one small load) ----
    bank = bank_ref[...]
    ln1_w = bank[_R_LN1:_R_LN1 + 1, 0:D]
    conv_b = bank[_R_CONVB:_R_CONVB + 1, 0:D]
    bbig = bank[_R_BBIG:_R_BBIG + 1, 0:GW]
    gn_w = bank[_R_GNW:_R_GNW + 1, 0:D]
    ln2_w = bank[_R_LN2:_R_LN2 + 1, 0:D]
    lnp_w = bank[_R_LNP:_R_LNP + 1, 0:D]
    b1 = bank[_R_B1:_R_B1 + 1, 0:H1]
    bng = bank[_R_BNG:_R_BNG + 1, 0:H1]
    bnb = bank[_R_BNB:_R_BNB + 1, 0:H1]
    bnm = bank[_R_BNM:_R_BNM + 1, 0:H1]
    bnv = bank[_R_BNV:_R_BNV + 1, 0:H1]
    b2 = bank[_R_B2:_R_B2 + 1, 0:1]
    conv_w = bank[_R_CONVW:_R_CONVW + K, 0:D]

    # ---- sLSTM sub-block: pre-norm ----
    x = x_ref[...]
    xn = _layernorm(x, ln1_w)

    # ---- causal depthwise conv1d (left pad K-1) + SiLU ----
    xpad_scr[0:K - 1] = jnp.zeros((K - 1, Bb, D), jnp.float32)
    xpad_scr[K - 1:K - 1 + T] = xn
    acc = jnp.zeros((T, Bb, D), jnp.float32) + conv_b
    for k in range(K):                              # static unrolled loop over taps
        acc = acc + xpad_scr[k:k + T] * conv_w[k:k + 1]
    x_conv = acc * _sigmoid(acc)                    # SiLU

    # ---- fused headwise gate projections: one lane-padded matmul, biases folded ----
    xn_rd = xpad_scr[K - 1:K - 1 + T]               # re-read xn (frees its live range)
    xin = jnp.concatenate([x_conv, xn_rd], axis=-1).reshape(T * Bb, 2 * D)
    g_all = jnp.dot(xin, wbig_ref[...], preferred_element_type=jnp.float32)
    g_scr[...] = (g_all.reshape(T, Bb, GW) + bbig).astype(g_scr.dtype)

    rbig = rbig_ref[...]                            # hoisted: loaded once, reused per step

    # ---- sLSTM recurrence over time (sequential, zero initial state) ----
    # State is kept NP(=32)-lane wide; pad lanes stay exactly 0 (zero weight rows/cols),
    # so the single (Bb,NP)x(NP,GW) recurrent matmul is exact.
    def step(t, carry):
        h, c, n, m = carry
        pre = g_scr[t].astype(jnp.float32) + jnp.dot(
            h, rbig, preferred_element_type=jnp.float32)        # (Bb, GW)
        ipre = pre[:, 0 * NP:1 * NP]
        fpre = pre[:, 1 * NP:2 * NP]
        zpre = pre[:, 2 * NP:3 * NP]
        opre = pre[:, 3 * NP:4 * NP]
        logfplusm = m + _logsigmoid(fpre)
        mnew = jnp.maximum(ipre, logfplusm)         # m0 = -1e30 makes this exact at t = 0
        ig = jnp.exp(ipre - mnew)
        fg = jnp.exp(logfplusm - mnew)
        cnew = fg * c + ig * jnp.tanh(zpre)
        nnew = fg * n + ig
        r = pl.reciprocal(nnew, approx=True)        # EUP; refined below so the error does
        r = r * (2.0 - nnew * r)                    # not feed back through h over T steps
        hnew = _sigmoid(opre) * cnew * r
        return hnew, cnew, nnew, mnew

    z0 = jnp.zeros((Bb, NP), jnp.float32)
    m0 = jnp.full((Bb, NP), NEG_INF, jnp.float32)
    unroll = True if T <= 32 else (2 if Bb >= 256 else 4)
    h_last, _, _, _ = lax.fori_loop(0, T, step, (z0, z0, z0, m0), unroll=unroll)
    h_last = h_last[:, :D]                          # drop the zero pad lanes

    # Only the last timestep feeds the classifier, so the post-recurrence path is
    # evaluated for t = T-1 only (identical result to running it on every step).

    # ---- multi-head (group) norm over heads + residual ----
    gmask = gmask_ref[...]
    mu = jnp.dot(h_last, gmask, preferred_element_type=jnp.float32)
    var = jnp.dot((h_last - mu) ** 2, gmask, preferred_element_type=jnp.float32)
    h_gn = (h_last - mu) * jax.lax.rsqrt(var + EPS) * gn_w
    r1 = x_ref[T - 1] + h_gn                        # residual around the sLSTM layer

    # ---- gated feed-forward sub-block (pre-norm, exact GELU gate, residual) ----
    f_in = _layernorm(r1, ln2_w)
    gu = jnp.dot(f_in, wud_ref[...], preferred_element_type=jnp.float32)  # one 128-wide matmul
    gate = gu[:, 0:UP]
    up = gu[:, UP:2 * UP]
    ffn = jnp.dot(_gelu(gate) * up, wd_ref[...], preferred_element_type=jnp.float32)
    r2 = r1 + ffn

    # ---- post-blocks norm ----
    y = _layernorm(r2, lnp_w)

    # ---- classifier: Linear -> BatchNorm1d (eval mode) -> ReLU -> Linear ----
    # TODO(synk): BatchNorm1d implemented with running statistics (eval); training-mode
    #             batch statistics are not implemented.
    z1 = jnp.dot(y, w1_ref[...], preferred_element_type=jnp.float32) + b1
    z1 = (z1 - bnm) * jax.lax.rsqrt(bnv + EPS) * bng + bnb
    z1 = jnp.maximum(z1, 0.0)
    out_ref[...] = jnp.dot(z1, w2_ref[...], preferred_element_type=jnp.float32) + b2


# -------------------------------- wrapper (glue JAX) --------------------------------
def _round_up(a, m):
    return ((a + m - 1) // m) * m


def _pack_gate_weights(wg, rk, gb):
    """Pre-stack gate weights into lane-padded block matrices (done once, outside the kernel).

    Wbig (2D, GW): rows 0:D driven by x_conv (i, f stripes), rows D:2D by xn (z, o stripes).
    Bbig (1, GW):  gate biases in their stripes (pad lanes zero).
    Rbig (NP, GW): recurrent kernels in their stripes (rows D:NP and pad lanes zero).
    """
    wbig = jnp.zeros((2 * D, GW), jnp.float32)
    wbig = wbig.at[0:D, 0 * NP:0 * NP + D].set(wg[0])       # i  <- x_conv
    wbig = wbig.at[0:D, 1 * NP:1 * NP + D].set(wg[1])       # f  <- x_conv
    wbig = wbig.at[D:2 * D, 2 * NP:2 * NP + D].set(wg[2])   # z  <- xn
    wbig = wbig.at[D:2 * D, 3 * NP:3 * NP + D].set(wg[3])   # o  <- xn
    bbig = jnp.zeros((1, GW), jnp.float32)
    rbig = jnp.zeros((NP, GW), jnp.float32)
    for g in range(4):
        bbig = bbig.at[0, g * NP:g * NP + D].set(gb[g])
        rbig = rbig.at[0:D, g * NP:g * NP + D].set(rk[g])
    return wbig, bbig, rbig


def _pack_params(params):
    """Consolidate the ~20 small parameters into 8 kernel inputs."""
    (ln1_w, conv_w, conv_b, wg, rk, gb, gn_w, gmask, ln2_w,
     wgu, wuu, wd, lnp_w, w1, b1, bng, bnb, bnm, bnv, w2, b2) = params
    wbig, bbig, rbig = _pack_gate_weights(wg, rk, gb)

    bank = jnp.zeros((16, 128), jnp.float32)

    def put(b, row, vec):
        v = jnp.asarray(vec, jnp.float32).reshape(1, -1)
        return b.at[row:row + 1, 0:v.shape[1]].set(v)

    bank = put(bank, _R_LN1, ln1_w)
    bank = put(bank, _R_CONVB, conv_b)
    bank = put(bank, _R_BBIG, bbig)
    bank = put(bank, _R_GNW, gn_w)
    bank = put(bank, _R_LN2, ln2_w)
    bank = put(bank, _R_LNP, lnp_w)
    bank = put(bank, _R_B1, b1)
    bank = put(bank, _R_BNG, bng)
    bank = put(bank, _R_BNB, bnb)
    bank = put(bank, _R_BNM, bnm)
    bank = put(bank, _R_BNV, bnv)
    bank = put(bank, _R_B2, b2)
    bank = bank.at[_R_CONVW:_R_CONVW + K, 0:D].set(conv_w)

    wud = jnp.concatenate([wgu, wuu], axis=1)        # (D, 2*UP) = (20, 128), lane-dense
    return [bank, wbig, rbig, gmask, wud, wd, w1, w2]


def _device_kind():
    try:
        return jax.devices()[0].device_kind or ""
    except Exception:
        return ""


def _vmem_capacity_bytes(kind):
    """Physical VMEM per TensorCore: query the runtime, fall back on device_kind."""
    try:
        info = pltpu.get_tpu_info()
        cap = getattr(info, "vmem_capacity_bytes", None)
        if cap:
            return int(cap)
    except Exception:
        pass
    k = kind.lower()
    if "v7" in k or "7x" in k:
        return 64 << 20
    return 128 << 20


def _gscr_dtype(kind):
    """bf16 gate scratch on v6e/v7x (bf16 VPU, halves the dominant VMEM consumer)."""
    k = kind.lower()
    return jnp.bfloat16 if ("v6" in k or "v7" in k or "7x" in k) else jnp.float32


def _wants_multiblock(kind):
    """Multi-TensorCore chips benefit from >=2 grid blocks under ('parallel',)."""
    k = kind.lower()
    return any(s in k for s in ("v4", "v5p", "v7", "7x"))


def _plan_batch_tiling(B, T, gscr_itemsize, budget, prefer_multi_block):
    """Pick (B_pad, TB, nb): batch tile as large as the VMEM budget allows."""
    B8 = _round_up(max(B, 1), 8)
    per_row = (2 * T * D * 4                 # double-buffered input block
               + (T + K - 1) * D * 4         # conv padding scratch
               + T * GW * gscr_itemsize      # gate pre-activation scratch
               + 6 * T * D * 4)              # live temporaries headroom
    fixed = 4 << 20                          # params, output, misc headroom
    cap_rows = max(8, int((budget - fixed) // per_row))
    TB = max(8, min(B8, (cap_rows // 8) * 8, 2048))
    if prefer_multi_block and B8 >= 16:      # keep both TensorCores busy on v4/v5p/v7x
        TB = min(TB, _round_up((B8 + 1) // 2, 8))
    nb = -(-B8 // TB)
    TB = min(TB, _round_up(-(-B8 // nb), 8))  # balance blocks to reduce padded rows
    B_pad = _round_up(B8, TB)
    nb = B_pad // TB
    return B_pad, TB, nb


def base_xlstm_forward(x, params):
    """x: (B, C=20, T) float32 — PyTorch NCT layout. Returns (out (B,1), 0)."""
    B, C, T = x.shape
    assert C == D

    kind = _device_kind()
    vmem_cap = _vmem_capacity_bytes(kind)
    # generation-aware budget: ~3/4 of physical VMEM (96 MiB on v5e/v6e, 48 MiB on v7x)
    budget = max(32 << 20, min(vmem_cap * 3 // 4, vmem_cap - (16 << 20)))
    gdt = _gscr_dtype(kind)
    B_pad, TB, nb = _plan_batch_tiling(B, T, jnp.dtype(gdt).itemsize, budget,
                                       _wants_multiblock(kind))

    x_tbd = jnp.transpose(x, (2, 0, 1))      # (B, D, T) -> time-major (T, B, D)
    if B_pad != B:                           # pad batch to a multiple of the tile (tile-
        x_tbd = jnp.pad(x_tbd, ((0, 0), (0, B_pad - B), (0, 0)))   # aligned reshapes)

    packed = _pack_params(params)

    in_specs = [pl.BlockSpec((T, TB, D), lambda i: (0, i, 0))]
    in_specs += [pl.BlockSpec(a.shape, lambda i: (0, 0)) for a in packed]   # all params 2D
    out_spec = pl.BlockSpec((TB, 1), lambda i: (i, 0))

    out = pl.pallas_call(
        base_xlstm_kernel,
        out_shape=jax.ShapeDtypeStruct((B_pad, 1), jnp.float32),
        grid_spec=pltpu.PrefetchScalarGridSpec(
            num_scalar_prefetch=0,
            grid=(nb,),
            in_specs=in_specs,
            out_specs=out_spec,
            scratch_shapes=[
                pltpu.VMEM((T + K - 1, TB, D), jnp.float32),   # zero-padded conv input
                pltpu.VMEM((T, TB, GW), gdt),                  # fused gate pre-activations
            ],
        ),
        compiler_params=pltpu.CompilerParams(
            dimension_semantics=("parallel",),                 # batch blocks -> both TCs
            vmem_limit_bytes=int(budget),
        ),
    )(x_tbd, *packed)
    return out[:B], 0


# ------------------------- deterministic synthetic parameters -------------------------
def _head_block_diag(w_heads):
    # w_heads: (NH, DH_out, DH_in). Build full (D, D) so y = x @ full reproduces
    # LinearHeadwiseExpand: out[..., h, o] = sum_d x[..., h, d] * w_heads[h, o, d].
    full = jnp.zeros((D, D), jnp.float32)
    for h in range(NH):
        full = full.at[h * DH:(h + 1) * DH, h * DH:(h + 1) * DH].set(w_heads[h].T)
    return full


def init_params(key):
    ks = jax.random.split(key, 12)

    def nrm(k, shape, scale):
        return scale * jax.random.normal(k, shape, jnp.float32)

    ln1_w = jnp.ones((1, D), jnp.float32)
    conv_w = nrm(ks[0], (K, D), 0.3)
    conv_b = nrm(ks[1], (1, D), 0.1)

    gate_heads = nrm(ks[2], (4, NH, DH, DH), 0.4)      # gate order [i, f, z, o]
    wg = jnp.stack([_head_block_diag(gate_heads[g]) for g in range(4)])
    rec_heads = nrm(ks[3], (4, NH, DH, DH), 0.4)
    rk = jnp.stack([_head_block_diag(rec_heads[g]) for g in range(4)])
    # TODO(synk): 'powerlaw_blockdependent' forget-gate bias init not reproduced; any
    #             deterministic bias keeps forward semantics identical.
    gb = nrm(ks[4], (4, D), 0.1)

    gn_w = jnp.ones((1, D), jnp.float32)
    head_ids = jnp.arange(D) // DH
    gmask = (head_ids[:, None] == head_ids[None, :]).astype(jnp.float32) / DH

    ln2_w = jnp.ones((1, D), jnp.float32)
    wgu = nrm(ks[5], (D, UP), 0.2)
    wuu = nrm(ks[6], (D, UP), 0.2)
    wd = nrm(ks[7], (UP, D), 0.15)
    lnp_w = jnp.ones((1, D), jnp.float32)

    w1 = nrm(ks[8], (D, H1), 0.2)
    b1 = nrm(ks[9], (1, H1), 0.1)
    bng = jnp.ones((1, H1), jnp.float32)
    bnb = jnp.zeros((1, H1), jnp.float32)
    bnm = jnp.zeros((1, H1), jnp.float32)
    bnv = jnp.ones((1, H1), jnp.float32)
    w2 = nrm(ks[10], (H1, 1), 0.2)
    b2 = nrm(ks[11], (1, 1), 0.1)

    return [ln1_w, conv_w, conv_b, wg, rk, gb, gn_w, gmask, ln2_w,
            wgu, wuu, wd, lnp_w, w1, b1, bng, bnb, bnm, bnv, w2, b2]


if __name__ == "__main__":
    key = jax.random.PRNGKey(0)
    kx, kp = jax.random.split(key)
    B, T = 2, 16
    x = jax.random.normal(kx, (B, D, T), jnp.float32)   # (batch, channels=20, time)
    params = init_params(kp)
    out, aux = base_xlstm_forward(x, params)
    out = jax.block_until_ready(out)
    assert out.shape == (B, 1) and aux == 0
    assert bool(jnp.all(jnp.isfinite(out)))
    print("KERNEL_OK")
</pallas_src>

<mosaic_0001>
module attributes {stable_mosaic.version = 11 : i64} {
  func.func @base_xlstm_kernel(%arg0: i32, %arg1: memref<16x8x20xf32, #tpu.memory_space<vmem>>, %arg2: memref<16x128xf32, #tpu.memory_space<vmem>>, %arg3: memref<40x128xf32, #tpu.memory_space<vmem>>, %arg4: memref<32x128xf32, #tpu.memory_space<vmem>>, %arg5: memref<20x20xf32, #tpu.memory_space<vmem>>, %arg6: memref<20x128xf32, #tpu.memory_space<vmem>>, %arg7: memref<64x20xf32, #tpu.memory_space<vmem>>, %arg8: memref<20x64xf32, #tpu.memory_space<vmem>>, %arg9: memref<64x1xf32, #tpu.memory_space<vmem>>, %arg10: memref<8x1xf32, #tpu.memory_space<vmem>>, %arg11: memref<19x8x20xf32, #tpu.memory_space<vmem>>, %arg12: memref<16x8x128xf32, #tpu.memory_space<vmem>>) attributes {dimension_semantics = [#tpu.dimension_semantics<parallel>], iteration_bounds = array<i64: 1>, scalar_prefetch = 0 : i64, scratch_operands = 2 : i64, tpu.core_type = #tpu.core_type<tc>, window_params = [{transform_indices = @transform_0, window_bounds = array<i64: 16, 8, 20>}, {pipeline_mode = #tpu.pipeline_mode<synchronous>, transform_indices = @transform_1, window_bounds = array<i64: 16, 128>}, {pipeline_mode = #tpu.pipeline_mode<synchronous>, transform_indices = @transform_2, window_bounds = array<i64: 40, 128>}, {pipeline_mode = #tpu.pipeline_mode<synchronous>, transform_indices = @transform_3, window_bounds = array<i64: 32, 128>}, {pipeline_mode = #tpu.pipeline_mode<synchronous>, transform_indices = @transform_4, window_bounds = array<i64: 20, 20>}, {pipeline_mode = #tpu.pipeline_mode<synchronous>, transform_indices = @transform_5, window_bounds = array<i64: 20, 128>}, {pipeline_mode = #tpu.pipeline_mode<synchronous>, transform_indices = @transform_6, window_bounds = array<i64: 64, 20>}, {pipeline_mode = #tpu.pipeline_mode<synchronous>, transform_indices = @transform_7, window_bounds = array<i64: 20, 64>}, {pipeline_mode = #tpu.pipeline_mode<synchronous>, transform_indices = @transform_8, window_bounds = array<i64: 64, 1>}, {transform_indices = @transform_9, window_bounds = array<i64: 8, 1>}]} {
    %c0 = arith.constant 0 : index
    %c0_0 = arith.constant 0 : index
    %0 = vector.load %arg2[%c0, %c0_0] : memref<16x128xf32, #tpu.memory_space<vmem>>, vector<16x128xf32>
    %1 = vector.extract_strided_slice %0 {offsets = [0, 0], sizes = [1, 20], strides = [1, 1]} : vector<16x128xf32> to vector<1x20xf32>
    %2 = vector.extract_strided_slice %0 {offsets = [1, 0], sizes = [1, 20], strides = [1, 1]} : vector<16x128xf32> to vector<1x20xf32>
    %3 = vector.extract_strided_slice %0 {offsets = [2, 0], sizes = [1, 128], strides = [1, 1]} : vector<16x128xf32> to vector<1x128xf32>
    %4 = vector.extract_strided_slice %0 {offsets = [3, 0], sizes = [1, 20], strides = [1, 1]} : vector<16x128xf32> to vector<1x20xf32>
    %5 = vector.extract_strided_slice %0 {offsets = [4, 0], sizes = [1, 20], strides = [1, 1]} : vector<16x128xf32> to vector<1x20xf32>
    %6 = vector.extract_strided_slice %0 {offsets = [5, 0], sizes = [1, 20], strides = [1, 1]} : vector<16x128xf32> to vector<1x20xf32>
    %7 = vector.extract_strided_slice %0 {offsets = [6, 0], sizes = [1, 64], strides = [1, 1]} : vector<16x128xf32> to vector<1x64xf32>
    %8 = vector.extract_strided_slice %0 {offsets = [7, 0], sizes = [1, 64], strides = [1, 1]} : vector<16x128xf32> to vector<1x64xf32>
    %9 = vector.extract_strided_slice %0 {offsets = [8, 0], sizes = [1, 64], strides = [1, 1]} : vector<16x128xf32> to vector<1x64xf32>
    %10 = vector.extract_strided_slice %0 {offsets = [9, 0], sizes = [1, 64], strides = [1, 1]} : vector<16x128xf32> to vector<1x64xf32>
    %11 = vector.extract_strided_slice %0 {offsets = [10, 0], sizes = [1, 64], strides = [1, 1]} : vector<16x128xf32> to vector<1x64xf32>
    %12 = vector.extract_strided_slice %0 {offsets = [11, 0], sizes = [1, 1], strides = [1, 1]} : vector<16x128xf32> to vector<1x1xf32>
    %13 = vector.extract_strided_slice %0 {offsets = [12, 0], sizes = [4, 20], strides = [1, 1]} : vector<16x128xf32> to vector<4x20xf32>
    %c0_1 = arith.constant 0 : index
    %c0_2 = arith.constant 0 : index
    %c0_3 = arith.constant 0 : index
    %14 = vector.load %arg1[%c0_1, %c0_2, %c0_3] : memref<16x8x20xf32, #tpu.memory_space<vmem>>, vector<16x8x20xf32>
    %cst = arith.constant dense<0.000000e+00> : vector<16x8xf32>
    %15 = vector.multi_reduction <add>, %14, %cst [2] : vector<16x8x20xf32> to vector<16x8xf32>
    %16 = vector.shape_cast %15 : vector<16x8xf32> to vector<16x8x1xf32>
    %cst_4 = arith.constant 2.000000e+01 : f32
    %17 = vector.broadcast %cst_4 : f32 to vector<16x8x1xf32>
    %18 = arith.divf %16, %17 : vector<16x8x1xf32>
    %19 = vector.broadcast %18 : vector<16x8x1xf32> to vector<16x8x20xf32>
    %20 = arith.subf %14, %19 : vector<16x8x20xf32>
    %21 = arith.mulf %20, %20 : vector<16x8x20xf32>
    %cst_5 = arith.constant dense<0.000000e+00> : vector<16x8xf32>
    %22 = vector.multi_reduction <add>, %21, %cst_5 [2] : vector<16x8x20xf32> to vector<16x8xf32>
    %23 = vector.shape_cast %22 : vector<16x8xf32> to vector<16x8x1xf32>
    %cst_6 = arith.constant 2.000000e+01 : f32
    %24 = vector.broadcast %cst_6 : f32 to vector<16x8x1xf32>
    %25 = arith.divf %23, %24 : vector<16x8x1xf32>
    %26 = vector.broadcast %18 : vector<16x8x1xf32> to vector<16x8x20xf32>
    %27 = arith.subf %14, %26 : vector<16x8x20xf32>
    %cst_7 = arith.constant 9.99999974E-6 : f32
    %28 = vector.broadcast %cst_7 : f32 to vector<16x8x1xf32>
    %29 = arith.addf %25, %28 : vector<16x8x1xf32>
    %30 = math.rsqrt %29 : vector<16x8x1xf32>
    %31 = vector.broadcast %30 : vector<16x8x1xf32> to vector<16x8x20xf32>
    %32 = arith.mulf %27, %31 : vector<16x8x20xf32>
    %33 = vector.shape_cast %1 : vector<1x20xf32> to vector<1x1x20xf32>
    %34 = vector.broadcast %33 : vector<1x1x20xf32> to vector<16x8x20xf32>
    %35 = arith.mulf %32, %34 : vector<16x8x20xf32>
    %cst_8 = arith.constant 0.000000e+00 : f32
    %36 = vector.broadcast %cst_8 : f32 to vector<3x8x20xf32>
    %c0_9 = arith.constant 0 : index
    %c0_10 = arith.constant 0 : index
    %c0_11 = arith.constant 0 : index
    %37 = vector.load %arg11[%c0_9, %c0_10, %c0_11] : memref<19x8x20xf32, #tpu.memory_space<vmem>>, vector<3x8x20xf32>
    tpu.vector_store %arg11[%c0_9, %c0_10, %c0_11], %36 {strides = array<i32>} : memref<19x8x20xf32, #tpu.memory_space<vmem>>, vector<3x8x20xf32>,
    %c3 = arith.constant 3 : index
    %c0_12 = arith.constant 0 : index
    %c0_13 = arith.constant 0 : index
    %38 = vector.load %arg11[%c3, %c0_12, %c0_13] : memref<19x8x20xf32, #tpu.memory_space<vmem>>, vector<16x8x20xf32>
    tpu.vector_store %arg11[%c3, %c0_12, %c0_13], %35 {strides = array<i32>} : memref<19x8x20xf32, #tpu.memory_space<vmem>>, vector<16x8x20xf32>,
    %cst_14 = arith.constant 0.000000e+00 : f32
    %39 = vector.broadcast %cst_14 : f32 to vector<16x8x20xf32>
    %40 = vector.shape_cast %2 : vector<1x20xf32> to vector<1x1x20xf32>
    %41 = vector.broadcast %40 : vector<1x1x20xf32> to vector<16x8x20xf32>
    %42 = arith.addf %39, %41 : vector<16x8x20xf32>
    %c0_15 = arith.constant 0 : index
    %c0_16 = arith.constant 0 : index
    %c0_17 = arith.constant 0 : index
    %43 = vector.load %arg11[%c0_15, %c0_16, %c0_17] : memref<19x8x20xf32, #tpu.memory_space<vmem>>, vector<16x8x20xf32>
    %44 = vector.extract_strided_slice %13 {offsets = [0, 0], sizes = [1, 20], strides = [1, 1]} : vector<4x20xf32> to vector<1x20xf32>
    %45 = vector.shape_cast %44 : vector<1x20xf32> to vector<1x1x20xf32>
    %46 = vector.broadcast %45 : vector<1x1x20xf32> to vector<16x8x20xf32>
    %47 = arith.mulf %43, %46 : vector<16x8x20xf32>
    %48 = arith.addf %42, %47 : vector<16x8x20xf32>
    %c1 = arith.constant 1 : index
    %c0_18 = arith.constant 0 : index
    %c0_19 = arith.constant 0 : index
    %49 = vector.load %arg11[%c1, %c0_18, %c0_19] : memref<19x8x20xf32, #tpu.memory_space<vmem>>, vector<16x8x20xf32>
    %50 = vector.extract_strided_slice %13 {offsets = [1, 0], sizes = [1, 20], strides = [1, 1]} : vector<4x20xf32> to vector<1x20xf32>
    %51 = vector.shape_cast %50 : vector<1x20xf32> to vector<1x1x20xf32>
    %52 = vector.broadcast %51 : vector<1x1x20xf32> to vector<16x8x20xf32>
    %53 = arith.mulf %49, %52 : vector<16x8x20xf32>
    %54 = arith.addf %48, %53 : vector<16x8x20xf32>
    %c2 = arith.constant 2 : index
    %c0_20 = arith.constant 0 : index
    %c0_21 = arith.constant 0 : index
    %55 = vector.load %arg11[%c2, %c0_20, %c0_21] : memref<19x8x20xf32, #tpu.memory_space<vmem>>, vector<16x8x20xf32>
    %56 = vector.extract_strided_slice %13 {offsets = [2, 0], sizes = [1, 20], strides = [1, 1]} : vector<4x20xf32> to vector<1x20xf32>
    %57 = vector.shape_cast %56 : vector<1x20xf32> to vector<1x1x20xf32>
    %58 = vector.broadcast %57 : vector<1x1x20xf32> to vector<16x8x20xf32>
    %59 = arith.mulf %55, %58 : vector<16x8x20xf32>
    %60 = arith.addf %54, %59 : vector<16x8x20xf32>
    %c3_22 = arith.constant 3 : index
    %c0_23 = arith.constant 0 : index
    %c0_24 = arith.constant 0 : index
    %61 = vector.load %arg11[%c3_22, %c0_23, %c0_24] : memref<19x8x20xf32, #tpu.memory_space<vmem>>, vector<16x8x20xf32>
    %62 = vector.extract_strided_slice %13 {offsets = [3, 0], sizes = [1, 20], strides = [1, 1]} : vector<4x20xf32> to vector<1x20xf32>
    %63 = vector.shape_cast %62 : vector<1x20xf32> to vector<1x1x20xf32>
    %64 = vector.broadcast %63 : vector<1x1x20xf32> to vector<16x8x20xf32>
    %65 = arith.mulf %61, %64 : vector<16x8x20xf32>
    %66 = arith.addf %60, %65 : vector<16x8x20xf32>
    %cst_25 = arith.constant 0.000000e+00 : f32
    %67 = vector.broadcast %cst_25 : f32 to vector<16x8x20xf32>
    %68 = arith.subf %67, %66 : vector<16x8x20xf32>
    %69 = math.exp %68 : vector<16x8x20xf32>
    %cst_26 = arith.constant 1.000000e+00 : f32
    %70 = vector.broadcast %cst_26 : f32 to vector<16x8x20xf32>
    %71 = arith.addf %70, %69 : vector<16x8x20xf32>
    %cst_27 = arith.constant 1.000000e+00 : f32
    %72 = vector.broadcast %cst_27 : f32 to vector<16x8x20xf32>
    %73 = arith.divf %72, %71 : vector<16x8x20xf32>
    %74 = arith.mulf %66, %73 : vector<16x8x20xf32>
    %c3_28 = arith.constant 3 : index
    %c0_29 = arith.constant 0 : index
    %c0_30 = arith.constant 0 : index
    %75 = vector.load %arg11[%c3_28, %c0_29, %c0_30] : memref<19x8x20xf32, #tpu.memory_space<vmem>>, vector<16x8x20xf32>
    %76 = tpu.concatenate %74, %75 in 2 : vector<16x8x20xf32>, vector<16x8x20xf32> -> vector<16x8x40xf32>
    %77 = vector.shape_cast %76 : vector<16x8x40xf32> to vector<128x40xf32>
    %c0_31 = arith.constant 0 : index
    %c0_32 = arith.constant 0 : index
    %78 = vector.load %arg3[%c0_31, %c0_32] : memref<40x128xf32, #tpu.memory_space<vmem>>, vector<40x128xf32>
    %cst_33 = arith.constant dense<0.000000e+00> : vector<128x128xf32>
    %79 = tpu.matmul %77, %78, %cst_33 {dimension_numbers = #tpu.dot_dimension_numbers<[1], [0], [0], [1], [0, 0, 1, 1], [], []>} : vector<128x40xf32>, vector<40x128xf32>, vector<128x128xf32> -> vector<128x128xf32>
    %80 = vector.shape_cast %79 : vector<128x128xf32> to vector<16x8x128xf32>
    %81 = vector.shape_cast %3 : vector<1x128xf32> to vector<1x1x128xf32>
    %82 = vector.broadcast %81 : vector<1x1x128xf32> to vector<16x8x128xf32>
    %83 = arith.addf %80, %82 : vector<16x8x128xf32>
    %c0_34 = arith.constant 0 : index
    %c0_35 = arith.constant 0 : index
    %c0_36 = arith.constant 0 : index
    %84 = vector.load %arg12[%c0_34, %c0_35, %c0_36] : memref<16x8x128xf32, #tpu.memory_space<vmem>>, vector<16x8x128xf32>
    tpu.vector_store %arg12[%c0_34, %c0_35, %c0_36], %83 {strides = array<i32>} : memref<16x8x128xf32, #tpu.memory_space<vmem>>, vector<16x8x128xf32>,
    %c0_37 = arith.constant 0 : index
    %c0_38 = arith.constant 0 : index
    %85 = vector.load %arg4[%c0_37, %c0_38] : memref<32x128xf32, #tpu.memory_space<vmem>>, vector<32x128xf32>
    %cst_39 = arith.constant 0.000000e+00 : f32
    %86 = vector.broadcast %cst_39 : f32 to vector<8x32xf32>
    %cst_40 = arith.constant -1.000000e+30 : f32
    %87 = vector.broadcast %cst_40 : f32 to vector<8x32xf32>
    %c0_i32 = arith.constant 0 : i32
    %88 = arith.index_cast %c0_i32 : i32 to index
    %c0_41 = arith.constant 0 : index
    %c0_42 = arith.constant 0 : index
    %89 = vector.load %arg12[%88, %c0_41, %c0_42] : memref<16x8x128xf32, #tpu.memory_space<vmem>>, vector<1x8x128xf32>
    %90 = vector.shape_cast %89 : vector<1x8x128xf32> to vector<8x128xf32>
    %cst_43 = arith.constant dense<0.000000e+00> : vector<8x128xf32>
    %91 = tpu.matmul %86, %85, %cst_43 {dimension_numbers = #tpu.dot_dimension_numbers<[1], [0], [0], [1], [0, 0, 1, 1], [], []>} : vector<8x32xf32>, vector<32x128xf32>, vector<8x128xf32> -> vector<8x128xf32>
    %92 = arith.addf %90, %91 : vector<8x128xf32>
    %93 = vector.extract_strided_slice %92 {offsets = [0, 0], sizes = [8, 32], strides = [1, 1]} : vector<8x128xf32> to vector<8x32xf32>
    %94 = vector.extract_strided_slice %92 {offsets = [0, 32], sizes = [8, 32], strides = [1, 1]} : vector<8x128xf32> to vector<8x32xf32>
    %95 = vector.extract_strided_slice %92 {offsets = [0, 64], sizes = [8, 32], strides = [1, 1]} : vector<8x128xf32> to vector<8x32xf32>
    %96 = vector.extract_strided_slice %92 {offsets = [0, 96], sizes = [8, 32], strides = [1, 1]} : vector<8x128xf32> to vector<8x32xf32>
    %cst_44 = arith.constant 0.000000e+00 : f32
    %97 = vector.broadcast %cst_44 : f32 to vector<8x32xf32>
    %98 = arith.minimumf %94, %97 : vector<8x32xf32>
    %99 = math.absf %94 : vector<8x32xf32>
    %cst_45 = arith.constant 0.000000e+00 : f32
    %100 = vector.broadcast %cst_45 : f32 to vector<8x32xf32>
    %101 = arith.subf %100, %99 : vector<8x32xf32>
    %102 = math.exp %101 : vector<8x32xf32>
    %cst_46 = arith.constant 1.000000e+00 : f32
    %103 = vector.broadcast %cst_46 : f32 to vector<8x32xf32>
    %104 = arith.addf %103, %102 : vector<8x32xf32>
    %105 = math.log %104 : vector<8x32xf32>
    %106 = arith.subf %98, %105 : vector<8x32xf32>
    %107 = arith.addf %87, %106 : vector<8x32xf32>
    %108 = arith.maximumf %93, %107 : vector<8x32xf32>
    %109 = arith.subf %93, %108 : vector<8x32xf32>
    %110 = math.exp %109 : vector<8x32xf32>
    %111 = arith.subf %107, %108 : vector<8x32xf32>
    %112 = math.exp %111 : vector<8x32xf32>
    %113 = arith.mulf %112, %86 : vector<8x32xf32>
    %114 = math.tanh %95 : vector<8x32xf32>
    %115 = arith.mulf %110, %114 : vector<8x32xf32>
    %116 = arith.addf %113, %115 : vector<8x32xf32>
    %117 = arith.mulf %112, %86 : vector<8x32xf32>
    %118 = arith.addf %117, %110 : vector<8x32xf32>
    %119 = tpu.reciprocal %118 {approx = true} : vector<8x32xf32> -> vector<8x32xf32>
    %120 = arith.mulf %118, %119 : vector<8x32xf32>
    %cst_47 = arith.constant 2.000000e+00 : f32
    %121 = vector.broadcast %cst_47 : f32 to vector<8x32xf32>
    %122 = arith.subf %121, %120 : vector<8x32xf32>
    %123 = arith.mulf %119, %122 : vector<8x32xf32>
    %cst_48 = arith.constant 0.000000e+00 : f32
    %124 = vector.broadcast %cst_48 : f32 to vector<8x32xf32>
    %125 = arith.subf %124, %96 : vector<8x32xf32>
    %126 = math.exp %125 : vector<8x32xf32>
    %cst_49 = arith.constant 1.000000e+00 : f32
    %127 = vector.broadcast %cst_49 : f32 to vector<8x32xf32>
    %128 = arith.addf %127, %126 : vector<8x32xf32>
    %cst_50 = arith.constant 1.000000e+00 : f32
    %129 = vector.broadcast %cst_50 : f32 to vector<8x32xf32>
    %130 = arith.divf %129, %128 : vector<8x32xf32>
    %131 = arith.mulf %130, %116 : vector<8x32xf32>
    %132 = arith.mulf %131, %123 : vector<8x32xf32>
    %c1_i32 = arith.constant 1 : i32
    %133 = arith.index_cast %c1_i32 : i32 to index
    %c0_51 = arith.constant 0 : index
    %c0_52 = arith.constant 0 : index
    %134 = vector.load %arg12[%133, %c0_51, %c0_52] : memref<16x8x128xf32, #tpu.memory_space<vmem>>, vector<1x8x128xf32>
    %135 = vector.shape_cast %134 : vector<1x8x128xf32> to vector<8x128xf32>
    %cst_53 = arith.constant dense<0.000000e+00> : vector<8x128xf32>
    %136 = tpu.matmul %132, %85, %cst_53 {dimension_numbers = #tpu.dot_dimension_numbers<[1], [0], [0], [1], [0, 0, 1, 1], [], []>} : vector<8x32xf32>, vector<32x128xf32>, vector<8x128xf32> -> vector<8x128xf32>
    %137 = arith.addf %135, %136 : vector<8x128xf32>
    %138 = vector.extract_strided_slice %137 {offsets = [0, 0], sizes = [8, 32], strides = [1, 1]} : vector<8x128xf32> to vector<8x32xf32>
    %139 = vector.extract_strided_slice %137 {offsets = [0, 32], sizes = [8, 32], strides = [1, 1]} : vector<8x128xf32> to vector<8x32xf32>
    %140 = vector.extract_strided_slice %137 {offsets = [0, 64], sizes = [8, 32], strides = [1, 1]} : vector<8x128xf32> to vector<8x32xf32>
    %141 = vector.extract_strided_slice %137 {offsets = [0, 96], sizes = [8, 32], strides = [1, 1]} : vector<8x128xf32> to vector<8x32xf32>
    %cst_54 = arith.constant 0.000000e+00 : f32
    %142 = vector.broadcast %cst_54 : f32 to vector<8x32xf32>
    %143 = arith.minimumf %139, %142 : vector<8x32xf32>
    %144 = math.absf %139 : vector<8x32xf32>
    %cst_55 = arith.constant 0.000000e+00 : f32
    %145 = vector.broadcast %cst_55 : f32 to vector<8x32xf32>
    %146 = arith.subf %145, %144 : vector<8x32xf32>
    %147 = math.exp %146 : vector<8x32xf32>
    %cst_56 = arith.constant 1.000000e+00 : f32
    %148 = vector.broadcast %cst_56 : f32 to vector<8x32xf32>
    %149 = arith.addf %148, %147 : vector<8x32xf32>
    %150 = math.log %149 : vector<8x32xf32>
    %151 = arith.subf %143, %150 : vector<8x32xf32>
    %152 = arith.addf %108, %151 : vector<8x32xf32>
    %153 = arith.maximumf %138, %152 : vector<8x32xf32>
    %154 = arith.subf %138, %153 : vector<8x32xf32>
    %155 = math.exp %154 : vector<8x32xf32>
    %156 = arith.subf %152, %153 : vector<8x32xf32>
    %157 = math.exp %156 : vector<8x32xf32>
    %158 = arith.mulf %157, %116 : vector<8x32xf32>
    %159 = math.tanh %140 : vector<8x32xf32>
    %160 = arith.mulf %155, %159 : vector<8x32xf32>
    %161 = arith.addf %158, %160 : vector<8x32xf32>
    %162 = arith.mulf %157, %118 : vector<8x32xf32>
    %163 = arith.addf %162, %155 : vector<8x32xf32>
    %164 = tpu.reciprocal %163 {approx = true} : vector<8x32xf32> -> vector<8x32xf32>
    %165 = arith.mulf %163, %164 : vector<8x32xf32>
    %cst_57 = arith.constant 2.000000e+00 : f32
    %166 = vector.broadcast %cst_57 : f32 to vector<8x32xf32>
    %167 = arith.subf %166, %165 : vector<8x32xf32>
    %168 = arith.mulf %164, %167 : vector<8x32xf32>
    %cst_58 = arith.constant 0.000000e+00 : f32
    %169 = vector.broadcast %cst_58 : f32 to vector<8x32xf32>
    %170 = arith.subf %169, %141 : vector<8x32xf32>
    %171 = math.exp %170 : vector<8x32xf32>
    %cst_59 = arith.constant 1.000000e+00 : f32
    %172 = vector.broadcast %cst_59 : f32 to vector<8x32xf32>
    %173 = arith.addf %172, %171 : vector<8x32xf32>
    %cst_60 = arith.constant 1.000000e+00 : f32
    %174 = vector.broadcast %cst_60 : f32 to vector<8x32xf32>
    %175 = arith.divf %174, %173 : vector<8x32xf32>
    %176 = arith.mulf %175, %161 : vector<8x32xf32>
    %177 = arith.mulf %176, %168 : vector<8x32xf32>
    %c2_i32 = arith.constant 2 : i32
    %178 = arith.index_cast %c2_i32 : i32 to index
    %c0_61 = arith.constant 0 : index
    %c0_62 = arith.constant 0 : index
    %179 = vector.load %arg12[%178, %c0_61, %c0_62] : memref<16x8x128xf32, #tpu.memory_space<vmem>>, vector<1x8x128xf32>
    %180 = vector.shape_cast %179 : vector<1x8x128xf32> to vector<8x128xf32>
    %cst_63 = arith.constant dense<0.000000e+00> : vector<8x128xf32>
    %181 = tpu.matmul %177, %85, %cst_63 {dimension_numbers = #tpu.dot_dimension_numbers<[1], [0], [0], [1], [0, 0, 1, 1], [], []>} : vector<8x32xf32>, vector<32x128xf32>, vector<8x128xf32> -> vector<8x128xf32>
    %182 = arith.addf %180, %181 : vector<8x128xf32>
    %183 = vector.extract_strided_slice %182 {offsets = [0, 0], sizes = [8, 32], strides = [1, 1]} : vector<8x128xf32> to vector<8x32xf32>
    %184 = vector.extract_strided_slice %182 {offsets = [0, 32], sizes = [8, 32], strides = [1, 1]} : vector<8x128xf32> to vector<8x32xf32>
    %185 = vector.extract_strided_slice %182 {offsets = [0, 64], sizes = [8, 32], strides = [1, 1]} : vector<8x128xf32> to vector<8x32xf32>
    %186 = vector.extract_strided_slice %182 {offsets = [0, 96], sizes = [8, 32], strides = [1, 1]} : vector<8x128xf32> to vector<8x32xf32>
    %cst_64 = arith.constant 0.000000e+00 : f32
    %187 = vector.broadcast %cst_64 : f32 to vector<8x32xf32>
    %188 = arith.minimumf %184, %187 : vector<8x32xf32>
    %189 = math.absf %184 : vector<8x32xf32>
    %cst_65 = arith.constant 0.000000e+00 : f32
    %190 = vector.broadcast %cst_65 : f32 to vector<8x32xf32>
    %191 = arith.subf %190, %189 : vector<8x32xf32>
    %192 = math.exp %191 : vector<8x32xf32>
    %cst_66 = arith.constant 1.000000e+00 : f32
    %193 = vector.broadcast %cst_66 : f32 to vector<8x32xf32>
    %194 = arith.addf %193, %192 : vector<8x32xf32>
    %195 = math.log %194 : vector<8x32xf32>
    %196 = arith.subf %188, %195 : vector<8x32xf32>
    %197 = arith.addf %153, %196 : vector<8x32xf32>
    %198 = arith.maximumf %183, %197 : vector<8x32xf32>
    %199 = arith.subf %183, %198 : vector<8x32xf32>
    %200 = math.exp %199 : vector<8x32xf32>
    %201 = arith.subf %197, %198 : vector<8x32xf32>
    %202 = math.exp %201 : vector<8x32xf32>
    %203 = arith.mulf %202, %161 : vector<8x32xf32>
    %204 = math.tanh %185 : vector<8x32xf32>
    %205 = arith.mulf %200, %204 : vector<8x32xf32>
    %206 = arith.addf %203, %205 : vector<8x32xf32>
    %207 = arith.mulf %202, %163 : vector<8x32xf32>
    %208 = arith.addf %207, %200 : vector<8x32xf32>
    %209 = tpu.reciprocal %208 {approx = true} : vector<8x32xf32> -> vector<8x32xf32>
    %210 = arith.mulf %208, %209 : vector<8x32xf32>
    %cst_67 = arith.constant 2.000000e+00 : f32
    %211 = vector.broadcast %cst_67 : f32 to vector<8x32xf32>
    %212 = arith.subf %211, %210 : vector<8x32xf32>
    %213 = arith.mulf %209, %212 : vector<8x32xf32>
    %cst_68 = arith.constant 0.000000e+00 : f32
    %214 = vector.broadcast %cst_68 : f32 to vector<8x32xf32>
    %215 = arith.subf %214, %186 : vector<8x32xf32>
    %216 = math.exp %215 : vector<8x32xf32>
    %cst_69 = arith.constant 1.000000e+00 : f32
    %217 = vector.broadcast %cst_69 : f32 to vector<8x32xf32>
    %218 = arith.addf %217, %216 : vector<8x32xf32>
    %cst_70 = arith.constant 1.000000e+00 : f32
    %219 = vector.broadcast %cst_70 : f32 to vector<8x32xf32>
    %220 = arith.divf %219, %218 : vector<8x32xf32>
    %221 = arith.mulf %220, %206 : vector<8x32xf32>
    %222 = arith.mulf %221, %213 : vector<8x32xf32>
    %c3_i32 = arith.constant 3 : i32
    %223 = arith.index_cast %c3_i32 : i32 to index
    %c0_71 = arith.constant 0 : index
    %c0_72 = arith.constant 0 : index
    %224 = vector.load %arg12[%223, %c0_71, %c0_72] : memref<16x8x128xf32, #tpu.memory_space<vmem>>, vector<1x8x128xf32>
    %225 = vector.shape_cast %224 : vector<1x8x128xf32> to vector<8x128xf32>
    %cst_73 = arith.constant dense<0.000000e+00> : vector<8x128xf32>
    %226 = tpu.matmul %222, %85, %cst_73 {dimension_numbers = #tpu.dot_dimension_numbers<[1], [0], [0], [1], [0, 0, 1, 1], [], []>} : vector<8x32xf32>, vector<32x128xf32>, vector<8x128xf32> -> vector<8x128xf32>
    %227 = arith.addf %225, %226 : vector<8x128xf32>
    %228 = vector.extract_strided_slice %227 {offsets = [0, 0], sizes = [8, 32], strides = [1, 1]} : vector<8x128xf32> to vector<8x32xf32>
    %229 = vector.extract_strided_slice %227 {offsets = [0, 32], sizes = [8, 32], strides = [1, 1]} : vector<8x128xf32> to vector<8x32xf32>
    %230 = vector.extract_strided_slice %227 {offsets = [0, 64], sizes = [8, 32], strides = [1, 1]} : vector<8x128xf32> to vector<8x32xf32>
    %231 = vector.extract_strided_slice %227 {offsets = [0, 96], sizes = [8, 32], strides = [1, 1]} : vector<8x128xf32> to vector<8x32xf32>
    %cst_74 = arith.constant 0.000000e+00 : f32
    %232 = vector.broadcast %cst_74 : f32 to vector<8x32xf32>
    %233 = arith.minimumf %229, %232 : vector<8x32xf32>
    %234 = math.absf %229 : vector<8x32xf32>
    %cst_75 = arith.constant 0.000000e+00 : f32
    %235 = vector.broadcast %cst_75 : f32 to vector<8x32xf32>
    %236 = arith.subf %235, %234 : vector<8x32xf32>
    %237 = math.exp %236 : vector<8x32xf32>
    %cst_76 = arith.constant 1.000000e+00 : f32
    %238 = vector.broadcast %cst_76 : f32 to vector<8x32xf32>
    %239 = arith.addf %238, %237 : vector<8x32xf32>
    %240 = math.log %239 : vector<8x32xf32>
    %241 = arith.subf %233, %240 : vector<8x32xf32>
    %242 = arith.addf %198, %241 : vector<8x32xf32>
    %243 = arith.maximumf %228, %242 : vector<8x32xf32>
    %244 = arith.subf %228, %243 : vector<8x32xf32>
    %245 = math.exp %244 : vector<8x32xf32>
    %246 = arith.subf %242, %243 : vector<8x32xf32>
    %247 = math.exp %246 : vector<8x32xf32>
    %248 = arith.mulf %247, %206 : vector<8x32xf32>
    %249 = math.tanh %230 : vector<8x32xf32>
    %250 = arith.mulf %245, %249 : vector<8x32xf32>
    %251 = arith.addf %248, %250 : vector<8x32xf32>
    %252 = arith.mulf %247, %208 : vector<8x32xf32>
    %253 = arith.addf %252, %245 : vector<8x32xf32>
    %254 = tpu.reciprocal %253 {approx = true} : vector<8x32xf32> -> vector<8x32xf32>
    %255 = arith.mulf %253, %254 : vector<8x32xf32>
    %cst_77 = arith.constant 2.000000e+00 : f32
    %256 = vector.broadcast %cst_77 : f32 to vector<8x32xf32>
    %257 = arith.subf %256, %255 : vector<8x32xf32>
    %258 = arith.mulf %254, %257 : vector<8x32xf32>
    %cst_78 = arith.constant 0.000000e+00 : f32
    %259 = vector.broadcast %cst_78 : f32 to vector<8x32xf32>
    %260 = arith.subf %259, %231 : vector<8x32xf32>
    %261 = math.exp %260 : vector<8x32xf32>
    %cst_79 = arith.constant 1.000000e+00 : f32
    %262 = vector.broadcast %cst_79 : f32 to vector<8x32xf32>
    %263 = arith.addf %262, %261 : vector<8x32xf32>
    %cst_80 = arith.constant 1.000000e+00 : f32
    %264 = vector.broadcast %cst_80 : f32 to vector<8x32xf32>
    %265 = arith.divf %264, %263 : vector<8x32xf32>
    %266 = arith.mulf %265, %251 : vector<8x32xf32>
    %267 = arith.mulf %266, %258 : vector<8x32xf32>
    %c4_i32 = arith.constant 4 : i32
    %268 = arith.index_cast %c4_i32 : i32 to index
    %c0_81 = arith.constant 0 : index
    %c0_82 = arith.constant 0 : index
    %269 = vector.load %arg12[%268, %c0_81, %c0_82] : memref<16x8x128xf32, #tpu.memory_space<vmem>>, vector<1x8x128xf32>
    %270 = vector.shape_cast %269 : vector<1x8x128xf32> to vector<8x128xf32>
    %cst_83 = arith.constant dense<0.000000e+00> : vector<8x128xf32>
    %271 = tpu.matmul %267, %85, %cst_83 {dimension_numbers = #tpu.dot_dimension_numbers<[1], [0], [0], [1], [0, 0, 1, 1], [], []>} : vector<8x32xf32>, vector<32x128xf32>, vector<8x128xf32> -> vector<8x128xf32>
    %272 = arith.addf %270, %271 : vector<8x128xf32>
    %273 = vector.extract_strided_slice %272 {offsets = [0, 0], sizes = [8, 32], strides = [1, 1]} : vector<8x128xf32> to vector<8x32xf32>
    %274 = vector.extract_strided_slice %272 {offsets = [0, 32], sizes = [8, 32], strides = [1, 1]} : vector<8x128xf32> to vector<8x32xf32>
    %275 = vector.extract_strided_slice %272 {offsets = [0, 64], sizes = [8, 32], strides = [1, 1]} : vector<8x128xf32> to vector<8x32xf32>
    %276 = vector.extract_strided_slice %272 {offsets = [0, 96], sizes = [8, 32], strides = [1, 1]} : vector<8x128xf32> to vector<8x32xf32>
    %cst_84 = arith.constant 0.000000e+00 : f32
    %277 = vector.broadcast %cst_84 : f32 to vector<8x32xf32>
    %278 = arith.minimumf %274, %277 : vector<8x32xf32>
    %279 = math.absf %274 : vector<8x32xf32>
    %cst_85 = arith.constant 0.000000e+00 : f32
    %280 = vector.broadcast %cst_85 : f32 to vector<8x32xf32>
    %281 = arith.subf %280, %279 : vector<8x32xf32>
    %282 = math.exp %281 : vector<8x32xf32>
    %cst_86 = arith.constant 1.000000e+00 : f32
    %283 = vector.broadcast %cst_86 : f32 to vector<8x32xf32>
    %284 = arith.addf %283, %282 : vector<8x32xf32>
    %285 = math.log %284 : vector<8x32xf32>
    %286 = arith.subf %278, %285 : vector<8x32xf32>
    %287 = arith.addf %243, %286 : vector<8x32xf32>
    %288 = arith.maximumf %273, %287 : vector<8x32xf32>
    %289 = arith.subf %273, %288 : vector<8x32xf32>
    %290 = math.exp %289 : vector<8x32xf32>
    %291 = arith.subf %287, %288 : vector<8x32xf32>
    %292 = math.exp %291 : vector<8x32xf32>
    %293 = arith.mulf %292, %251 : vector<8x32xf32>
    %294 = math.tanh %275 : vector<8x32xf32>
    %295 = arith.mulf %290, %294 : vector<8x32xf32>
    %296 = arith.addf %293, %295 : vector<8x32xf32>
    %297 = arith.mulf %292, %253 : vector<8x32xf32>
    %298 = arith.addf %297, %290 : vector<8x32xf32>
    %299 = tpu.reciprocal %298 {approx = true} : vector<8x32xf32> -> vector<8x32xf32>
    %300 = arith.mulf %298, %299 : vector<8x32xf32>
    %cst_87 = arith.constant 2.000000e+00 : f32
    %301 = vector.broadcast %cst_87 : f32 to vector<8x32xf32>
    %302 = arith.subf %301, %300 : vector<8x32xf32>
    %303 = arith.mulf %299, %302 : vector<8x32xf32>
    %cst_88 = arith.constant 0.000000e+00 : f32
    %304 = vector.broadcast %cst_88 : f32 to vector<8x32xf32>
    %305 = arith.subf %304, %276 : vector<8x32xf32>
    %306 = math.exp %305 : vector<8x32xf32>
    %cst_89 = arith.constant 1.000000e+00 : f32
    %307 = vector.broadcast %cst_89 : f32 to vector<8x32xf32>
    %308 = arith.addf %307, %306 : vector<8x32xf32>
    %cst_90 = arith.constant 1.000000e+00 : f32
    %309 = vector.broadcast %cst_90 : f32 to vector<8x32xf32>
    %310 = arith.divf %309, %308 : vector<8x32xf32>
    %311 = arith.mulf %310, %296 : vector<8x32xf32>
    %312 = arith.mulf %311, %303 : vector<8x32xf32>
    %c5_i32 = arith.constant 5 : i32
    %313 = arith.index_cast %c5_i32 : i32 to index
    %c0_91 = arith.constant 0 : index
    %c0_92 = arith.constant 0 : index
    %314 = vector.load %arg12[%313, %c0_91, %c0_92] : memref<16x8x128xf32, #tpu.memory_space<vmem>>, vector<1x8x128xf32>
    %315 = vector.shape_cast %314 : vector<1x8x128xf32> to vector<8x128xf32>
    %cst_93 = arith.constant dense<0.000000e+00> : vector<8x128xf32>
    %316 = tpu.matmul %312, %85, %cst_93 {dimension_numbers = #tpu.dot_dimension_numbers<[1], [0], [0], [1], [0, 0, 1, 1], [], []>} : vector<8x32xf32>, vector<32x128xf32>, vector<8x128xf32> -> vector<8x128xf32>
    %317 = arith.addf %315, %316 : vector<8x128xf32>
    %318 = vector.extract_strided_slice %317 {offsets = [0, 0], sizes = [8, 32], strides = [1, 1]} : vector<8x128xf32> to vector<8x32xf32>
    %319 = vector.extract_strided_slice %317 {offsets = [0, 32], sizes = [8, 32], strides = [1, 1]} : vector<8x128xf32> to vector<8x32xf32>
    %320 = vector.extract_strided_slice %317 {offsets = [0, 64], sizes = [8, 32], strides = [1, 1]} : vector<8x128xf32> to vector<8x32xf32>
    %321 = vector.extract_strided_slice %317 {offsets = [0, 96], sizes = [8, 32], strides = [1, 1]} : vector<8x128xf32> to vector<8x32xf32>
    %cst_94 = arith.constant 0.000000e+00 : f32
    %322 = vector.broadcast %cst_94 : f32 to vector<8x32xf32>
    %323 = arith.minimumf %319, %322 : vector<8x32xf32>
    %324 = math.absf %319 : vector<8x32xf32>
    %cst_95 = arith.constant 0.000000e+00 : f32
    %325 = vector.broadcast %cst_95 : f32 to vector<8x32xf32>
    %326 = arith.subf %325, %324 : vector<8x32xf32>
    %327 = math.exp %326 : vector<8x32xf32>
    %cst_96 = arith.constant 1.000000e+00 : f32
    %328 = vector.broadcast %cst_96 : f32 to vector<8x32xf32>
    %329 = arith.addf %328, %327 : vector<8x32xf32>
    %330 = math.log %329 : vector<8x32xf32>
    %331 = arith.subf %323, %330 : vector<8x32xf32>
    %332 = arith.addf %288, %331 : vector<8x32xf32>
    %333 = arith.maximumf %318, %332 : vector<8x32xf32>
    %334 = arith.subf %318, %333 : vector<8x32xf32>
    %335 = math.exp %334 : vector<8x32xf32>
    %336 = arith.subf %332, %333 : vector<8x32xf32>
    %337 = math.exp %336 : vector<8x32xf32>
    %338 = arith.mulf %337, %296 : vector<8x32xf32>
    %339 = math.tanh %320 : vector<8x32xf32>
    %340 = arith.mulf %335, %339 : vector<8x32xf32>
    %341 = arith.addf %338, %340 : vector<8x32xf32>
    %342 = arith.mulf %337, %298 : vector<8x32xf32>
    %343 = arith.addf %342, %335 : vector<8x32xf32>
    %344 = tpu.reciprocal %343 {approx = true} : vector<8x32xf32> -> vector<8x32xf32>
    %345 = arith.mulf %343, %344 : vector<8x32xf32>
    %cst_97 = arith.constant 2.000000e+00 : f32
    %346 = vector.broadcast %cst_97 : f32 to vector<8x32xf32>
    %347 = arith.subf %346, %345 : vector<8x32xf32>
    %348 = arith.mulf %344, %347 : vector<8x32xf32>
    %cst_98 = arith.constant 0.000000e+00 : f32
    %349 = vector.broadcast %cst_98 : f32 to vector<8x32xf32>
    %350 = arith.subf %349, %321 : vector<8x32xf32>
    %351 = math.exp %350 : vector<8x32xf32>
    %cst_99 = arith.constant 1.000000e+00 : f32
    %352 = vector.broadcast %cst_99 : f32 to vector<8x32xf32>
    %353 = arith.addf %352, %351 : vector<8x32xf32>
    %cst_100 = arith.constant 1.000000e+00 : f32
    %354 = vector.broadcast %cst_100 : f32 to vector<8x32xf32>
    %355 = arith.divf %354, %353 : vector<8x32xf32>
    %356 = arith.mulf %355, %341 : vector<8x32xf32>
    %357 = arith.mulf %356, %348 : vector<8x32xf32>
    %c6_i32 = arith.constant 6 : i32
    %358 = arith.index_cast %c6_i32 : i32 to index
    %c0_101 = arith.constant 0 : index
    %c0_102 = arith.constant 0 : index
    %359 = vector.load %arg12[%358, %c0_101, %c0_102] : memref<16x8x128xf32, #tpu.memory_space<vmem>>, vector<1x8x128xf32>
    %360 = vector.shape_cast %359 : vector<1x8x128xf32> to vector<8x128xf32>
    %cst_103 = arith.constant dense<0.000000e+00> : vector<8x128xf32>
    %361 = tpu.matmul %357, %85, %cst_103 {dimension_numbers = #tpu.dot_dimension_numbers<[1], [0], [0], [1], [0, 0, 1, 1], [], []>} : vector<8x32xf32>, vector<32x128xf32>, vector<8x128xf32> -> vector<8x128xf32>
    %362 = arith.addf %360, %361 : vector<8x128xf32>
    %363 = vector.extract_strided_slice %362 {offsets = [0, 0], sizes = [8, 32], strides = [1, 1]} : vector<8x128xf32> to vector<8x32xf32>
    %364 = vector.extract_strided_slice %362 {offsets = [0, 32], sizes = [8, 32], strides = [1, 1]} : vector<8x128xf32> to vector<8x32xf32>
    %365 = vector.extract_strided_slice %362 {offsets = [0, 64], sizes = [8, 32], strides = [1, 1]} : vector<8x128xf32> to vector<8x32xf32>
    %366 = vector.extract_strided_slice %362 {offsets = [0, 96], sizes = [8, 32], strides = [1, 1]} : vector<8x128xf32> to vector<8x32xf32>
    %cst_104 = arith.constant 0.000000e+00 : f32
    %367 = vector.broadcast %cst_104 : f32 to vector<8x32xf32>
    %368 = arith.minimumf %364, %367 : vector<8x32xf32>
    %369 = math.absf %364 : vector<8x32xf32>
    %cst_105 = arith.constant 0.000000e+00 : f32
    %370 = vector.broadcast %cst_105 : f32 to vector<8x32xf32>
    %371 = arith.subf %370, %369 : vector<8x32xf32>
    %372 = math.exp %371 : vector<8x32xf32>
    %cst_106 = arith.constant 1.000000e+00 : f32
    %373 = vector.broadcast %cst_106 : f32 to vector<8x32xf32>
    %374 = arith.addf %373, %372 : vector<8x32xf32>
    %375 = math.log %374 : vector<8x32xf32>
    %376 = arith.subf %368, %375 : vector<8x32xf32>
    %377 = arith.addf %333, %376 : vector<8x32xf32>
    %378 = arith.maximumf %363, %377 : vector<8x32xf32>
    %379 = arith.subf %363, %378 : vector<8x32xf32>
    %380 = math.exp %379 : vector<8x32xf32>
    %381 = arith.subf %377, %378 : vector<8x32xf32>
    %382 = math.exp %381 : vector<8x32xf32>
    %383 = arith.mulf %382, %341 : vector<8x32xf32>
    %384 = math.tanh %365 : vector<8x32xf32>
    %385 = arith.mulf %380, %384 : vector<8x32xf32>
    %386 = arith.addf %383, %385 : vector<8x32xf32>
    %387 = arith.mulf %382, %343 : vector<8x32xf32>
    %388 = arith.addf %387, %380 : vector<8x32xf32>
    %389 = tpu.reciprocal %388 {approx = true} : vector<8x32xf32> -> vector<8x32xf32>
    %390 = arith.mulf %388, %389 : vector<8x32xf32>
    %cst_107 = arith.constant 2.000000e+00 : f32
    %391 = vector.broadcast %cst_107 : f32 to vector<8x32xf32>
    %392 = arith.subf %391, %390 : vector<8x32xf32>
    %393 = arith.mulf %389, %392 : vector<8x32xf32>
    %cst_108 = arith.constant 0.000000e+00 : f32
    %394 = vector.broadcast %cst_108 : f32 to vector<8x32xf32>
    %395 = arith.subf %394, %366 : vector<8x32xf32>
    %396 = math.exp %395 : vector<8x32xf32>
    %cst_109 = arith.constant 1.000000e+00 : f32
    %397 = vector.broadcast %cst_109 : f32 to vector<8x32xf32>
    %398 = arith.addf %397, %396 : vector<8x32xf32>
    %cst_110 = arith.constant 1.000000e+00 : f32
    %399 = vector.broadcast %cst_110 : f32 to vector<8x32xf32>
    %400 = arith.divf %399, %398 : vector<8x32xf32>
    %401 = arith.mulf %400, %386 : vector<8x32xf32>
    %402 = arith.mulf %401, %393 : vector<8x32xf32>
    %c7_i32 = arith.constant 7 : i32
    %403 = arith.index_cast %c7_i32 : i32 to index
    %c0_111 = arith.constant 0 : index
    %c0_112 = arith.constant 0 : index
    %404 = vector.load %arg12[%403, %c0_111, %c0_112] : memref<16x8x128xf32, #tpu.memory_space<vmem>>, vector<1x8x128xf32>
    %405 = vector.shape_cast %404 : vector<1x8x128xf32> to vector<8x128xf32>
    %cst_113 = arith.constant dense<0.000000e+00> : vector<8x128xf32>
    %406 = tpu.matmul %402, %85, %cst_113 {dimension_numbers = #tpu.dot_dimension_numbers<[1], [0], [0], [1], [0, 0, 1, 1], [], []>} : vector<8x32xf32>, vector<32x128xf32>, vector<8x128xf32> -> vector<8x128xf32>
    %407 = arith.addf %405, %406 : vector<8x128xf32>
    %408 = vector.extract_strided_slice %407 {offsets = [0, 0], sizes = [8, 32], strides = [1, 1]} : vector<8x128xf32> to vector<8x32xf32>
    %409 = vector.extract_strided_slice %407 {offsets = [0, 32], sizes = [8, 32], strides = [1, 1]} : vector<8x128xf32> to vector<8x32xf32>
    %410 = vector.extract_strided_slice %407 {offsets = [0, 64], sizes = [8, 32], strides = [1, 1]} : vector<8x128xf32> to vector<8x32xf32>
    %411 = vector.extract_strided_slice %407 {offsets = [0, 96], sizes = [8, 32], strides = [1, 1]} : vector<8x128xf32> to vector<8x32xf32>
    %cst_114 = arith.constant 0.000000e+00 : f32
    %412 = vector.broadcast %cst_114 : f32 to vector<8x32xf32>
    %413 = arith.minimumf %409, %412 : vector<8x32xf32>
    %414 = math.absf %409 : vector<8x32xf32>
    %cst_115 = arith.constant 0.000000e+00 : f32
    %415 = vector.broadcast %cst_115 : f32 to vector<8x32xf32>
    %416 = arith.subf %415, %414 : vector<8x32xf32>
    %417 = math.exp %416 : vector<8x32xf32>
    %cst_116 = arith.constant 1.000000e+00 : f32
    %418 = vector.broadcast %cst_116 : f32 to vector<8x32xf32>
    %419 = arith.addf %418, %417 : vector<8x32xf32>
    %420 = math.log %419 : vector<8x32xf32>
    %421 = arith.subf %413, %420 : vector<8x32xf32>
    %422 = arith.addf %378, %421 : vector<8x32xf32>
    %423 = arith.maximumf %408, %422 : vector<8x32xf32>
    %424 = arith.subf %408, %423 : vector<8x32xf32>
    %425 = math.exp %424 : vector<8x32xf32>
    %426 = arith.subf %422, %423 : vector<8x32xf32>
    %427 = math.exp %426 : vector<8x32xf32>
    %428 = arith.mulf %427, %386 : vector<8x32xf32>
    %429 = math.tanh %410 : vector<8x32xf32>
    %430 = arith.mulf %425, %429 : vector<8x32xf32>
    %431 = arith.addf %428, %430 : vector<8x32xf32>
    %432 = arith.mulf %427, %388 : vector<8x32xf32>
    %433 = arith.addf %432, %425 : vector<8x32xf32>
    %434 = tpu.reciprocal %433 {approx = true} : vector<8x32xf32> -> vector<8x32xf32>
    %435 = arith.mulf %433, %434 : vector<8x32xf32>
    %cst_117 = arith.constant 2.000000e+00 : f32
    %436 = vector.broadcast %cst_117 : f32 to vector<8x32xf32>
    %437 = arith.subf %436, %435 : vector<8x32xf32>
    %438 = arith.mulf %434, %437 : vector<8x32xf32>
    %cst_118 = arith.constant 0.000000e+00 : f32
    %439 = vector.broadcast %cst_118 : f32 to vector<8x32xf32>
    %440 = arith.subf %439, %411 : vector<8x32xf32>
    %441 = math.exp %440 : vector<8x32xf32>
    %cst_119 = arith.constant 1.000000e+00 : f32
    %442 = vector.broadcast %cst_119 : f32 to vector<8x32xf32>
    %443 = arith.addf %442, %441 : vector<8x32xf32>
    %cst_120 = arith.constant 1.000000e+00 : f32
    %444 = vector.broadcast %cst_120 : f32 to vector<8x32xf32>
    %445 = arith.divf %444, %443 : vector<8x32xf32>
    %446 = arith.mulf %445, %431 : vector<8x32xf32>
    %447 = arith.mulf %446, %438 : vector<8x32xf32>
    %c8_i32 = arith.constant 8 : i32
    %448 = arith.index_cast %c8_i32 : i32 to index
    %c0_121 = arith.constant 0 : index
    %c0_122 = arith.constant 0 : index
    %449 = vector.load %arg12[%448, %c0_121, %c0_122] : memref<16x8x128xf32, #tpu.memory_space<vmem>>, vector<1x8x128xf32>
    %450 = vector.shape_cast %449 : vector<1x8x128xf32> to vector<8x128xf32>
    %cst_123 = arith.constant dense<0.000000e+00> : vector<8x128xf32>
    %451 = tpu.matmul %447, %85, %cst_123 {dimension_numbers = #tpu.dot_dimension_numbers<[1], [0], [0], [1], [0, 0, 1, 1], [], []>} : vector<8x32xf32>, vector<32x128xf32>, vector<8x128xf32> -> vector<8x128xf32>
    %452 = arith.addf %450, %451 : vector<8x128xf32>
    %453 = vector.extract_strided_slice %452 {offsets = [0, 0], sizes = [8, 32], strides = [1, 1]} : vector<8x128xf32> to vector<8x32xf32>
    %454 = vector.extract_strided_slice %452 {offsets = [0, 32], sizes = [8, 32], strides = [1, 1]} : vector<8x128xf32> to vector<8x32xf32>
    %455 = vector.extract_strided_slice %452 {offsets = [0, 64], sizes = [8, 32], strides = [1, 1]} : vector<8x128xf32> to vector<8x32xf32>
    %456 = vector.extract_strided_slice %452 {offsets = [0, 96], sizes = [8, 32], strides = [1, 1]} : vector<8x128xf32> to vector<8x32xf32>
    %cst_124 = arith.constant 0.000000e+00 : f32
    %457 = vector.broadcast %cst_124 : f32 to vector<8x32xf32>
    %458 = arith.minimumf %454, %457 : vector<8x32xf32>
    %459 = math.absf %454 : vector<8x32xf32>
    %cst_125 = arith.constant 0.000000e+00 : f32
    %460 = vector.broadcast %cst_125 : f32 to vector<8x32xf32>
    %461 = arith.subf %460, %459 : vector<8x32xf32>
    %462 = math.exp %461 : vector<8x32xf32>
    %cst_126 = arith.constant 1.000000e+00 : f32
    %463 = vector.broadcast %cst_126 : f32 to vector<8x32xf32>
    %464 = arith.addf %463, %462 : vector<8x32xf32>
    %465 = math.log %464 : vector<8x32xf32>
    %466 = arith.subf %458, %465 : vector<8x32xf32>
    %467 = arith.addf %423, %466 : vector<8x32xf32>
    %468 = arith.maximumf %453, %467 : vector<8x32xf32>
    %469 = arith.subf %453, %468 : vector<8x32xf32>
    %470 = math.exp %469 : vector<8x32xf32>
    %471 = arith.subf %467, %468 : vector<8x32xf32>
    %472 = math.exp %471 : vector<8x32xf32>
    %473 = arith.mulf %472, %431 : vector<8x32xf32>
    %474 = math.tanh %455 : vector<8x32xf32>
    %475 = arith.mulf %470, %474 : vector<8x32xf32>
    %476 = arith.addf %473, %475 : vector<8x32xf32>
    %477 = arith.mulf %472, %433 : vector<8x32xf32>
    %478 = arith.addf %477, %470 : vector<8x32xf32>
    %479 = tpu.reciprocal %478 {approx = true} : vector<8x32xf32> -> vector<8x32xf32>
    %480 = arith.mulf %478, %479 : vector<8x32xf32>
    %cst_127 = arith.constant 2.000000e+00 : f32
    %481 = vector.broadcast %cst_127 : f32 to vector<8x32xf32>
    %482 = arith.subf %481, %480 : vector<8x32xf32>
    %483 = arith.mulf %479, %482 : vector<8x32xf32>
    %cst_128 = arith.constant 0.000000e+00 : f32
    %484 = vector.broadcast %cst_128 : f32 to vector<8x32xf32>
    %485 = arith.subf %484, %456 : vector<8x32xf32>
    %486 = math.exp %485 : vector<8x32xf32>
    %cst_129 = arith.constant 1.000000e+00 : f32
    %487 = vector.broadcast %cst_129 : f32 to vector<8x32xf32>
    %488 = arith.addf %487, %486 : vector<8x32xf32>
    %cst_130 = arith.constant 1.000000e+00 : f32
    %489 = vector.broadcast %cst_130 : f32 to vector<8x32xf32>
    %490 = arith.divf %489, %488 : vector<8x32xf32>
    %491 = arith.mulf %490, %476 : vector<8x32xf32>
    %492 = arith.mulf %491, %483 : vector<8x32xf32>
    %c9_i32 = arith.constant 9 : i32
    %493 = arith.index_cast %c9_i32 : i32 to index
    %c0_131 = arith.constant 0 : index
    %c0_132 = arith.constant 0 : index
    %494 = vector.load %arg12[%493, %c0_131, %c0_132] : memref<16x8x128xf32, #tpu.memory_space<vmem>>, vector<1x8x128xf32>
    %495 = vector.shape_cast %494 : vector<1x8x128xf32> to vector<8x128xf32>
    %cst_133 = arith.constant dense<0.000000e+00> : vector<8x128xf32>
    %496 = tpu.matmul %492, %85, %cst_133 {dimension_numbers = #tpu.dot_dimension_numbers<[1], [0], [0], [1], [0, 0, 1, 1], [], []>} : vector<8x32xf32>, vector<32x128xf32>, vector<8x128xf32> -> vector<8x128xf32>
    %497 = arith.addf %495, %496 : vector<8x128xf32>
    %498 = vector.extract_strided_slice %497 {offsets = [0, 0], sizes = [8, 32], strides = [1, 1]} : vector<8x128xf32> to vector<8x32xf32>
    %499 = vector.extract_strided_slice %497 {offsets = [0, 32], sizes = [8, 32], strides = [1, 1]} : vector<8x128xf32> to vector<8x32xf32>
    %500 = vector.extract_strided_slice %497 {offsets = [0, 64], sizes = [8, 32], strides = [1, 1]} : vector<8x128xf32> to vector<8x32xf32>
    %501 = vector.extract_strided_slice %497 {offsets = [0, 96], sizes = [8, 32], strides = [1, 1]} : vector<8x128xf32> to vector<8x32xf32>
    %cst_134 = arith.constant 0.000000e+00 : f32
    %502 = vector.broadcast %cst_134 : f32 to vector<8x32xf32>
    %503 = arith.minimumf %499, %502 : vector<8x32xf32>
    %504 = math.absf %499 : vector<8x32xf32>
    %cst_135 = arith.constant 0.000000e+00 : f32
    %505 = vector.broadcast %cst_135 : f32 to vector<8x32xf32>
    %506 = arith.subf %505, %504 : vector<8x32xf32>
    %507 = math.exp %506 : vector<8x32xf32>
    %cst_136 = arith.constant 1.000000e+00 : f32
    %508 = vector.broadcast %cst_136 : f32 to vector<8x32xf32>
    %509 = arith.addf %508, %507 : vector<8x32xf32>
    %510 = math.log %509 : vector<8x32xf32>
    %511 = arith.subf %503, %510 : vector<8x32xf32>
    %512 = arith.addf %468, %511 : vector<8x32xf32>
    %513 = arith.maximumf %498, %512 : vector<8x32xf32>
    %514 = arith.subf %498, %513 : vector<8x32xf32>
    %515 = math.exp %514 : vector<8x32xf32>
    %516 = arith.subf %512, %513 : vector<8x32xf32>
    %517 = math.exp %516 : vector<8x32xf32>
    %518 = arith.mulf %517, %476 : vector<8x32xf32>
    %519 = math.tanh %500 : vector<8x32xf32>
    %520 = arith.mulf %515, %519 : vector<8x32xf32>
    %521 = arith.addf %518, %520 : vector<8x32xf32>
    %522 = arith.mulf %517, %478 : vector<8x32xf32>
    %523 = arith.addf %522, %515 : vector<8x32xf32>
    %524 = tpu.reciprocal %523 {approx = true} : vector<8x32xf32> -> vector<8x32xf32>
    %525 = arith.mulf %523, %524 : vector<8x32xf32>
    %cst_137 = arith.constant 2.000000e+00 : f32
    %526 = vector.broadcast %cst_137 : f32 to vector<8x32xf32>
    %527 = arith.subf %526, %525 : vector<8x32xf32>
    %528 = arith.mulf %524, %527 : vector<8x32xf32>
    %cst_138 = arith.constant 0.000000e+00 : f32
    %529 = vector.broadcast %cst_138 : f32 to vector<8x32xf32>
    %530 = arith.subf %529, %501 : vector<8x32xf32>
    %531 = math.exp %530 : vector<8x32xf32>
    %cst_139 = arith.constant 1.000000e+00 : f32
    %532 = vector.broadcast %cst_139 : f32 to vector<8x32xf32>
    %533 = arith.addf %532, %531 : vector<8x32xf32>
    %cst_140 = arith.constant 1.000000e+00 : f32
    %534 = vector.broadcast %cst_140 : f32 to vector<8x32xf32>
    %535 = arith.divf %534, %533 : vector<8x32xf32>
    %536 = arith.mulf %535, %521 : vector<8x32xf32>
    %537 = arith.mulf %536, %528 : vector<8x32xf32>
    %c10_i32 = arith.constant 10 : i32
    %538 = arith.index_cast %c10_i32 : i32 to index
    %c0_141 = arith.constant 0 : index
    %c0_142 = arith.constant 0 : index
    %539 = vector.load %arg12[%538, %c0_141, %c0_142] : memref<16x8x128xf32, #tpu.memory_space<vmem>>, vector<1x8x128xf32>
    %540 = vector.shape_cast %539 : vector<1x8x128xf32> to vector<8x128xf32>
    %cst_143 = arith.constant dense<0.000000e+00> : vector<8x128xf32>
    %541 = tpu.matmul %537, %85, %cst_143 {dimension_numbers = #tpu.dot_dimension_numbers<[1], [0], [0], [1], [0, 0, 1, 1], [], []>} : vector<8x32xf32>, vector<32x128xf32>, vector<8x128xf32> -> vector<8x128xf32>
    %542 = arith.addf %540, %541 : vector<8x128xf32>
    %543 = vector.extract_strided_slice %542 {offsets = [0, 0], sizes = [8, 32], strides = [1, 1]} : vector<8x128xf32> to vector<8x32xf32>
    %544 = vector.extract_strided_slice %542 {offsets = [0, 32], sizes = [8, 32], strides = [1, 1]} : vector<8x128xf32> to vector<8x32xf32>
    %545 = vector.extract_strided_slice %542 {offsets = [0, 64], sizes = [8, 32], strides = [1, 1]} : vector<8x128xf32> to vector<8x32xf32>
    %546 = vector.extract_strided_slice %542 {offsets = [0, 96], sizes = [8, 32], strides = [1, 1]} : vector<8x128xf32> to vector<8x32xf32>
    %cst_144 = arith.constant 0.000000e+00 : f32
    %547 = vector.broadcast %cst_144 : f32 to vector<8x32xf32>
    %548 = arith.minimumf %544, %547 : vector<8x32xf32>
    %549 = math.absf %544 : vector<8x32xf32>
    %cst_145 = arith.constant 0.000000e+00 : f32
    %550 = vector.broadcast %cst_145 : f32 to vector<8x32xf32>
    %551 = arith.subf %550, %549 : vector<8x32xf32>
    %552 = math.exp %551 : vector<8x32xf32>
    %cst_146 = arith.constant 1.000000e+00 : f32
    %553 = vector.broadcast %cst_146 : f32 to vector<8x32xf32>
    %554 = arith.addf %553, %552 : vector<8x32xf32>
    %555 = math.log %554 : vector<8x32xf32>
    %556 = arith.subf %548, %555 : vector<8x32xf32>
    %557 = arith.addf %513, %556 : vector<8x32xf32>
    %558 = arith.maximumf %543, %557 : vector<8x32xf32>
    %559 = arith.subf %543, %558 : vector<8x32xf32>
    %560 = math.exp %559 : vector<8x32xf32>
    %561 = arith.subf %557, %558 : vector<8x32xf32>
    %562 = math.exp %561 : vector<8x32xf32>
    %563 = arith.mulf %562, %521 : vector<8x32xf32>
    %564 = math.tanh %545 : vector<8x32xf32>
    %565 = arith.mulf %560, %564 : vector<8x32xf32>
    %566 = arith.addf %563, %565 : vector<8x32xf32>
    %567 = arith.mulf %562, %523 : vector<8x32xf32>
    %568 = arith.addf %567, %560 : vector<8x32xf32>
    %569 = tpu.reciprocal %568 {approx = true} : vector<8x32xf32> -> vector<8x32xf32>
    %570 = arith.mulf %568, %569 : vector<8x32xf32>
    %cst_147 = arith.constant 2.000000e+00 : f32
    %571 = vector.broadcast %cst_147 : f32 to vector<8x32xf32>
    %572 = arith.subf %571, %570 : vector<8x32xf32>
    %573 = arith.mulf %569, %572 : vector<8x32xf32>
    %cst_148 = arith.constant 0.000000e+00 : f32
    %574 = vector.broadcast %cst_148 : f32 to vector<8x32xf32>
    %575 = arith.subf %574, %546 : vector<8x32xf32>
    %576 = math.exp %575 : vector<8x32xf32>
    %cst_149 = arith.constant 1.000000e+00 : f32
    %577 = vector.broadcast %cst_149 : f32 to vector<8x32xf32>
    %578 = arith.addf %577, %576 : vector<8x32xf32>
    %cst_150 = arith.constant 1.000000e+00 : f32
    %579 = vector.broadcast %cst_150 : f32 to vector<8x32xf32>
    %580 = arith.divf %579, %578 : vector<8x32xf32>
    %581 = arith.mulf %580, %566 : vector<8x32xf32>
    %582 = arith.mulf %581, %573 : vector<8x32xf32>
    %c11_i32 = arith.constant 11 : i32
    %583 = arith.index_cast %c11_i32 : i32 to index
    %c0_151 = arith.constant 0 : index
    %c0_152 = arith.constant 0 : index
    %584 = vector.load %arg12[%583, %c0_151, %c0_152] : memref<16x8x128xf32, #tpu.memory_space<vmem>>, vector<1x8x128xf32>
    %585 = vector.shape_cast %584 : vector<1x8x128xf32> to vector<8x128xf32>
    %cst_153 = arith.constant dense<0.000000e+00> : vector<8x128xf32>
    %586 = tpu.matmul %582, %85, %cst_153 {dimension_numbers = #tpu.dot_dimension_numbers<[1], [0], [0], [1], [0, 0, 1, 1], [], []>} : vector<8x32xf32>, vector<32x128xf32>, vector<8x128xf32> -> vector<8x128xf32>
    %587 = arith.addf %585, %586 : vector<8x128xf32>
    %588 = vector.extract_strided_slice %587 {offsets = [0, 0], sizes = [8, 32], strides = [1, 1]} : vector<8x128xf32> to vector<8x32xf32>
    %589 = vector.extract_strided_slice %587 {offsets = [0, 32], sizes = [8, 32], strides = [1, 1]} : vector<8x128xf32> to vector<8x32xf32>
    %590 = vector.extract_strided_slice %587 {offsets = [0, 64], sizes = [8, 32], strides = [1, 1]} : vector<8x128xf32> to vector<8x32xf32>
    %591 = vector.extract_strided_slice %587 {offsets = [0, 96], sizes = [8, 32], strides = [1, 1]} : vector<8x128xf32> to vector<8x32xf32>
    %cst_154 = arith.constant 0.000000e+00 : f32
    %592 = vector.broadcast %cst_154 : f32 to vector<8x32xf32>
    %593 = arith.minimumf %589, %592 : vector<8x32xf32>
    %594 = math.absf %589 : vector<8x32xf32>
    %cst_155 = arith.constant 0.000000e+00 : f32
    %595 = vector.broadcast %cst_155 : f32 to vector<8x32xf32>
    %596 = arith.subf %595, %594 : vector<8x32xf32>
    %597 = math.exp %596 : vector<8x32xf32>
    %cst_156 = arith.constant 1.000000e+00 : f32
    %598 = vector.broadcast %cst_156 : f32 to vector<8x32xf32>
    %599 = arith.addf %598, %597 : vector<8x32xf32>
    %600 = math.log %599 : vector<8x32xf32>
    %601 = arith.subf %593, %600 : vector<8x32xf32>
    %602 = arith.addf %558, %601 : vector<8x32xf32>
    %603 = arith.maximumf %588, %602 : vector<8x32xf32>
    %604 = arith.subf %588, %603 : vector<8x32xf32>
    %605 = math.exp %604 : vector<8x32xf32>
    %606 = arith.subf %602, %603 : vector<8x32xf32>
    %607 = math.exp %606 : vector<8x32xf32>
    %608 = arith.mulf %607, %566 : vector<8x32xf32>
    %609 = math.tanh %590 : vector<8x32xf32>
    %610 = arith.mulf %605, %609 : vector<8x32xf32>
    %611 = arith.addf %608, %610 : vector<8x32xf32>
    %612 = arith.mulf %607, %568 : vector<8x32xf32>
    %613 = arith.addf %612, %605 : vector<8x32xf32>
    %614 = tpu.reciprocal %613 {approx = true} : vector<8x32xf32> -> vector<8x32xf32>
    %615 = arith.mulf %613, %614 : vector<8x32xf32>
    %cst_157 = arith.constant 2.000000e+00 : f32
    %616 = vector.broadcast %cst_157 : f32 to vector<8x32xf32>
    %617 = arith.subf %616, %615 : vector<8x32xf32>
    %618 = arith.mulf %614, %617 : vector<8x32xf32>
    %cst_158 = arith.constant 0.000000e+00 : f32
    %619 = vector.broadcast %cst_158 : f32 to vector<8x32xf32>
    %620 = arith.subf %619, %591 : vector<8x32xf32>
    %621 = math.exp %620 : vector<8x32xf32>
    %cst_159 = arith.constant 1.000000e+00 : f32
    %622 = vector.broadcast %cst_159 : f32 to vector<8x32xf32>
    %623 = arith.addf %622, %621 : vector<8x32xf32>
    %cst_160 = arith.constant 1.000000e+00 : f32
    %624 = vector.broadcast %cst_160 : f32 to vector<8x32xf32>
    %625 = arith.divf %624, %623 : vector<8x32xf32>
    %626 = arith.mulf %625, %611 : vector<8x32xf32>
    %627 = arith.mulf %626, %618 : vector<8x32xf32>
    %c12_i32 = arith.constant 12 : i32
    %628 = arith.index_cast %c12_i32 : i32 to index
    %c0_161 = arith.constant 0 : index
    %c0_162 = arith.constant 0 : index
    %629 = vector.load %arg12[%628, %c0_161, %c0_162] : memref<16x8x128xf32, #tpu.memory_space<vmem>>, vector<1x8x128xf32>
    %630 = vector.shape_cast %629 : vector<1x8x128xf32> to vector<8x128xf32>
    %cst_163 = arith.constant dense<0.000000e+00> : vector<8x128xf32>
    %631 = tpu.matmul %627, %85, %cst_163 {dimension_numbers = #tpu.dot_dimension_numbers<[1], [0], [0], [1], [0, 0, 1, 1], [], []>} : vector<8x32xf32>, vector<32x128xf32>, vector<8x128xf32> -> vector<8x128xf32>
    %632 = arith.addf %630, %631 : vector<8x128xf32>
    %633 = vector.extract_strided_slice %632 {offsets = [0, 0], sizes = [8, 32], strides = [1, 1]} : vector<8x128xf32> to vector<8x32xf32>
    %634 = vector.extract_strided_slice %632 {offsets = [0, 32], sizes = [8, 32], strides = [1, 1]} : vector<8x128xf32> to vector<8x32xf32>
    %635 = vector.extract_strided_slice %632 {offsets = [0, 64], sizes = [8, 32], strides = [1, 1]} : vector<8x128xf32> to vector<8x32xf32>
    %636 = vector.extract_strided_slice %632 {offsets = [0, 96], sizes = [8, 32], strides = [1, 1]} : vector<8x128xf32> to vector<8x32xf32>
    %cst_164 = arith.constant 0.000000e+00 : f32
    %637 = vector.broadcast %cst_164 : f32 to vector<8x32xf32>
    %638 = arith.minimumf %634, %637 : vector<8x32xf32>
    %639 = math.absf %634 : vector<8x32xf32>
    %cst_165 = arith.constant 0.000000e+00 : f32
    %640 = vector.broadcast %cst_165 : f32 to vector<8x32xf32>
    %641 = arith.subf %640, %639 : vector<8x32xf32>
    %642 = math.exp %641 : vector<8x32xf32>
    %cst_166 = arith.constant 1.000000e+00 : f32
    %643 = vector.broadcast %cst_166 : f32 to vector<8x32xf32>
    %644 = arith.addf %643, %642 : vector<8x32xf32>
    %645 = math.log %644 : vector<8x32xf32>
    %646 = arith.subf %638, %645 : vector<8x32xf32>
    %647 = arith.addf %603, %646 : vector<8x32xf32>
    %648 = arith.maximumf %633, %647 : vector<8x32xf32>
    %649 = arith.subf %633, %648 : vector<8x32xf32>
    %650 = math.exp %649 : vector<8x32xf32>
    %651 = arith.subf %647, %648 : vector<8x32xf32>
    %652 = math.exp %651 : vector<8x32xf32>
    %653 = arith.mulf %652, %611 : vector<8x32xf32>
    %654 = math.tanh %635 : vector<8x32xf32>
    %655 = arith.mulf %650, %654 : vector<8x32xf32>
    %656 = arith.addf %653, %655 : vector<8x32xf32>
    %657 = arith.mulf %652, %613 : vector<8x32xf32>
    %658 = arith.addf %657, %650 : vector<8x32xf32>
    %659 = tpu.reciprocal %658 {approx = true} : vector<8x32xf32> -> vector<8x32xf32>
    %660 = arith.mulf %658, %659 : vector<8x32xf32>
    %cst_167 = arith.constant 2.000000e+00 : f32
    %661 = vector.broadcast %cst_167 : f32 to vector<8x32xf32>
    %662 = arith.subf %661, %660 : vector<8x32xf32>
    %663 = arith.mulf %659, %662 : vector<8x32xf32>
    %cst_168 = arith.constant 0.000000e+00 : f32
    %664 = vector.broadcast %cst_168 : f32 to vector<8x32xf32>
    %665 = arith.subf %664, %636 : vector<8x32xf32>
    %666 = math.exp %665 : vector<8x32xf32>
    %cst_169 = arith.constant 1.000000e+00 : f32
    %667 = vector.broadcast %cst_169 : f32 to vector<8x32xf32>
    %668 = arith.addf %667, %666 : vector<8x32xf32>
    %cst_170 = arith.constant 1.000000e+00 : f32
    %669 = vector.broadcast %cst_170 : f32 to vector<8x32xf32>
    %670 = arith.divf %669, %668 : vector<8x32xf32>
    %671 = arith.mulf %670, %656 : vector<8x32xf32>
    %672 = arith.mulf %671, %663 : vector<8x32xf32>
    %c13_i32 = arith.constant 13 : i32
    %673 = arith.index_cast %c13_i32 : i32 to index
    %c0_171 = arith.constant 0 : index
    %c0_172 = arith.constant 0 : index
    %674 = vector.load %arg12[%673, %c0_171, %c0_172] : memref<16x8x128xf32, #tpu.memory_space<vmem>>, vector<1x8x128xf32>
    %675 = vector.shape_cast %674 : vector<1x8x128xf32> to vector<8x128xf32>
    %cst_173 = arith.constant dense<0.000000e+00> : vector<8x128xf32>
    %676 = tpu.matmul %672, %85, %cst_173 {dimension_numbers = #tpu.dot_dimension_numbers<[1], [0], [0], [1], [0, 0, 1, 1], [], []>} : vector<8x32xf32>, vector<32x128xf32>, vector<8x128xf32> -> vector<8x128xf32>
    %677 = arith.addf %675, %676 : vector<8x128xf32>
    %678 = vector.extract_strided_slice %677 {offsets = [0, 0], sizes = [8, 32], strides = [1, 1]} : vector<8x128xf32> to vector<8x32xf32>
    %679 = vector.extract_strided_slice %677 {offsets = [0, 32], sizes = [8, 32], strides = [1, 1]} : vector<8x128xf32> to vector<8x32xf32>
    %680 = vector.extract_strided_slice %677 {offsets = [0, 64], sizes = [8, 32], strides = [1, 1]} : vector<8x128xf32> to vector<8x32xf32>
    %681 = vector.extract_strided_slice %677 {offsets = [0, 96], sizes = [8, 32], strides = [1, 1]} : vector<8x128xf32> to vector<8x32xf32>
    %cst_174 = arith.constant 0.000000e+00 : f32
    %682 = vector.broadcast %cst_174 : f32 to vector<8x32xf32>
    %683 = arith.minimumf %679, %682 : vector<8x32xf32>
    %684 = math.absf %679 : vector<8x32xf32>
    %cst_175 = arith.constant 0.000000e+00 : f32
    %685 = vector.broadcast %cst_175 : f32 to vector<8x32xf32>
    %686 = arith.subf %685, %684 : vector<8x32xf32>
    %687 = math.exp %686 : vector<8x32xf32>
    %cst_176 = arith.constant 1.000000e+00 : f32
    %688 = vector.broadcast %cst_176 : f32 to vector<8x32xf32>
    %689 = arith.addf %688, %687 : vector<8x32xf32>
    %690 = math.log %689 : vector<8x32xf32>
    %691 = arith.subf %683, %690 : vector<8x32xf32>
    %692 = arith.addf %648, %691 : vector<8x32xf32>
    %693 = arith.maximumf %678, %692 : vector<8x32xf32>
    %694 = arith.subf %678, %693 : vector<8x32xf32>
    %695 = math.exp %694 : vector<8x32xf32>
    %696 = arith.subf %692, %693 : vector<8x32xf32>
    %697 = math.exp %696 : vector<8x32xf32>
    %698 = arith.mulf %697, %656 : vector<8x32xf32>
    %699 = math.tanh %680 : vector<8x32xf32>
    %700 = arith.mulf %695, %699 : vector<8x32xf32>
    %701 = arith.addf %698, %700 : vector<8x32xf32>
    %702 = arith.mulf %697, %658 : vector<8x32xf32>
    %703 = arith.addf %702, %695 : vector<8x32xf32>
    %704 = tpu.reciprocal %703 {approx = true} : vector<8x32xf32> -> vector<8x32xf32>
    %705 = arith.mulf %703, %704 : vector<8x32xf32>
    %cst_177 = arith.constant 2.000000e+00 : f32
    %706 = vector.broadcast %cst_177 : f32 to vector<8x32xf32>
    %707 = arith.subf %706, %705 : vector<8x32xf32>
    %708 = arith.mulf %704, %707 : vector<8x32xf32>
    %cst_178 = arith.constant 0.000000e+00 : f32
    %709 = vector.broadcast %cst_178 : f32 to vector<8x32xf32>
    %710 = arith.subf %709, %681 : vector<8x32xf32>
    %711 = math.exp %710 : vector<8x32xf32>
    %cst_179 = arith.constant 1.000000e+00 : f32
    %712 = vector.broadcast %cst_179 : f32 to vector<8x32xf32>
    %713 = arith.addf %712, %711 : vector<8x32xf32>
    %cst_180 = arith.constant 1.000000e+00 : f32
    %714 = vector.broadcast %cst_180 : f32 to vector<8x32xf32>
    %715 = arith.divf %714, %713 : vector<8x32xf32>
    %716 = arith.mulf %715, %701 : vector<8x32xf32>
    %717 = arith.mulf %716, %708 : vector<8x32xf32>
    %c14_i32 = arith.constant 14 : i32
    %718 = arith.index_cast %c14_i32 : i32 to index
    %c0_181 = arith.constant 0 : index
    %c0_182 = arith.constant 0 : index
    %719 = vector.load %arg12[%718, %c0_181, %c0_182] : memref<16x8x128xf32, #tpu.memory_space<vmem>>, vector<1x8x128xf32>
    %720 = vector.shape_cast %719 : vector<1x8x128xf32> to vector<8x128xf32>
    %cst_183 = arith.constant dense<0.000000e+00> : vector<8x128xf32>
    %721 = tpu.matmul %717, %85, %cst_183 {dimension_numbers = #tpu.dot_dimension_numbers<[1], [0], [0], [1], [0, 0, 1, 1], [], []>} : vector<8x32xf32>, vector<32x128xf32>, vector<8x128xf32> -> vector<8x128xf32>
    %722 = arith.addf %720, %721 : vector<8x128xf32>
    %723 = vector.extract_strided_slice %722 {offsets = [0, 0], sizes = [8, 32], strides = [1, 1]} : vector<8x128xf32> to vector<8x32xf32>
    %724 = vector.extract_strided_slice %722 {offsets = [0, 32], sizes = [8, 32], strides = [1, 1]} : vector<8x128xf32> to vector<8x32xf32>
    %725 = vector.extract_strided_slice %722 {offsets = [0, 64], sizes = [8, 32], strides = [1, 1]} : vector<8x128xf32> to vector<8x32xf32>
    %726 = vector.extract_strided_slice %722 {offsets = [0, 96], sizes = [8, 32], strides = [1, 1]} : vector<8x128xf32> to vector<8x32xf32>
    %cst_184 = arith.constant 0.000000e+00 : f32
    %727 = vector.broadcast %cst_184 : f32 to vector<8x32xf32>
    %728 = arith.minimumf %724, %727 : vector<8x32xf32>
    %729 = math.absf %724 : vector<8x32xf32>
    %cst_185 = arith.constant 0.000000e+00 : f32
    %730 = vector.broadcast %cst_185 : f32 to vector<8x32xf32>
    %731 = arith.subf %730, %729 : vector<8x32xf32>
    %732 = math.exp %731 : vector<8x32xf32>
    %cst_186 = arith.constant 1.000000e+00 : f32
    %733 = vector.broadcast %cst_186 : f32 to vector<8x32xf32>
    %734 = arith.addf %733, %732 : vector<8x32xf32>
    %735 = math.log %734 : vector<8x32xf32>
    %736 = arith.subf %728, %735 : vector<8x32xf32>
    %737 = arith.addf %693, %736 : vector<8x32xf32>
    %738 = arith.maximumf %723, %737 : vector<8x32xf32>
    %739 = arith.subf %723, %738 : vector<8x32xf32>
    %740 = math.exp %739 : vector<8x32xf32>
    %741 = arith.subf %737, %738 : vector<8x32xf32>
    %742 = math.exp %741 : vector<8x32xf32>
    %743 = arith.mulf %742, %701 : vector<8x32xf32>
    %744 = math.tanh %725 : vector<8x32xf32>
    %745 = arith.mulf %740, %744 : vector<8x32xf32>
    %746 = arith.addf %743, %745 : vector<8x32xf32>
    %747 = arith.mulf %742, %703 : vector<8x32xf32>
    %748 = arith.addf %747, %740 : vector<8x32xf32>
    %749 = tpu.reciprocal %748 {approx = true} : vector<8x32xf32> -> vector<8x32xf32>
    %750 = arith.mulf %748, %749 : vector<8x32xf32>
    %cst_187 = arith.constant 2.000000e+00 : f32
    %751 = vector.broadcast %cst_187 : f32 to vector<8x32xf32>
    %752 = arith.subf %751, %750 : vector<8x32xf32>
    %753 = arith.mulf %749, %752 : vector<8x32xf32>
    %cst_188 = arith.constant 0.000000e+00 : f32
    %754 = vector.broadcast %cst_188 : f32 to vector<8x32xf32>
    %755 = arith.subf %754, %726 : vector<8x32xf32>
    %756 = math.exp %755 : vector<8x32xf32>
    %cst_189 = arith.constant 1.000000e+00 : f32
    %757 = vector.broadcast %cst_189 : f32 to vector<8x32xf32>
    %758 = arith.addf %757, %756 : vector<8x32xf32>
    %cst_190 = arith.constant 1.000000e+00 : f32
    %759 = vector.broadcast %cst_190 : f32 to vector<8x32xf32>
    %760 = arith.divf %759, %758 : vector<8x32xf32>
    %761 = arith.mulf %760, %746 : vector<8x32xf32>
    %762 = arith.mulf %761, %753 : vector<8x32xf32>
    %c15_i32 = arith.constant 15 : i32
    %763 = arith.index_cast %c15_i32 : i32 to index
    %c0_191 = arith.constant 0 : index
    %c0_192 = arith.constant 0 : index
    %764 = vector.load %arg12[%763, %c0_191, %c0_192] : memref<16x8x128xf32, #tpu.memory_space<vmem>>, vector<1x8x128xf32>
    %765 = vector.shape_cast %764 : vector<1x8x128xf32> to vector<8x128xf32>
    %cst_193 = arith.constant dense<0.000000e+00> : vector<8x128xf32>
    %766 = tpu.matmul %762, %85, %cst_193 {dimension_numbers = #tpu.dot_dimension_numbers<[1], [0], [0], [1], [0, 0, 1, 1], [], []>} : vector<8x32xf32>, vector<32x128xf32>, vector<8x128xf32> -> vector<8x128xf32>
    %767 = arith.addf %765, %766 : vector<8x128xf32>
    %768 = vector.extract_strided_slice %767 {offsets = [0, 0], sizes = [8, 32], strides = [1, 1]} : vector<8x128xf32> to vector<8x32xf32>
    %769 = vector.extract_strided_slice %767 {offsets = [0, 32], sizes = [8, 32], strides = [1, 1]} : vector<8x128xf32> to vector<8x32xf32>
    %770 = vector.extract_strided_slice %767 {offsets = [0, 64], sizes = [8, 32], strides = [1, 1]} : vector<8x128xf32> to vector<8x32xf32>
    %771 = vector.extract_strided_slice %767 {offsets = [0, 96], sizes = [8, 32], strides = [1, 1]} : vector<8x128xf32> to vector<8x32xf32>
    %cst_194 = arith.constant 0.000000e+00 : f32
    %772 = vector.broadcast %cst_194 : f32 to vector<8x32xf32>
    %773 = arith.minimumf %769, %772 : vector<8x32xf32>
    %774 = math.absf %769 : vector<8x32xf32>
    %cst_195 = arith.constant 0.000000e+00 : f32
    %775 = vector.broadcast %cst_195 : f32 to vector<8x32xf32>
    %776 = arith.subf %775, %774 : vector<8x32xf32>
    %777 = math.exp %776 : vector<8x32xf32>
    %cst_196 = arith.constant 1.000000e+00 : f32
    %778 = vector.broadcast %cst_196 : f32 to vector<8x32xf32>
    %779 = arith.addf %778, %777 : vector<8x32xf32>
    %780 = math.log %779 : vector<8x32xf32>
    %781 = arith.subf %773, %780 : vector<8x32xf32>
    %782 = arith.addf %738, %781 : vector<8x32xf32>
    %783 = arith.maximumf %768, %782 : vector<8x32xf32>
    %784 = arith.subf %768, %783 : vector<8x32xf32>
    %785 = math.exp %784 : vector<8x32xf32>
    %786 = arith.subf %782, %783 : vector<8x32xf32>
    %787 = math.exp %786 : vector<8x32xf32>
    %788 = arith.mulf %787, %746 : vector<8x32xf32>
    %789 = math.tanh %770 : vector<8x32xf32>
    %790 = arith.mulf %785, %789 : vector<8x32xf32>
    %791 = arith.addf %788, %790 : vector<8x32xf32>
    %792 = arith.mulf %787, %748 : vector<8x32xf32>
    %793 = arith.addf %792, %785 : vector<8x32xf32>
    %794 = tpu.reciprocal %793 {approx = true} : vector<8x32xf32> -> vector<8x32xf32>
    %795 = arith.mulf %793, %794 : vector<8x32xf32>
    %cst_197 = arith.constant 2.000000e+00 : f32
    %796 = vector.broadcast %cst_197 : f32 to vector<8x32xf32>
    %797 = arith.subf %796, %795 : vector<8x32xf32>
    %798 = arith.mulf %794, %797 : vector<8x32xf32>
    %cst_198 = arith.constant 0.000000e+00 : f32
    %799 = vector.broadcast %cst_198 : f32 to vector<8x32xf32>
    %800 = arith.subf %799, %771 : vector<8x32xf32>
    %801 = math.exp %800 : vector<8x32xf32>
    %cst_199 = arith.constant 1.000000e+00 : f32
    %802 = vector.broadcast %cst_199 : f32 to vector<8x32xf32>
    %803 = arith.addf %802, %801 : vector<8x32xf32>
    %cst_200 = arith.constant 1.000000e+00 : f32
    %804 = vector.broadcast %cst_200 : f32 to vector<8x32xf32>
    %805 = arith.divf %804, %803 : vector<8x32xf32>
    %806 = arith.mulf %805, %791 : vector<8x32xf32>
    %807 = arith.mulf %806, %798 : vector<8x32xf32>
    %c16_i32 = arith.constant 16 : i32
    %808 = vector.extract_strided_slice %807 {offsets = [0, 0], sizes = [8, 20], strides = [1, 1]} : vector<8x32xf32> to vector<8x20xf32>
    %c0_201 = arith.constant 0 : index
    %c0_202 = arith.constant 0 : index
    %809 = vector.load %arg5[%c0_201, %c0_202] : memref<20x20xf32, #tpu.memory_space<vmem>>, vector<20x20xf32>
    %cst_203 = arith.constant dense<0.000000e+00> : vector<8x20xf32>
    %810 = tpu.matmul %808, %809, %cst_203 {dimension_numbers = #tpu.dot_dimension_numbers<[1], [0], [0], [1], [0, 0, 1, 1], [], []>} : vector<8x20xf32>, vector<20x20xf32>, vector<8x20xf32> -> vector<8x20xf32>
    %811 = arith.subf %808, %810 : vector<8x20xf32>
    %812 = arith.mulf %811, %811 : vector<8x20xf32>
    %cst_204 = arith.constant dense<0.000000e+00> : vector<8x20xf32>
    %813 = tpu.matmul %812, %809, %cst_204 {dimension_numbers = #tpu.dot_dimension_numbers<[1], [0], [0], [1], [0, 0, 1, 1], [], []>} : vector<8x20xf32>, vector<20x20xf32>, vector<8x20xf32> -> vector<8x20xf32>
    %814 = arith.subf %808, %810 : vector<8x20xf32>
    %cst_205 = arith.constant 9.99999974E-6 : f32
    %815 = vector.broadcast %cst_205 : f32 to vector<8x20xf32>
    %816 = arith.addf %813, %815 : vector<8x20xf32>
    %817 = math.rsqrt %816 : vector<8x20xf32>
    %818 = arith.mulf %814, %817 : vector<8x20xf32>
    %819 = vector.broadcast %4 : vector<1x20xf32> to vector<8x20xf32>
    %820 = arith.mulf %818, %819 : vector<8x20xf32>
    %c15 = arith.constant 15 : index
    %c0_206 = arith.constant 0 : index
    %c0_207 = arith.constant 0 : index
    %821 = vector.load %arg1[%c15, %c0_206, %c0_207] : memref<16x8x20xf32, #tpu.memory_space<vmem>>, vector<1x8x20xf32>
    %822 = vector.shape_cast %821 : vector<1x8x20xf32> to vector<8x20xf32>
    %823 = arith.addf %822, %820 : vector<8x20xf32>
    %cst_208 = arith.constant dense<0.000000e+00> : vector<8xf32>
    %824 = vector.multi_reduction <add>, %823, %cst_208 [1] : vector<8x20xf32> to vector<8xf32>
    %825 = vector.shape_cast %824 : vector<8xf32> to vector<8x1xf32>
    %cst_209 = arith.constant 2.000000e+01 : f32
    %826 = vector.broadcast %cst_209 : f32 to vector<8x1xf32>
    %827 = arith.divf %825, %826 : vector<8x1xf32>
    %828 = vector.broadcast %827 : vector<8x1xf32> to vector<8x20xf32>
    %829 = arith.subf %823, %828 : vector<8x20xf32>
    %830 = arith.mulf %829, %829 : vector<8x20xf32>
    %cst_210 = arith.constant dense<0.000000e+00> : vector<8xf32>
    %831 = vector.multi_reduction <add>, %830, %cst_210 [1] : vector<8x20xf32> to vector<8xf32>
    %832 = vector.shape_cast %831 : vector<8xf32> to vector<8x1xf32>
    %cst_211 = arith.constant 2.000000e+01 : f32
    %833 = vector.broadcast %cst_211 : f32 to vector<8x1xf32>
    %834 = arith.divf %832, %833 : vector<8x1xf32>
    %835 = vector.broadcast %827 : vector<8x1xf32> to vector<8x20xf32>
    %836 = arith.subf %823, %835 : vector<8x20xf32>
    %cst_212 = arith.constant 9.99999974E-6 : f32
    %837 = vector.broadcast %cst_212 : f32 to vector<8x1xf32>
    %838 = arith.addf %834, %837 : vector<8x1xf32>
    %839 = math.rsqrt %838 : vector<8x1xf32>
    %840 = vector.broadcast %839 : vector<8x1xf32> to vector<8x20xf32>
    %841 = arith.mulf %836, %840 : vector<8x20xf32>
    %842 = vector.broadcast %5 : vector<1x20xf32> to vector<8x20xf32>
    %843 = arith.mulf %841, %842 : vector<8x20xf32>
    %c0_213 = arith.constant 0 : index
    %c0_214 = arith.constant 0 : index
    %844 = vector.load %arg6[%c0_213, %c0_214] : memref<20x128xf32, #tpu.memory_space<vmem>>, vector<20x128xf32>
    %cst_215 = arith.constant dense<0.000000e+00> : vector<8x128xf32>
    %845 = tpu.matmul %843, %844, %cst_215 {dimension_numbers = #tpu.dot_dimension_numbers<[1], [0], [0], [1], [0, 0, 1, 1], [], []>} : vector<8x20xf32>, vector<20x128xf32>, vector<8x128xf32> -> vector<8x128xf32>
    %846 = vector.extract_strided_slice %845 {offsets = [0, 0], sizes = [8, 64], strides = [1, 1]} : vector<8x128xf32> to vector<8x64xf32>
    %847 = vector.extract_strided_slice %845 {offsets = [0, 64], sizes = [8, 64], strides = [1, 1]} : vector<8x128xf32> to vector<8x64xf32>
    %cst_216 = arith.constant 5.000000e-01 : f32
    %848 = vector.broadcast %cst_216 : f32 to vector<8x64xf32>
    %849 = arith.mulf %848, %846 : vector<8x64xf32>
    %cst_217 = arith.constant 0.707106769 : f32
    %850 = vector.broadcast %cst_217 : f32 to vector<8x64xf32>
    %851 = arith.mulf %846, %850 : vector<8x64xf32>
    %cst_218 = arith.constant 0.000000e+00 : f32
    %852 = vector.broadcast %cst_218 : f32 to vector<8x64xf32>
    %853 = arith.cmpf oge, %851, %852 : vector<8x64xf32>
    %cst_219 = arith.constant 1.000000e+00 : f32
    %cst_220 = arith.constant -1.000000e+00 : f32
    %854 = vector.broadcast %cst_219 : f32 to vector<8x64xf32>
    %855 = vector.broadcast %cst_220 : f32 to vector<8x64xf32>
    %856 = arith.select %853, %854, %855 : vector<8x64xi1>, vector<8x64xf32>
    %857 = math.absf %851 : vector<8x64xf32>
    %cst_221 = arith.constant 0.327591091 : f32
    %858 = vector.broadcast %cst_221 : f32 to vector<8x64xf32>
    %859 = arith.mulf %858, %857 : vector<8x64xf32>
    %cst_222 = arith.constant 1.000000e+00 : f32
    %860 = vector.broadcast %cst_222 : f32 to vector<8x64xf32>
    %861 = arith.addf %860, %859 : vector<8x64xf32>
    %cst_223 = arith.constant 1.000000e+00 : f32
    %862 = vector.broadcast %cst_223 : f32 to vector<8x64xf32>
    %863 = arith.divf %862, %861 : vector<8x64xf32>
    %cst_224 = arith.constant 1.06140542 : f32
    %864 = vector.broadcast %cst_224 : f32 to vector<8x64xf32>
    %865 = arith.mulf %864, %863 : vector<8x64xf32>
    %cst_225 = arith.constant -1.45315206 : f32
    %866 = vector.broadcast %cst_225 : f32 to vector<8x64xf32>
    %867 = arith.addf %865, %866 : vector<8x64xf32>
    %868 = arith.mulf %867, %863 : vector<8x64xf32>
    %cst_226 = arith.constant 1.42141378 : f32
    %869 = vector.broadcast %cst_226 : f32 to vector<8x64xf32>
    %870 = arith.addf %868, %869 : vector<8x64xf32>
    %871 = arith.mulf %870, %863 : vector<8x64xf32>
    %cst_227 = arith.constant -0.284496725 : f32
    %872 = vector.broadcast %cst_227 : f32 to vector<8x64xf32>
    %873 = arith.addf %871, %872 : vector<8x64xf32>
    %874 = arith.mulf %873, %863 : vector<8x64xf32>
    %cst_228 = arith.constant 0.254829586 : f32
    %875 = vector.broadcast %cst_228 : f32 to vector<8x64xf32>
    %876 = arith.addf %874, %875 : vector<8x64xf32>
    %877 = arith.mulf %876, %863 : vector<8x64xf32>
    %cst_229 = arith.constant 0.000000e+00 : f32
    %878 = vector.broadcast %cst_229 : f32 to vector<8x64xf32>
    %879 = arith.subf %878, %857 : vector<8x64xf32>
    %880 = arith.mulf %879, %857 : vector<8x64xf32>
    %881 = math.exp %880 : vector<8x64xf32>
    %882 = arith.mulf %877, %881 : vector<8x64xf32>
    %cst_230 = arith.constant 1.000000e+00 : f32
    %883 = vector.broadcast %cst_230 : f32 to vector<8x64xf32>
    %884 = arith.subf %883, %882 : vector<8x64xf32>
    %885 = arith.mulf %856, %884 : vector<8x64xf32>
    %cst_231 = arith.constant 1.000000e+00 : f32
    %886 = vector.broadcast %cst_231 : f32 to vector<8x64xf32>
    %887 = arith.addf %886, %885 : vector<8x64xf32>
    %888 = arith.mulf %849, %887 : vector<8x64xf32>
    %889 = arith.mulf %888, %847 : vector<8x64xf32>
    %c0_232 = arith.constant 0 : index
    %c0_233 = arith.constant 0 : index
    %890 = vector.load %arg7[%c0_232, %c0_233] : memref<64x20xf32, #tpu.memory_space<vmem>>, vector<64x20xf32>
    %cst_234 = arith.constant dense<0.000000e+00> : vector<8x20xf32>
    %891 = tpu.matmul %889, %890, %cst_234 {dimension_numbers = #tpu.dot_dimension_numbers<[1], [0], [0], [1], [0, 0, 1, 1], [], []>} : vector<8x64xf32>, vector<64x20xf32>, vector<8x20xf32> -> vector<8x20xf32>
    %892 = arith.addf %823, %891 : vector<8x20xf32>
    %cst_235 = arith.constant dense<0.000000e+00> : vector<8xf32>
    %893 = vector.multi_reduction <add>, %892, %cst_235 [1] : vector<8x20xf32> to vector<8xf32>
    %894 = vector.shape_cast %893 : vector<8xf32> to vector<8x1xf32>
    %cst_236 = arith.constant 2.000000e+01 : f32
    %895 = vector.broadcast %cst_236 : f32 to vector<8x1xf32>
    %896 = arith.divf %894, %895 : vector<8x1xf32>
    %897 = vector.broadcast %896 : vector<8x1xf32> to vector<8x20xf32>
    %898 = arith.subf %892, %897 : vector<8x20xf32>
    %899 = arith.mulf %898, %898 : vector<8x20xf32>
    %cst_237 = arith.constant dense<0.000000e+00> : vector<8xf32>
    %900 = vector.multi_reduction <add>, %899, %cst_237 [1] : vector<8x20xf32> to vector<8xf32>
    %901 = vector.shape_cast %900 : vector<8xf32> to vector<8x1xf32>
    %cst_238 = arith.constant 2.000000e+01 : f32
    %902 = vector.broadcast %cst_238 : f32 to vector<8x1xf32>
    %903 = arith.divf %901, %902 : vector<8x1xf32>
    %904 = vector.broadcast %896 : vector<8x1xf32> to vector<8x20xf32>
    %905 = arith.subf %892, %904 : vector<8x20xf32>
    %cst_239 = arith.constant 9.99999974E-6 : f32
    %906 = vector.broadcast %cst_239 : f32 to vector<8x1xf32>
    %907 = arith.addf %903, %906 : vector<8x1xf32>
    %908 = math.rsqrt %907 : vector<8x1xf32>
    %909 = vector.broadcast %908 : vector<8x1xf32> to vector<8x20xf32>
    %910 = arith.mulf %905, %909 : vector<8x20xf32>
    %911 = vector.broadcast %6 : vector<1x20xf32> to vector<8x20xf32>
    %912 = arith.mulf %910, %911 : vector<8x20xf32>
    %c0_240 = arith.constant 0 : index
    %c0_241 = arith.constant 0 : index
    %913 = vector.load %arg8[%c0_240, %c0_241] : memref<20x64xf32, #tpu.memory_space<vmem>>, vector<20x64xf32>
    %cst_242 = arith.constant dense<0.000000e+00> : vector<8x64xf32>
    %914 = tpu.matmul %912, %913, %cst_242 {dimension_numbers = #tpu.dot_dimension_numbers<[1], [0], [0], [1], [0, 0, 1, 1], [], []>} : vector<8x20xf32>, vector<20x64xf32>, vector<8x64xf32> -> vector<8x64xf32>
    %915 = vector.broadcast %7 : vector<1x64xf32> to vector<8x64xf32>
    %916 = arith.addf %914, %915 : vector<8x64xf32>
    %917 = vector.broadcast %10 : vector<1x64xf32> to vector<8x64xf32>
    %918 = arith.subf %916, %917 : vector<8x64xf32>
    %cst_243 = arith.constant 9.99999974E-6 : f32
    %919 = vector.broadcast %cst_243 : f32 to vector<1x64xf32>
    %920 = arith.addf %11, %919 : vector<1x64xf32>
    %921 = math.rsqrt %920 : vector<1x64xf32>
    %922 = vector.broadcast %921 : vector<1x64xf32> to vector<8x64xf32>
    %923 = arith.mulf %918, %922 : vector<8x64xf32>
    %924 = vector.broadcast %8 : vector<1x64xf32> to vector<8x64xf32>
    %925 = arith.mulf %923, %924 : vector<8x64xf32>
    %926 = vector.broadcast %9 : vector<1x64xf32> to vector<8x64xf32>
    %927 = arith.addf %925, %926 : vector<8x64xf32>
    %cst_244 = arith.constant 0.000000e+00 : f32
    %928 = vector.broadcast %cst_244 : f32 to vector<8x64xf32>
    %929 = arith.maximumf %927, %928 : vector<8x64xf32>
    %c0_245 = arith.constant 0 : index
    %c0_246 = arith.constant 0 : index
    %930 = vector.load %arg9[%c0_245, %c0_246] : memref<64x1xf32, #tpu.memory_space<vmem>>, vector<64x1xf32>
    %cst_247 = arith.constant dense<0.000000e+00> : vector<8x1xf32>
    %931 = tpu.matmul %929, %930, %cst_247 {dimension_numbers = #tpu.dot_dimension_numbers<[1], [0], [0], [1], [0, 0, 1, 1], [], []>} : vector<8x64xf32>, vector<64x1xf32>, vector<8x1xf32> -> vector<8x1xf32>
    %932 = vector.broadcast %12 : vector<1x1xf32> to vector<8x1xf32>
    %933 = arith.addf %931, %932 : vector<8x1xf32>
    %c0_248 = arith.constant 0 : index
    %c0_249 = arith.constant 0 : index
    %934 = vector.load %arg10[%c0_248, %c0_249] : memref<8x1xf32, #tpu.memory_space<vmem>>, vector<8x1xf32>
    tpu.vector_store %arg10[%c0_248, %c0_249], %933 {strides = array<i32>} : memref<8x1xf32, #tpu.memory_space<vmem>>, vector<8x1xf32>,
    return
  }
  func.func @transform_0(%arg0: i32) -> (i32, i32, i32) {
    %c0_i32 = arith.constant 0 : i32
    %c0_i32_0 = arith.constant 0 : i32
    %c0_i32_1 = arith.constant 0 : i32
    return %c0_i32, %arg0, %c0_i32_0 : i32, i32, i32
  }
  func.func @transform_1(%arg0: i32) -> (i32, i32) {
    %c0_i32 = arith.constant 0 : i32
    %c0_i32_0 = arith.constant 0 : i32
    %c0_i32_1 = arith.constant 0 : i32
    return %c0_i32, %c0_i32_0 : i32, i32
  }
  func.func @transform_2(%arg0: i32) -> (i32, i32) {
    %c0_i32 = arith.constant 0 : i32
    %c0_i32_0 = arith.constant 0 : i32
    %c0_i32_1 = arith.constant 0 : i32
    return %c0_i32, %c0_i32_0 : i32, i32
  }
  func.func @transform_3(%arg0: i32) -> (i32, i32) {
    %c0_i32 = arith.constant 0 : i32
    %c0_i32_0 = arith.constant 0 : i32
    %c0_i32_1 = arith.constant 0 : i32
    return %c0_i32, %c0_i32_0 : i32, i32
  }
  func.func @transform_4(%arg0: i32) -> (i32, i32) {
    %c0_i32 = arith.constant 0 : i32
    %c0_i32_0 = arith.constant 0 : i32
    %c0_i32_1 = arith.constant 0 : i32
    return %c0_i32, %c0_i32_0 : i32, i32
  }
  func.func @transform_5(%arg0: i32) -> (i32, i32) {
    %c0_i32 = arith.constant 0 : i32
    %c0_i32_0 = arith.constant 0 : i32
    %c0_i32_1 = arith.constant 0 : i32
    return %c0_i32, %c0_i32_0 : i32, i32
  }
  func.func @transform_6(%arg0: i32) -> (i32, i32) {
    %c0_i32 = arith.constant 0 : i32
    %c0_i32_0 = arith.constant 0 : i32
    %c0_i32_1 = arith.constant 0 : i32
    return %c0_i32, %c0_i32_0 : i32, i32
  }
  func.func @transform_7(%arg0: i32) -> (i32, i32) {
    %c0_i32 = arith.constant 0 : i32
    %c0_i32_0 = arith.constant 0 : i32
    %c0_i32_1 = arith.constant 0 : i32
    return %c0_i32, %c0_i32_0 : i32, i32
  }
  func.func @transform_8(%arg0: i32) -> (i32, i32) {
    %c0_i32 = arith.constant 0 : i32
    %c0_i32_0 = arith.constant 0 : i32
    %c0_i32_1 = arith.constant 0 : i32
    return %c0_i32, %c0_i32_0 : i32, i32
  }
  func.func @transform_9(%arg0: i32) -> (i32, i32) {
    %c0_i32 = arith.constant 0 : i32
    %c0_i32_0 = arith.constant 0 : i32
    return %arg0, %c0_i32 : i32, i32
  }
}

</mosaic_0001>

<bundles_post_ra>
// kernel: tpu_custom_call.1
= control target key start
LH: loop header
LB: loop body
LE: loop exit
PB: predicated region body
PF: predicated region fallthrough
CT: control target
= control target key end

     0   :  { %14 = vsyncpa [#allocation5], 0  ;;  %s6096_s0 = inlined_call_operand.hbm [shape: f32[16,8,20], index: 0, kind: input, shape index: {}]   ;;  %s6097_s1 = inlined_call_operand.hbm [shape: f32[16,128], index: 1, kind: input, shape index: {}]   ;;  %s6098_s2 = inlined_call_operand.hbm [shape: f32[40,128], index: 2, kind: input, shape index: {}]   ;;  %s6099_s3 = inlined_call_operand.hbm [shape: f32[32,128], index: 3, kind: input, shape index: {}]   ;;  %s6100_s4 = inlined_call_operand.hbm [shape: f32[20,20], index: 4, kind: input, shape index: {}]   ;;  %s6101_s5 = inlined_call_operand.hbm [shape: f32[20,128], index: 5, kind: input, shape index: {}]   ;;  %s6102_s6 = inlined_call_operand.hbm [shape: f32[64,20], index: 6, kind: input, shape index: {}]   ;;  %s6103_s7 = inlined_call_operand.hbm [shape: f32[20,64], index: 7, kind: input, shape index: {}]   ;;  %s6104_s8 = inlined_call_operand.hbm [shape: f32[64,1], index: 8, kind: input, shape index: {}]   ;;  %s6105_s9 = inlined_call_operand.hbm [shape: f32[8,1], index: 9, kind: output, shape index: {}]  }
   0x1   :  { %15 = vsyncpa [#allocation8], 0 }
   0x2   :  { %16 = vsyncpa [#allocation11], 0 }
   0x3   :  { %17 = vsyncpa [#allocation14], 0 }
   0x4   :  { %18 = vsyncpa [#allocation17], 0 }
   0x5   :  { %19 = vsyncpa [#allocation6], 0  ;;  %s4994_s30 = smov [#allocation7]   ;;  %s4995_s11 = smov [#allocation10]  }
   0x6   :  { %s37_s10 = sshll.u32 %s4994_s30, 4  ;;  %s61_s12 = sshll.u32 %s4995_s11, 4  ;;  %s38_s10 = int_to_ptr.vmem [resolvable:$true] %s37_s10  ;;  %s5064_s12 = int_to_ptr.vmem [resolvable:$true] %s61_s12 }
   0x7   :  { %s4762_s15 = scalar_lea.hbm %s6097_s1, 256 }
   0x8   :  { %p4763_p0 = scmp.ne.s32.totalorder %s6097_s1, %s4762_s15  ;;  %p4766_p1 = scmp.lt.u32.totalorder %s4762_s15, %s6097_s1 }
   0xa   :  { %p4768_p2 = pnand %p4766_p1, %p4763_p0 }
   0xc   :  { %4771 = shalt.err (!%p4768_p2)
}
   0xd   :  { %s4772_s20 = scalar_lea.vmem %s38_s10, 256  ;;  %p4777_p4 = scmp.lt.s32.totalorder %s38_s10, %s38_s10 }
   0xe   :  { %p4773_p3 = scmp.ne.s32.totalorder %s38_s10, %s4772_s20  ;;  %p4778_p5 = scmp.lt.s32.totalorder %s4772_s20, %s4772_s20 }
  0x10   :  { %p4779_p6 = por %p4778_p5, %p4777_p4 }
  0x12   :  { %p4780_p7 = pnand %p4779_p6, %p4773_p3 }
  0x14   :  { %4783 = shalt.err (!%p4780_p7)
}
  0x15   :  { %s4996_s21 = smov 128   ;;  %s4997_s22 = smov 8  }
  0x16   :  { %43 = dma.hbm_to_vmem [thread:$0]  %s6097_s1, 256, %s38_s10, [#allocation8], %s4996_s21, %s4996_s21, %s4997_s22  }
  0x17   :  { %s4784_s27 = scalar_lea.hbm %s6099_s3, 512 }
  0x18   :  { %p4785_p8 = scmp.ne.s32.totalorder %s6099_s3, %s4784_s27  ;;  %p4788_p9 = scmp.lt.u32.totalorder %s4784_s27, %s6099_s3 }
  0x1a   :  { %p4790_p10 = pnand %p4788_p9, %p4785_p8 }
  0x1c   :  { %4793 = shalt.err (!%p4790_p10)
}
  0x1d   :  { %s4794_s13 = scalar_lea.vmem %s5064_s12, 512  ;;  %p4799_p12 = scmp.lt.s32.totalorder %s5064_s12, %s5064_s12 }
  0x1e   :  { %p4795_p11 = scmp.ne.s32.totalorder %s5064_s12, %s4794_s13  ;;  %p4800_p13 = scmp.lt.s32.totalorder %s4794_s13, %s4794_s13 }
  0x20   :  { %p4801_p0 = por %p4800_p13, %p4799_p12 }
  0x22   :  { %p4802_p1 = pnand %p4801_p0, %p4795_p11 }
  0x24   :  { %4805 = shalt.err (!%p4802_p1)
}
  0x25   :  { %67 = dma.hbm_to_vmem [thread:$0]  %s6099_s3, 512, %s5064_s12, [#allocation11], %s4996_s21, %s4996_s21, %s4997_s22  }
  0x26   :  { %s4998_s14 = smov [#allocation13]   ;;  %s4999_s16 = smov [#allocation16]  }
  0x27   :  { %s85_s15 = sshll.u32 %s4998_s14, 4  ;;  %s109_s17 = sshll.u32 %s4999_s16, 4  ;;  %s86_s15 = int_to_ptr.vmem [resolvable:$true] %s85_s15  ;;  %s5101_s17 = int_to_ptr.vmem [resolvable:$true] %s109_s17 }
  0x28   :  { %s4806_s20 = scalar_lea.hbm %s6101_s5, 384 }
  0x29   :  { %p4807_p2 = scmp.ne.s32.totalorder %s6101_s5, %s4806_s20  ;;  %p4810_p3 = scmp.lt.u32.totalorder %s4806_s20, %s6101_s5 }
  0x2b   :  { %p4812_p4 = pnand %p4810_p3, %p4807_p2 }
  0x2d   :  { %4815 = shalt.err (!%p4812_p4)
}
  0x2e   :  { %s4816_s3 = scalar_lea.vmem %s86_s15, 384  ;;  %p4821_p6 = scmp.lt.s32.totalorder %s86_s15, %s86_s15 }
  0x2f   :  { %p4817_p5 = scmp.ne.s32.totalorder %s86_s15, %s4816_s3  ;;  %p4822_p7 = scmp.lt.s32.totalorder %s4816_s3, %s4816_s3 }
  0x31   :  { %p4823_p8 = por %p4822_p7, %p4821_p6 }
  0x33   :  { %p4824_p9 = pnand %p4823_p8, %p4817_p5 }
  0x35   :  { %4827 = shalt.err (!%p4824_p9)
}
  0x36   :  { %91 = dma.hbm_to_vmem [thread:$0]  %s6101_s5, 384, %s86_s15, [#allocation14], %s4996_s21, %s4996_s21, %s4997_s22  }
  0x37   :  { %s4828_s30 = scalar_lea.hbm %s6103_s7, 384 }
  0x38   :  { %p4829_p10 = scmp.ne.s32.totalorder %s6103_s7, %s4828_s30  ;;  %p4832_p11 = scmp.lt.u32.totalorder %s4828_s30, %s6103_s7 }
  0x3a   :  { %p4834_p12 = pnand %p4832_p11, %p4829_p10 }
  0x3c   :  { %4837 = shalt.err (!%p4834_p12)
}
  0x3d   :  { %s4838_s14 = scalar_lea.vmem %s5101_s17, 384  ;;  %p4843_p0 = scmp.lt.s32.totalorder %s5101_s17, %s5101_s17 }
  0x3e   :  { %p4839_p13 = scmp.ne.s32.totalorder %s5101_s17, %s4838_s14  ;;  %p4844_p1 = scmp.lt.s32.totalorder %s4838_s14, %s4838_s14 }
  0x40   :  { %p4845_p2 = por %p4844_p1, %p4843_p0 }
  0x42   :  { %p4846_p3 = pnand %p4845_p2, %p4839_p13 }
  0x44   :  { %4849 = shalt.err (!%p4846_p3)
}
  0x45   :  { %115 = dma.hbm_to_vmem [thread:$0]  %s6103_s7, 384, %s5101_s17, [#allocation17], %s4996_s21, %s4996_s21, %s4997_s22  }
  0x46   :  { %s5000_s16 = smov [#allocation4]   ;;  %s5001_s19 = smov [#allocation9]  }
  0x47   :  { %s25_s18 = sshll.u32 %s5000_s16, 4  ;;  %s49_s20 = sshll.u32 %s5001_s19, 4  ;;  %s26_s18 = int_to_ptr.vmem [resolvable:$true] %s25_s18  ;;  %s5138_s20 = int_to_ptr.vmem [resolvable:$true] %s49_s20 }
  0x48   :  { %s4850_s25 = scalar_lea.hbm %s6096_s0, 2048 }
  0x49   :  { %p4851_p4 = scmp.ne.s32.totalorder %s6096_s0, %s4850_s25  ;;  %p4854_p5 = scmp.lt.u32.totalorder %s4850_s25, %s6096_s0 }
  0x4b   :  { %p4856_p6 = pnand %p4854_p5, %p4851_p4 }
  0x4d   :  { %4859 = shalt.err (!%p4856_p6)
}
  0x4e   :  { %s4860_s7 = scalar_lea.vmem %s26_s18, 2048  ;;  %p4865_p8 = scmp.lt.s32.totalorder %s26_s18, %s26_s18 }
  0x4f   :  { %p4861_p7 = scmp.ne.s32.totalorder %s26_s18, %s4860_s7  ;;  %p4866_p9 = scmp.lt.s32.totalorder %s4860_s7, %s4860_s7 }
  0x51   :  { %p4867_p10 = por %p4866_p9, %p4865_p8 }
  0x53   :  { %p4868_p11 = pnand %p4867_p10, %p4861_p7 }
  0x55   :  { %4871 = shalt.err (!%p4868_p11)
}
  0x56   :  { %31 = dma.hbm_to_vmem [thread:$0]  %s6096_s0, 2048, %s26_s18, [#allocation5], %s4996_s21, %s4996_s21, %s4997_s22  }
  0x57   :  { %s4872_s11 = scalar_lea.hbm %s6098_s2, 640 }
  0x58   :  { %p4873_p12 = scmp.ne.s32.totalorder %s6098_s2, %s4872_s11  ;;  %p4876_p13 = scmp.lt.u32.totalorder %s4872_s11, %s6098_s2 }
  0x5a   :  { %p4878_p0 = pnand %p4876_p13, %p4873_p12 }
  0x5c   :  { %4881 = shalt.err (!%p4878_p0)
}
  0x5d   :  { %s4882_s5 = scalar_lea.vmem %s5138_s20, 640  ;;  %p4887_p2 = scmp.lt.s32.totalorder %s5138_s20, %s5138_s20 }
  0x5e   :  { %p4883_p1 = scmp.ne.s32.totalorder %s5138_s20, %s4882_s5  ;;  %p4888_p3 = scmp.lt.s32.totalorder %s4882_s5, %s4882_s5 }
  0x60   :  { %p4889_p4 = por %p4888_p3, %p4887_p2 }
  0x62   :  { %p4890_p5 = pnand %p4889_p4, %p4883_p1 }
  0x64   :  { %4893 = shalt.err (!%p4890_p5)
}
  0x65   :  { %55 = dma.hbm_to_vmem [thread:$0]  %s6098_s2, 640, %s5138_s20, [#allocation8], %s4996_s21, %s4996_s21, %s4997_s22  }
  0x66   :  { %s5002_s16 = smov [#allocation12]   ;;  %s5003_s19 = smov [#allocation15]  }
  0x67   :  { %s73_s18 = sshll.u32 %s5002_s16, 4  ;;  %s97_s23 = sshll.u32 %s5003_s19, 4  ;;  %s74_s18 = int_to_ptr.vmem [resolvable:$true] %s73_s18  ;;  %s5175_s23 = int_to_ptr.vmem [resolvable:$true] %s97_s23 }
  0x68   :  { %s4894_s26 = scalar_lea.hbm %s6100_s4, 384 }
  0x69   :  { %p4895_p6 = scmp.ne.s32.totalorder %s6100_s4, %s4894_s26  ;;  %p4898_p7 = scmp.lt.u32.totalorder %s4894_s26, %s6100_s4 }
  0x6b   :  { %p4900_p8 = pnand %p4898_p7, %p4895_p6 }
  0x6d   :  { %4903 = shalt.err (!%p4900_p8)
}
  0x6e   :  { %s4904_s2 = scalar_lea.vmem %s74_s18, 384  ;;  %p4909_p10 = scmp.lt.s32.totalorder %s74_s18, %s74_s18 }
  0x6f   :  { %p4905_p9 = scmp.ne.s32.totalorder %s74_s18, %s4904_s2  ;;  %p4910_p11 = scmp.lt.s32.totalorder %s4904_s2, %s4904_s2 }
  0x71   :  { %p4911_p12 = por %p4910_p11, %p4909_p10 }
  0x73   :  { %p4912_p13 = pnand %p4911_p12, %p4905_p9 }
  0x75   :  { %4915 = shalt.err (!%p4912_p13)
}
  0x76   :  { %79 = dma.hbm_to_vmem [thread:$0]  %s6100_s4, 384, %s74_s18, [#allocation11], %s4996_s21, %s4996_s21, %s4997_s22  }
  0x77   :  { %s4916_s30 = scalar_lea.hbm %s6102_s6, 1024 }
  0x78   :  { %p4917_p0 = scmp.ne.s32.totalorder %s6102_s6, %s4916_s30  ;;  %p4920_p1 = scmp.lt.u32.totalorder %s4916_s30, %s6102_s6 }
  0x7a   :  { %p4922_p2 = pnand %p4920_p1, %p4917_p0 }
  0x7c   :  { %4925 = shalt.err (!%p4922_p2)
}
  0x7d   :  { %s4926_s14 = scalar_lea.vmem %s5175_s23, 1024  ;;  %p4931_p4 = scmp.lt.s32.totalorder %s5175_s23, %s5175_s23 }
  0x7e   :  { %p4927_p3 = scmp.ne.s32.totalorder %s5175_s23, %s4926_s14  ;;  %p4932_p5 = scmp.lt.s32.totalorder %s4926_s14, %s4926_s14 }
  0x80   :  { %p4933_p6 = por %p4932_p5, %p4931_p4 }
  0x82   :  { %p4934_p7 = pnand %p4933_p6, %p4927_p3 }
  0x84   :  { %4937 = shalt.err (!%p4934_p7)
}
  0x85   :  { %103 = dma.hbm_to_vmem [thread:$0]  %s6102_s6, 1024, %s5175_s23, [#allocation14], %s4996_s21, %s4996_s21, %s4997_s22  }
  0x86   :  { %s5004_s0 = smov [#allocation18]   ;;  %s4938_s19 = scalar_lea.hbm %s6104_s8, 1024 }
  0x87   :  { %s121_s15 = sshll.u32 %s5004_s0, 4  ;;  %p4939_p8 = scmp.ne.s32.totalorder %s6104_s8, %s4938_s19  ;;  %s122_s15 = int_to_ptr.vmem [resolvable:$true] %s121_s15 }
  0x88   :  { %p4942_p9 = scmp.lt.u32.totalorder %s4938_s19, %s6104_s8 }
  0x8a   :  { %p4944_p10 = pnand %p4942_p9, %p4939_p8 }
  0x8c   :  { %4947 = shalt.err (!%p4944_p10)
}
  0x8d   :  { %s4948_s12 = scalar_lea.vmem %s122_s15, 1024  ;;  %p4953_p12 = scmp.lt.s32.totalorder %s122_s15, %s122_s15 }
  0x8e   :  { %p4949_p11 = scmp.ne.s32.totalorder %s122_s15, %s4948_s12  ;;  %p4954_p13 = scmp.lt.s32.totalorder %s4948_s12, %s4948_s12 }
  0x90   :  { %p4955_p0 = por %p4954_p13, %p4953_p12 }
  0x92   :  { %p4956_p1 = pnand %p4955_p0, %p4949_p11 }
  0x94   :  { %4959 = shalt.err (!%p4956_p1)
}
  0x95   :  { %127 = dma.hbm_to_vmem [thread:$0]  %s6104_s8, 1024, %s122_s15, [#allocation17], %s4996_s21, %s4996_s21, %s4997_s22  }
  0x96   :  { %4982 = dma.done.wait [#allocation5], 2048  }
  0x97   :  { %4983 = vsyncadd [#allocation5], 4294965248 }
  0x98   :  { %4984 = dma.done.wait [#allocation8], 896  }
  0x99   :  { %4985 = vsyncadd [#allocation8], 4294966400 }
  0x9a   :  { %4986 = dma.done.wait [#allocation11], 896  }
  0x9b   :  { %4987 = vsyncadd [#allocation11], 4294966400 }
  0x9c   :  { %4988 = dma.done.wait [#allocation14], 1408  }
  0x9d   :  { %4989 = vsyncadd [#allocation14], 4294965888 }
  0x9e   :  { %4990 = dma.done.wait [#allocation17], 1408  }
  0x9f   :  { %4991 = vsyncadd [#allocation17], 4294965888  ;;  %vm173_vm0 = vcmask 162816   ;;  %v157_v0 = vld [vmem:[#allocation4] sm:$0xff]  ;;  %v158_v1 = vld [vmem:[#allocation4 + $0x8] sm:$0xff]  ;;  %v5005_v14 = vmov 0.0   ;;  %v383_v24 = vlaneseq }
  0xa0   :  { %v174_v2 = vsel %vm173_vm0, %v157_v0, 0.0  ;;  %v177_v3 = vsel %vm173_vm0, %v158_v1, 0.0  ;;  %403 = vst.msk [vmem:[#allocation2] sm:$0xff] %vm173_vm0, %v5005_v14  ;;  %404 = vst.msk [vmem:[#allocation2 + $0x8] sm:$0xff] %vm173_vm0, %v5005_v14  ;;  %v830_v15 = vld [vmem:[#allocation9] sm:$0xff]  ;;  %v831_v16 = vld [vmem:[#allocation9 + $0x8] sm:$0xff] }
  0xa1   :  { %175 = vadd.xlane.f32.xlu0 %v174_v2  ;;  %405 = vst.msk [vmem:[#allocation2 + $0x10] sm:$0xff] %vm173_vm0, %v5005_v14  ;;  %v832_v17 = vld [vmem:[#allocation9 + $0x10] sm:$0xff]  ;;  %v4236_v18 = vpack.c.bf16 %v831_v16, %v830_v15  ;;  %v833_v19 = vld [vmem:[#allocation9 + $0x18] sm:$0xff]  ;;  %v5006_v20 = vmov 0.0|0.0   ;;  %v5238_v28 = vshrl.u32 %v383_v24, 7  ;;  %v1065_v32 = vld [vmem:[#allocation10] sm:$0xff] }
  0xa2   :  { %4244 = vmatprep.subr.bf16.mxu1 %v5006_v20  ;;  %v4240_v21 = vpack.c.bf16 %v833_v19, %v832_v17  ;;  %v5241_v31 = vld [vmem:[#allocation7] sm:$0xff]  ;;  %v156_v37 = vld [vmem:[#allocation7 + $0x8] sm:$0xff]  ;;  %v834_v41 = vld [vmem:[#allocation9 + $0x20] sm:$0xff]  ;;  %vm5007_vm1 = vmmov 0   ;;  %s5008_s8 = smov 20   ;;  %vm835_vm2 = vcmask 326656  }
  0xa3   :  { %4237 = vmatprep.subr.bf16.mxu0 %v4236_v18  ;;  %v385_v30 = vsub.s32 0, %v5238_v28  ;;  %v1066_v33 = vld [vmem:[#allocation10 + $0x8] sm:$0xff]  ;;  %v446_v34 = vsub.s32 4, %v5238_v28  ;;  %v1067_v42 = vld [vmem:[#allocation10 + $0x10] sm:$0xff]  ;;  %v1068_v43 = vld [vmem:[#allocation10 + $0x18] sm:$0xff]  ;;  %v425_v44 = vsub.s32 1, %v5238_v28  ;;  %3994 = vmatprep.mubr.msk.f32.mxu1 %vm5007_vm1, %v5005_v14 }
  0xa4   :  { %4239 = vmatpush3.bf16.msra.mxu0 %v4236_v18  ;;  %v5244_v35 = vpack.c.bf16 %v1066_v33, %v1065_v32  ;;  %v499_v46 = vsub.s32 5, %v5238_v28  ;;  %v5261_v47 = vpack.c.bf16 %v1068_v43, %v1067_v42  ;;  %v552_v56 = vsub.s32 6, %v5238_v28  ;;  %s5009_s21 = smov 96   ;;  %s5010_s22 = smov 64  }
  0xa5   :  { %178 = vadd.xlane.f32.xlu0 %v177_v3  ;;  %4241 = vmatprep.subr.bf16.mxu0 %v4240_v21  ;;  %v5249_v36 = vrot.slane %v5241_v31, %v385_v30  ;;  %v5258_v45 = vrot.slane %v156_v37, %v446_v34  ;;  %v5273_v53 = vrot.slane %v5241_v31, %v425_v44  ;;  %v604_v61 = vsub.s32 7, %v5238_v28  ;;  %s5011_s27 = smov 32   ;;  %s5013_s7 = smov [#allocation19]  }
  0xa6   :  { %4246 = vmatpush3.bf16.msra.mxu1 %v5244_v35  ;;  %v5277_v54 = vrot.slane %v156_v37, %v499_v46  ;;  %v5294_v60 = vrot.slane %v156_v37, %v552_v56  ;;  %vm1070_vm3 = vcmask 261120   ;;  %vm3157_vm4 = vcmask 1043456   ;;  %s3763_s2 = sshll.u32 %s5013_s7, 4  ;;  %s3764_s2 = int_to_ptr.vmem [resolvable:$true] %s3763_s2 }
  0xa7   :  { %v5251_v39 = vld [vmem:[#allocation2 + $0x8] sm:$0xff]  ;;  %4247 = vmatprep.subr.bf16.mxu1 %v5006_v20  ;;  %v428_v16 = vld [vmem:[#allocation2] sm:$0xff]  ;;  %vm3471_vm6 = vcmask 523264   ;;  %vm3755_vm7 = vcmask 7168   ;;  %s4960_s20 = scalar_lea.vmem %s3764_s2, 128  ;;  %p4965_p3 = scmp.lt.s32.totalorder %s3764_s2, %s3764_s2 }
  0xa8   :  { %4243 = vmatpush3.bf16.msra.mxu0 %v4240_v21  ;;  %v534_v50 = vld [vmem:[#allocation2 + $0x10] sm:$0xff]  ;;  %v449_v51 = vmul.f32 %v5251_v39, %v5258_v45  ;;  %v448_v17 = vmul.f32 %v5258_v45, %v428_v16  ;;  %v501_v19 = vmul.f32 %v5277_v54, %v5251_v39  ;;  %p4961_p2 = scmp.ne.s32.totalorder %s3764_s2, %s4960_s20  ;;  %p4966_p4 = scmp.lt.s32.totalorder %s4960_s20, %s4960_s20 }
  0xa9   :  { %3960 = vmatprep.subr.mxu0 %v834_v41  ;;  %v450_v57 = vmul.f32 %v534_v50, %v5258_v45  ;;  %v502_v59 = vmul.f32 %v534_v50, %v5277_v54 }
  0xaa   :  { %4249 = vmatpush3.bf16.msra.mxu1 %v5261_v47  ;;  %v465_v58 = vadd.f32 %v449_v51, %v5273_v53  ;;  %v464_v18 = vadd.f32 %v448_v17, %v5273_v53  ;;  %p4967_p5 = por %p4966_p4, %p4965_p3 }
  0xab   :  { %4250 = vmatprep.subr.bf16.mxu1 %v5006_v20  ;;  %v466_v62 = vadd.f32 %v450_v57, %v5273_v53  ;;  %v1031_v57 = vsub.s32 2, %v5238_v28 }
  0xac   :  { %3961 = vmatpush3.msra.mxu0 %v834_v41  ;;  %v517_v21 = vadd.f32 %v501_v19, %v464_v18  ;;  %p4968_p6 = pnand %p4967_p5, %p4961_p2 }
  0xad   :  { %4274 = vmatprep.subr.bf16.mxu0 %v5006_v20  ;;  %3995 = vmatmul.mubr.f32.vlgmr.msra.gmra.mrb[0].mxu1 %v5005_v14 }
  0xae   :  { %4252 = vmatpush3.bf16.msra.mxu1 %v5244_v35  ;;  %4005 = vmatprep.mubr.msk.f32.mxu1 %vm5007_vm1, %v5005_v14 }
  0xaf   :  { %4253 = vmatprep.subr.bf16.mxu1 %v5006_v20 }
  0xb2   :  { %4255 = vmatpush3.bf16.msra.mxu1 %v5261_v47 }
  0xb3   :  { %4256 = vmatprep.subr.bf16.mxu1 %v5006_v20 }
 0x12e   :  { %v176_v4 = vpop.xlane.xlu0 %175 }
 0x12f   :  { %v223_v5 = vmul.f32 0.05, %v176_v4  ;;  %v5306_v4 = vrot.slane %v156_v37, %v604_v61 }
 0x131   :  { %v239_v6 = vsub.f32 %v157_v0, %v223_v5  ;;  %v518_v0 = vadd.f32 %v502_v59, %v465_v58  ;;  %v5341_v58 = vrot.slane %v5241_v31, %v1031_v57 }
 0x132   :  { %v179_v7 = vpop.xlane.xlu0 %178 }
 0x133   :  { %v224_v8 = vmul.f32 0.05, %v179_v7  ;;  %v255_v9 = vmul.f32 %v239_v6, %v239_v6 }
 0x135   :  { %v240_v10 = vsub.f32 %v158_v1, %v224_v8  ;;  %v271_v11 = vsel %vm173_vm0, %v255_v9, 0.0 }
 0x136   :  { %272 = vadd.xlane.f32.xlu1 %v271_v11 }
 0x137   :  { %v256_v12 = vmul.f32 %v240_v10, %v240_v10 }
 0x139   :  { %v274_v13 = vsel %vm173_vm0, %v256_v12, 0.0 }
 0x13a   :  { %275 = vadd.xlane.f32.xlu1 %v274_v13 }
 0x1c3   :  { %v273_v22 = vpop.xlane.xlu1 %272 }
 0x1c4   :  { %v319_v23 = vmul.f32 0.05, %v273_v22  ;;  %v554_v22 = vmul.f32 %v5294_v60, %v534_v50 }
 0x1c6   :  { %v335_v25 = vadd.f32 1e-05, %v319_v23  ;;  %v570_v23 = vadd.f32 %v554_v22, %v517_v21 }
 0x1c7   :  { %v276_v26 = vpop.xlane.xlu1 %275 }
 0x1c8   :  { %4396 = vrsqrt.f32 %v335_v25  ;;  %v320_v27 = vmul.f32 0.05, %v276_v26 }
 0x1ca   :  { %v336_v29 = vadd.f32 1e-05, %v320_v27 }
 0x1cc   :  { %4398 = vrsqrt.f32 %v336_v29 }
 0x1d2   :  { %v4397_v38 = vpop.eup %4396 }
 0x1d3   :  { %v367_v40 = vmul.f32 %v4397_v38, %v239_v6 }
 0x1d5   :  { %v387_v48 = vmul.f32 %v5249_v36, %v367_v40 }
 0x1d6   :  { %v4399_v49 = vpop.eup %4398 }
 0x1d7   :  { %407 = vst.msk [vmem:[#allocation2 + $0x18] sm:$0xff] %vm173_vm0, %v387_v48  ;;  %v368_v52 = vmul.f32 %v4399_v49, %v240_v10 }
 0x1d9   :  { %v388_v55 = vmul.f32 %v5249_v36, %v368_v52  ;;  %v1140_v52 = vpop.f32.mrb[0].mxu1 }
 0x1db   :  { %408 = vst.msk [vmem:[#allocation2 + $0x20] sm:$0xff] %vm173_vm0, %v388_v55  ;;  %v3996_v55 = vpop.f32.mrb[1].mxu1 }
 0x1de   :  { %v586_v63 = vld [vmem:[#allocation2 + $0x18] sm:$0xff] }
 0x1df   :  { %766 = vrot.lane.b32.xlu0 %v586_v63, %s5008_s8  ;;  %v555_v1 = vmul.f32 %v586_v63, %v5294_v60  ;;  %v451_v2 = vmul.f32 %v586_v63, %v5258_v45  ;;  %v503_v3 = vmul.f32 %v586_v63, %v5277_v54  ;;  %v606_v24 = vmul.f32 %v5306_v4, %v586_v63 }
 0x1e1   :  { %v519_v5 = vadd.f32 %v503_v3, %v466_v62  ;;  %v571_v7 = vadd.f32 %v555_v1, %v518_v0  ;;  %v467_v10 = vadd.f32 %v451_v2, %v5273_v53  ;;  %v622_v25 = vadd.f32 %v606_v24, %v570_v23 }
 0x1e2   :  { %v5308_v6 = vld [vmem:[#allocation2 + $0x20] sm:$0xff] }
 0x1e3   :  { %768 = vrot.lane.b32.xlu1 %v5308_v6, %s5008_s8  ;;  %v607_v8 = vmul.f32 %v5306_v4, %v5308_v6  ;;  %v504_v9 = vmul.f32 %v5308_v6, %v5277_v54  ;;  %v556_v11 = vmul.f32 %v5308_v6, %v5294_v60  ;;  %v638_v26 = vsub.f32 0.0, %v622_v25 }
 0x1e5   :  { %v623_v12 = vadd.f32 %v607_v8, %v571_v7  ;;  %v5319_v13 = vadd.f32 %v504_v9, %v467_v10  ;;  %v5321_v15 = vadd.f32 %v556_v11, %v519_v5  ;;  %v654_v27 = vmul.f32 1.442695, %v638_v26 }
 0x1e7   :  { %v639_v29 = vsub.f32 0.0, %v623_v12  ;;  %4400 = vpow2.f32 %v654_v27 }
 0x1e9   :  { %v656_v32 = vmul.f32 1.442695, %v639_v29 }
 0x1eb   :  { %4402 = vpow2.f32 %v656_v32 }
 0x1f1   :  { %v4401_v33 = vpop.eup %4400 }
 0x1f2   :  { %v686_v37 = vadd.f32 1.0, %v4401_v33 }
 0x1f4   :  { %4404 = vrcp.f32 %v686_v37 }
 0x1f5   :  { %v4403_v38 = vpop.eup %4402 }
 0x1f6   :  { %v687_v40 = vadd.f32 1.0, %v4403_v38 }
 0x1f8   :  { %4406 = vrcp.f32 %v687_v40 }
 0x1fe   :  { %v4405_v39 = vpop.eup %4404 }
 0x1ff   :  { %v734_v41 = vmul.f32 %v4405_v39, %v622_v25 }
 0x202   :  { %v4407_v42 = vpop.eup %4406 }
 0x203   :  { %v735_v49 = vmul.f32 %v4407_v42, %v623_v12 }
 0x251   :  { %v767_v43 = vpop.permute.xlu0 %766 }
 0x252   :  { %v814_v48 = vsel %vm173_vm0, %v734_v41, %v767_v43 }
 0x253   :  { %3962 = vmatprep.mubr.msk.f32.mxu0 %vm835_vm2, %v814_v48 }
 0x255   :  { %v769_v50 = vpop.permute.xlu1 %768 }
 0x256   :  { %v815_v51 = vsel %vm173_vm0, %v735_v49, %v769_v50 }
 0x257   :  { %3963 = vmatmul.mubr.msk.f32.vlgmr.msra.gmra.mrb[0].mxu0 %vm835_vm2, %v815_v51 }
 0x258   :  { %4276 = vmatpush3.bf16.msra.mxu0 %v5244_v35 }
 0x259   :  { %4277 = vmatprep.subr.bf16.mxu0 %v5006_v20 }
 0x25c   :  { %4279 = vmatpush3.bf16.msra.mxu0 %v5261_v47 }
 0x25d   :  { %4286 = vmatprep.subr.bf16.mxu0 %v5006_v20 }
 0x32a   :  { %v5343_v59 = vpop.f32.mrb[0].mxu0 }
 0x32b   :  { %v950_v62 = vpop.f32.mrb[1].mxu0 }
 0x32c   :  { %v1033_v63 = vadd.f32 %v5341_v58, %v950_v62 }
 0x32e   :  { %v1144_v0 = vadd.f32 %v1140_v52, %v1033_v63 }
 0x330   :  { %v1146_v1 = vand.u32 2147483647, %v1144_v0  ;;  %v1145_v9 = vmin.f32 %v1144_v0, 0.0  ;;  %v1191_v43 = vsub.f32 0.0, %v1144_v0 }
 0x332   :  { %v1147_v2 = vsub.f32 0.0, %v1146_v1  ;;  %v1192_v48 = vmul.f32 1.442695, %v1191_v43  ;;  %v160_v1 = vld [vmem:[#allocation4 + $0x18] sm:$0xff] }
 0x334   :  { %v1148_v3 = vmul.f32 1.442695, %v1147_v2  ;;  %v183_v2 = vsel %vm173_vm0, %v160_v1, 0.0 }
 0x336   :  { %4408 = vpow2.f32 %v1148_v3  ;;  %v159_v3 = vld [vmem:[#allocation4 + $0x10] sm:$0xff] }
 0x340   :  { %v4409_v5 = vpop.eup %4408 }
 0x341   :  { %v1150_v7 = vadd.f32 1.0, %v4409_v5 }
 0x343   :  { %4410 = vlog2.f32 %v1150_v7  ;;  %v1034_v7 = vadd.f32 %v5343_v59, %v5341_v58 }
 0x344   :  { %4412 = vtanh.f32 %v1144_v0 }
 0x34d   :  { %v4411_v8 = vpop.eup %4410 }
 0x34e   :  { %v1152_v10 = vmul.f32 0.6931472, %v4411_v8  ;;  %v4413_v12 = vpop.eup %4412 }
 0x350   :  { %v1153_v11 = vsub.f32 %v1145_v9, %v1152_v10 }
 0x352   :  { %v1154_v31 = vadd.f32 -1e+30, %v1153_v11 }
 0x354   :  { %1156 = vrot.lane.b32.xlu1 %v1154_v31, %s5009_s21 }
 0x358   :  { %1173 = vrot.lane.b32.xlu1 %v4413_v12, %s5010_s22 }
 0x3c6   :  { %v1157_v16 = vpop.permute.xlu1 %1156 }
 0x3c7   :  { %v5348_v17 = vmax.f32 %v1144_v0, %v1157_v16 }
 0x3c9   :  { %v1160_v18 = vsub.f32 %v1144_v0, %v5348_v17  ;;  %1164 = vrot.lane.b32.xlu0 %v5348_v17, %s5011_s27  ;;  %v180_v0 = vsel %vm173_vm0, %v159_v3, 0.0 }
 0x3ca   :  { %v1174_v22 = vpop.permute.xlu1 %1173 }
 0x3cb   :  { %v1161_v19 = vmul.f32 1.442695, %v1160_v18 }
 0x3cd   :  { %4414 = vpow2.f32 %v1161_v19 }
 0x3d7   :  { %v4415_v21 = vpop.eup %4414 }
 0x3d8   :  { %v1176_v23 = vmul.f32 %v4415_v21, %v1174_v22  ;;  %1183 = vrot.lane.b32.xlu1 %v4415_v21, %s5011_s27 }
 0x3da   :  { %1178 = vrot.lane.b32.xlu0 %v1176_v23, %s5011_s27 }
 0x43b   :  { %v1165_v24 = vpop.permute.xlu0 %1164 }
 0x43c   :  { %v1167_v25 = vsub.f32 %v1154_v31, %v1165_v24 }
 0x43e   :  { %v1168_v26 = vmul.f32 1.442695, %v1167_v25 }
 0x440   :  { %4416 = vpow2.f32 %v1168_v26 }
 0x44a   :  { %v4417_v27 = vpop.eup %4416  ;;  %v1184_v32 = vpop.permute.xlu1 %1183 }
 0x44b   :  { %v1170_v29 = vmul.f32 0.0, %v4417_v27 }
 0x44c   :  { %v1179_v33 = vpop.permute.xlu0 %1178 }
 0x44d   :  { %v1186_v37 = vadd.f32 %v1184_v32, %v1170_v29  ;;  %v1181_v38 = vadd.f32 %v1179_v33, %v1170_v29 }
 0x44f   :  { %4418 = vrcp.f32 %v1186_v37  ;;  %1198 = vrot.lane.b32.xlu1 %v1181_v38, %s5010_s22 }
 0x450   :  { %4420 = vpow2.f32 %v1192_v48 }
 0x459   :  { %v4419_v40 = vpop.eup %4418 }
 0x45a   :  { %v1188_v39 = vmul.f32 %v4419_v40, %v1186_v37  ;;  %v4421_v49 = vpop.eup %4420 }
 0x45b   :  { %v1194_v50 = vadd.f32 1.0, %v4421_v49 }
 0x45c   :  { %v1189_v41 = vsub.f32 2.0, %v1188_v39 }
 0x45d   :  { %4422 = vrcp.f32 %v1194_v50 }
 0x45e   :  { %v1190_v42 = vmul.f32 %v4419_v40, %v1189_v41 }
 0x460   :  { %1203 = vrot.lane.b32.xlu0 %v1190_v42, %s5010_s22 }
 0x467   :  { %v4423_v52 = vpop.eup %4422 }
 0x47f   :  { %181 = vadd.xlane.f32.xlu0 %v180_v0 }
 0x4c1   :  { %v1199_v51 = vpop.permute.xlu1 %1198 }
 0x4c2   :  { %v1201_v55 = vmul.f32 %v4423_v52, %v1199_v51 }
 0x4d2   :  { %v1204_v62 = vpop.permute.xlu0 %1203 }
 0x4d3   :  { %v1206_v63 = vmul.f32 %v1204_v62, %v1201_v55 }
 0x4d5   :  { %1210 = vrot.lane.b32.xlu1 %v1206_v63, %s5011_s27 }
 0x4f9   :  { %184 = vadd.xlane.f32.xlu1 %v183_v2 }
 0x50a   :  { %1318 = vrot.lane.b32.xlu1 %v1186_v37, %s5009_s21 }
 0x50c   :  { %v182_v32 = vpop.xlane.xlu0 %181 }
 0x50d   :  { %v225_v33 = vmul.f32 0.05, %v182_v32 }
 0x50f   :  { %v241_v37 = vsub.f32 %v159_v3, %v225_v33 }
 0x511   :  { %v257_v40 = vmul.f32 %v241_v37, %v241_v37 }
 0x513   :  { %v277_v39 = vsel %vm173_vm0, %v257_v40, 0.0 }
 0x547   :  { %v1211_v5 = vpop.permute.xlu1 %1210 }
 0x548   :  { %4006 = vmatmul.mubr.msk.f32.vlgmr.msra.gmra.mrb[2].mxu1 %vm1070_vm3, %v1211_v5 }
 0x549   :  { %4258 = vmatpush3.bf16.msra.mxu1 %v5244_v35  ;;  %4016 = vmatprep.mubr.msk.f32.mxu1 %vm5007_vm1, %v5005_v14 }
 0x54a   :  { %4259 = vmatprep.subr.bf16.mxu1 %v5006_v20 }
 0x54d   :  { %4261 = vmatpush3.bf16.msra.mxu1 %v5261_v47 }
 0x54e   :  { %4262 = vmatprep.subr.bf16.mxu1 %v5006_v20 }
 0x586   :  { %v185_v23 = vpop.xlane.xlu1 %184 }
 0x587   :  { %v226_v24 = vmul.f32 0.05, %v185_v23 }
 0x589   :  { %v242_v26 = vsub.f32 %v160_v1, %v226_v24 }
 0x58a   :  { %v1319_v51 = vpop.permute.xlu1 %1318 }
 0x58b   :  { %v258_v27 = vmul.f32 %v242_v26, %v242_v26 }
 0x58d   :  { %v280_v29 = vsel %vm173_vm0, %v258_v27, 0.0 }
 0x61b   :  { %v1280_v8 = vpop.f32.mrb[2].mxu1 }
 0x61c   :  { %v5370_v9 = vadd.f32 %v1280_v8, %v1034_v7  ;;  %v4007_v10 = vpop.f32.mrb[3].mxu1 }
 0x61e   :  { %4424 = vtanh.f32 %v5370_v9  ;;  %v1286_v11 = vand.u32 2147483647, %v5370_v9  ;;  %v1285_v59 = vmin.f32 %v5370_v9, 0.0 }
 0x620   :  { %v1287_v31 = vsub.f32 0.0, %v1286_v11 }
 0x622   :  { %v1288_v12 = vmul.f32 1.442695, %v1287_v31 }
 0x624   :  { %4426 = vpow2.f32 %v1288_v12 }
 0x628   :  { %v4425_v16 = vpop.eup %4424 }
 0x629   :  { %1312 = vrot.lane.b32.xlu1 %v4425_v16, %s5010_s22 }
 0x62e   :  { %v4427_v18 = vpop.eup %4426 }
 0x62f   :  { %v1290_v19 = vadd.f32 1.0, %v4427_v18 }
 0x631   :  { %4428 = vlog2.f32 %v1290_v19 }
 0x63b   :  { %v4429_v21 = vpop.eup %4428 }
 0x63c   :  { %v1292_v22 = vmul.f32 0.6931472, %v4429_v21 }
 0x63e   :  { %v1293_v25 = vsub.f32 %v1285_v59, %v1292_v22 }
 0x640   :  { %1295 = vrot.lane.b32.xlu0 %v1293_v25, %s5009_s21 }
 0x644   :  { %1306 = vrot.lane.b32.xlu0 %v1181_v38, %s5009_s21 }
 0x64d   :  { %281 = vadd.xlane.f32.xlu1 %v280_v29 }
 0x663   :  { %278 = vadd.xlane.f32.xlu0 %v277_v39 }
 0x69b   :  { %v1313_v55 = vpop.permute.xlu1 %1312 }
 0x6b2   :  { %v1296_v41 = vpop.permute.xlu0 %1295 }
 0x6b3   :  { %v1298_v42 = vadd.f32 %v1296_v41, %v5348_v17 }
 0x6b5   :  { %v5382_v43 = vmax.f32 %v5370_v9, %v1298_v42 }
 0x6b6   :  { %v1307_v63 = vpop.permute.xlu0 %1306 }
 0x6b7   :  { %v1300_v38 = vsub.f32 %v5370_v9, %v5382_v43  ;;  %v1303_v48 = vsub.f32 %v1298_v42, %v5382_v43 }
 0x6b9   :  { %v1301_v49 = vmul.f32 1.442695, %v1300_v38  ;;  %v1304_v50 = vmul.f32 1.442695, %v1303_v48 }
 0x6bb   :  { %4430 = vpow2.f32 %v1301_v49 }
 0x6bc   :  { %4432 = vpow2.f32 %v1304_v50 }
 0x6c5   :  { %v4431_v52 = vpop.eup %4430 }
 0x6c6   :  { %v4433_v62 = vpop.eup %4432  ;;  %v1315_v1 = vmul.f32 %v4431_v52, %v1313_v55 }
 0x6c7   :  { %v1309_v2 = vmul.f32 %v4433_v62, %v1307_v63  ;;  %v1321_v17 = vmul.f32 %v4433_v62, %v1319_v51  ;;  %v1327_v62 = vsub.f32 0.0, %v5370_v9 }
 0x6c9   :  { %v5387_v3 = vadd.f32 %v1315_v1, %v1309_v2  ;;  %v5389_v0 = vadd.f32 %v4431_v52, %v1321_v17  ;;  %v1328_v63 = vmul.f32 1.442695, %v1327_v62 }
 0x6cb   :  { %1334 = vrot.lane.b32.xlu0 %v5387_v3, %s5009_s21  ;;  %4434 = vrcp.f32 %v5389_v0 }
 0x6d5   :  { %v4435_v5 = vpop.eup %4434 }
 0x6d6   :  { %v1324_v7 = vmul.f32 %v4435_v5, %v5389_v0 }
 0x6d8   :  { %v1325_v8 = vsub.f32 2.0, %v1324_v7 }
 0x6da   :  { %v282_v10 = vpop.xlane.xlu1 %281  ;;  %v1326_v11 = vmul.f32 %v4435_v5, %v1325_v8 }
 0x6db   :  { %v322_v31 = vmul.f32 0.05, %v282_v10 }
 0x6dc   :  { %1339 = vrot.lane.b32.xlu1 %v1326_v11, %s5009_s21 }
 0x6dd   :  { %v338_v12 = vadd.f32 1e-05, %v322_v31 }
 0x6df   :  { %4436 = vrsqrt.f32 %v338_v12 }
 0x6e9   :  { %v4437_v16 = vpop.eup %4436 }
 0x6ea   :  { %v370_v18 = vmul.f32 %v4437_v16, %v242_v26  ;;  %v452_v26 = vmul.f32 %v5308_v6, %v5258_v45 }
 0x6ec   :  { %v390_v19 = vmul.f32 %v5249_v36, %v370_v18  ;;  %v468_v32 = vadd.f32 %v452_v26, %v5273_v53 }
 0x6ee   :  { %410 = vst.msk [vmem:[#allocation2 + $0x30] sm:$0xff] %vm173_vm0, %v390_v19 }
 0x6f0   :  { %v279_v21 = vpop.xlane.xlu0 %278 }
 0x6f1   :  { %v321_v59 = vmul.f32 0.05, %v279_v21 }
 0x6f3   :  { %v337_v22 = vadd.f32 1e-05, %v321_v59 }
 0x6f5   :  { %4438 = vrsqrt.f32 %v337_v22  ;;  %v5398_v23 = vld [vmem:[#allocation2 + $0x30] sm:$0xff] }
 0x6f6   :  { %772 = vrot.lane.b32.xlu1 %v5398_v23, %s5008_s8  ;;  %v609_v41 = vmul.f32 %v5306_v4, %v5398_v23  ;;  %v506_v42 = vmul.f32 %v5398_v23, %v5277_v54  ;;  %v558_v6 = vmul.f32 %v5398_v23, %v5294_v60  ;;  %4440 = vpow2.f32 %v1328_v63 }
 0x6ff   :  { %v4439_v24 = vpop.eup %4438 }
 0x700   :  { %v369_v25 = vmul.f32 %v4439_v24, %v241_v37  ;;  %v4441_v1 = vpop.eup %4440 }
 0x701   :  { %v1330_v2 = vadd.f32 1.0, %v4441_v1 }
 0x702   :  { %v389_v27 = vmul.f32 %v5249_v36, %v369_v25 }
 0x703   :  { %4442 = vrcp.f32 %v1330_v2 }
 0x704   :  { %409 = vst.msk [vmem:[#allocation2 + $0x28] sm:$0xff] %vm173_vm0, %v389_v27 }
 0x70b   :  { %v537_v29 = vld [vmem:[#allocation2 + $0x28] sm:$0xff] }
 0x70c   :  { %v557_v33 = vmul.f32 %v5294_v60, %v537_v29  ;;  %v608_v40 = vmul.f32 %v5306_v4, %v537_v29  ;;  %770 = vrot.lane.b32.xlu0 %v537_v29, %s5008_s8  ;;  %v453_v39 = vmul.f32 %v537_v29, %v5258_v45  ;;  %v505_v37 = vmul.f32 %v537_v29, %v5277_v54 }
 0x70d   :  { %v4443_v5 = vpop.eup %4442 }
 0x70e   :  { %v573_v38 = vadd.f32 %v557_v33, %v5319_v13  ;;  %v624_v48 = vadd.f32 %v608_v40, %v5321_v15  ;;  %v469_v49 = vadd.f32 %v453_v39, %v5273_v53  ;;  %v521_v50 = vadd.f32 %v505_v37, %v468_v32 }
 0x710   :  { %v625_v51 = vadd.f32 %v609_v41, %v573_v38  ;;  %v5421_v52 = vadd.f32 %v506_v42, %v469_v49  ;;  %v5423_v55 = vadd.f32 %v558_v6, %v521_v50  ;;  %v640_v8 = vsub.f32 0.0, %v624_v48 }
 0x712   :  { %v641_v10 = vsub.f32 0.0, %v625_v51  ;;  %v658_v11 = vmul.f32 1.442695, %v640_v8 }
 0x714   :  { %v660_v31 = vmul.f32 1.442695, %v641_v10  ;;  %4444 = vpow2.f32 %v658_v11 }
 0x716   :  { %4446 = vpow2.f32 %v660_v31 }
 0x71e   :  { %v4445_v12 = vpop.eup %4444 }
 0x71f   :  { %v688_v16 = vadd.f32 1.0, %v4445_v12 }
 0x720   :  { %v4447_v9 = vpop.eup %4446 }
 0x721   :  { %v689_v18 = vadd.f32 1.0, %v4447_v9  ;;  %4448 = vrcp.f32 %v688_v16 }
 0x723   :  { %4450 = vrcp.f32 %v689_v18 }
 0x72b   :  { %v4449_v19 = vpop.eup %4448 }
 0x72c   :  { %v736_v22 = vmul.f32 %v4449_v19, %v624_v48 }
 0x72d   :  { %v4451_v21 = vpop.eup %4450 }
 0x72e   :  { %v737_v24 = vmul.f32 %v4451_v21, %v625_v51 }
 0x73d   :  { %v1335_v17 = vpop.permute.xlu0 %1334 }
 0x73e   :  { %v1337_v13 = vmul.f32 %v4443_v5, %v1335_v17 }
 0x74e   :  { %v1340_v7 = vpop.permute.xlu1 %1339 }
 0x74f   :  { %v1342_v15 = vmul.f32 %v1340_v7, %v1337_v13 }
 0x751   :  { %1346 = vrot.lane.b32.xlu0 %v1342_v15, %s5011_s27 }
 0x768   :  { %v773_v59 = vpop.permute.xlu1 %772 }
 0x769   :  { %v817_v26 = vsel %vm173_vm0, %v737_v24, %v773_v59 }
 0x77e   :  { %v771_v25 = vpop.permute.xlu0 %770 }
 0x77f   :  { %v816_v27 = vsel %vm173_vm0, %v736_v22, %v771_v25 }
 0x780   :  { %3965 = vmatprep.mubr.msk.f32.mxu0 %vm835_vm2, %v816_v27  ;;  %v161_v27 = vld [vmem:[#allocation4 + $0x20] sm:$0xff] }
 0x781   :  { %3966 = vmatmul.mubr.msk.f32.gmra.mrb[2].mxu0 %vm835_vm2, %v817_v26  ;;  %v186_v26 = vsel %vm173_vm0, %v161_v27, 0.0 }
 0x7c3   :  { %v1347_v29 = vpop.permute.xlu0 %1346 }
 0x7c4   :  { %4017 = vmatmul.mubr.msk.f32.vlgmr.msra.gmra.mrb[4].mxu1 %vm1070_vm3, %v1347_v29 }
 0x7c5   :  { %4264 = vmatpush3.bf16.msra.mxu1 %v5244_v35  ;;  %4027 = vmatprep.mubr.msk.f32.mxu1 %vm5007_vm1, %v5005_v14 }
 0x7c6   :  { %4265 = vmatprep.subr.bf16.mxu1 %v5006_v20 }
 0x7c9   :  { %4267 = vmatpush3.bf16.msra.mxu1 %v5261_v47 }
 0x7ca   :  { %4268 = vmatprep.subr.bf16.mxu1 %v5006_v20 }
 0x854   :  { %v5438_v32 = vpop.f32.mrb[2].mxu0 }
 0x855   :  { %v960_v33 = vpop.f32.mrb[3].mxu0 }
 0x856   :  { %v1035_v40 = vadd.f32 %v5341_v58, %v960_v33 }
 0x897   :  { %v1416_v39 = vpop.f32.mrb[4].mxu1 }
 0x898   :  { %v1420_v37 = vadd.f32 %v1416_v39, %v1035_v40  ;;  %v4018_v41 = vpop.f32.mrb[5].mxu1 }
 0x89a   :  { %4452 = vtanh.f32 %v1420_v37  ;;  %v1422_v42 = vand.u32 2147483647, %v1420_v37  ;;  %v1421_v62 = vmin.f32 %v1420_v37, 0.0  ;;  %v1456_v24 = vsub.f32 0.0, %v1420_v37 }
 0x89c   :  { %v1423_v6 = vsub.f32 0.0, %v1422_v42  ;;  %v162_v42 = vld [vmem:[#allocation4 + $0x28] sm:$0xff] }
 0x89e   :  { %v1424_v38 = vmul.f32 1.442695, %v1423_v6  ;;  %v189_v6 = vsel %vm173_vm0, %v162_v42, 0.0 }
 0x8a0   :  { %4454 = vpow2.f32 %v1424_v38  ;;  %v1036_v38 = vadd.f32 %v5438_v32, %v5341_v58 }
 0x8a4   :  { %v4453_v48 = vpop.eup %4452 }
 0x8a5   :  { %1445 = vrot.lane.b32.xlu0 %v4453_v48, %s5010_s22 }
 0x8aa   :  { %v4455_v49 = vpop.eup %4454 }
 0x8ab   :  { %v1426_v50 = vadd.f32 1.0, %v4455_v49 }
 0x8ad   :  { %4456 = vlog2.f32 %v1426_v50 }
 0x8b7   :  { %v4457_v51 = vpop.eup %4456 }
 0x8b8   :  { %v1428_v63 = vmul.f32 0.6931472, %v4457_v51 }
 0x8ba   :  { %v1429_v1 = vsub.f32 %v1421_v62, %v1428_v63 }
 0x8bc   :  { %1431 = vrot.lane.b32.xlu1 %v1429_v1, %s5009_s21 }
 0x917   :  { %v1446_v11 = vpop.permute.xlu0 %1445 }
 0x92e   :  { %v1432_v2 = vpop.permute.xlu1 %1431 }
 0x92f   :  { %v1434_v17 = vadd.f32 %v1432_v2, %v5382_v43 }
 0x931   :  { %v5444_v5 = vmax.f32 %v1420_v37, %v1434_v17 }
 0x933   :  { %v1436_v13 = vsub.f32 %v1420_v37, %v5444_v5  ;;  %v1439_v7 = vsub.f32 %v1434_v17, %v5444_v5 }
 0x935   :  { %v1437_v15 = vmul.f32 1.442695, %v1436_v13  ;;  %v1440_v8 = vmul.f32 1.442695, %v1439_v7 }
 0x937   :  { %4458 = vpow2.f32 %v1437_v15 }
 0x938   :  { %4460 = vpow2.f32 %v1440_v8 }
 0x941   :  { %v4459_v10 = vpop.eup %4458 }
 0x942   :  { %v4461_v31 = vpop.eup %4460  ;;  %v1448_v12 = vmul.f32 %v4459_v10, %v1446_v11 }
 0x943   :  { %v1442_v9 = vmul.f32 %v4461_v31, %v5387_v3  ;;  %v1450_v16 = vmul.f32 %v4461_v31, %v5389_v0  ;;  %v1457_v3 = vmul.f32 1.442695, %v1456_v24 }
 0x945   :  { %v5450_v18 = vadd.f32 %v1448_v12, %v1442_v9  ;;  %v5452_v43 = vadd.f32 %v4459_v10, %v1450_v16 }
 0x947   :  { %1463 = vrot.lane.b32.xlu1 %v5450_v18, %s5009_s21  ;;  %4462 = vrcp.f32 %v5452_v43 }
 0x948   :  { %4464 = vpow2.f32 %v1457_v3 }
 0x951   :  { %v4463_v19 = vpop.eup %4462 }
 0x952   :  { %v1453_v21 = vmul.f32 %v4463_v19, %v5452_v43  ;;  %v4465_v0 = vpop.eup %4464 }
 0x953   :  { %v1459_v25 = vadd.f32 1.0, %v4465_v0 }
 0x954   :  { %v1454_v59 = vsub.f32 2.0, %v1453_v21 }
 0x955   :  { %4466 = vrcp.f32 %v1459_v25 }
 0x956   :  { %v1455_v22 = vmul.f32 %v4463_v19, %v1454_v59 }
 0x958   :  { %1468 = vrot.lane.b32.xlu0 %v1455_v22, %s5009_s21 }
 0x95f   :  { %v4467_v33 = vpop.eup %4466 }
 0x977   :  { %187 = vadd.xlane.f32.xlu0 %v186_v26 }
 0x9b9   :  { %v1464_v29 = vpop.permute.xlu1 %1463 }
 0x9ba   :  { %v1466_v40 = vmul.f32 %v4467_v33, %v1464_v29 }
 0x9ca   :  { %v1469_v39 = vpop.permute.xlu0 %1468 }
 0x9cb   :  { %v1471_v41 = vmul.f32 %v1469_v39, %v1466_v40 }
 0x9cd   :  { %1475 = vrot.lane.b32.xlu1 %v1471_v41, %s5011_s27 }
 0x9f1   :  { %190 = vadd.xlane.f32.xlu1 %v189_v6 }
 0xa04   :  { %v188_v9 = vpop.xlane.xlu0 %187 }
 0xa05   :  { %v227_v16 = vmul.f32 0.05, %v188_v9 }
 0xa07   :  { %v243_v19 = vsub.f32 %v161_v27, %v227_v16 }
 0xa09   :  { %v259_v21 = vmul.f32 %v243_v19, %v243_v19 }
 0xa0b   :  { %v283_v59 = vsel %vm173_vm0, %v259_v21, 0.0 }
 0xa3f   :  { %v1476_v37 = vpop.permute.xlu1 %1475 }
 0xa40   :  { %4028 = vmatmul.mubr.msk.f32.vlgmr.msra.gmra.mrb[6].mxu1 %vm1070_vm3, %v1476_v37 }
 0xa41   :  { %4270 = vmatpush3.bf16.msra.mxu1 %v5244_v35  ;;  %4038 = vmatprep.mubr.msk.f32.mxu1 %vm5007_vm1, %v5005_v14 }
 0xa42   :  { %4271 = vmatprep.subr.bf16.mxu1 %v5006_v20 }
 0xa45   :  { %4273 = vmatpush3.bf16.msra.mxu1 %v5261_v47 }
 0xa46   :  { %4280 = vmatprep.subr.bf16.mxu1 %v5006_v20 }
 0xa7e   :  { %v191_v7 = vpop.xlane.xlu1 %190 }
 0xa7f   :  { %v228_v10 = vmul.f32 0.05, %v191_v7 }
 0xa81   :  { %v244_v11 = vsub.f32 %v162_v42, %v228_v10  ;;  %v454_v10 = vmul.f32 %v5398_v23, %v5258_v45 }
 0xa83   :  { %v260_v31 = vmul.f32 %v244_v11, %v244_v11 }
 0xa85   :  { %v286_v12 = vsel %vm173_vm0, %v260_v31, 0.0  ;;  %v470_v31 = vadd.f32 %v454_v10, %v5273_v53 }
 0xb13   :  { %v1545_v48 = vpop.f32.mrb[6].mxu1 }
 0xb14   :  { %v5471_v49 = vadd.f32 %v1545_v48, %v1036_v38  ;;  %v4029_v50 = vpop.f32.mrb[7].mxu1 }
 0xb16   :  { %4468 = vtanh.f32 %v5471_v49  ;;  %v1551_v51 = vand.u32 2147483647, %v5471_v49  ;;  %v1550_v32 = vmin.f32 %v5471_v49, 0.0 }
 0xb18   :  { %v1552_v62 = vsub.f32 0.0, %v1551_v51 }
 0xb1a   :  { %v1553_v63 = vmul.f32 1.442695, %v1552_v62 }
 0xb1c   :  { %4470 = vpow2.f32 %v1553_v63 }
 0xb20   :  { %v4469_v1 = vpop.eup %4468 }
 0xb21   :  { %1574 = vrot.lane.b32.xlu1 %v4469_v1, %s5010_s22 }
 0xb26   :  { %v4471_v2 = vpop.eup %4470 }
 0xb27   :  { %v1555_v17 = vadd.f32 1.0, %v4471_v2 }
 0xb29   :  { %4472 = vlog2.f32 %v1555_v17 }
 0xb33   :  { %v4473_v13 = vpop.eup %4472 }
 0xb34   :  { %v1557_v15 = vmul.f32 0.6931472, %v4473_v13 }
 0xb36   :  { %v1558_v8 = vsub.f32 %v1550_v32, %v1557_v15 }
 0xb38   :  { %1560 = vrot.lane.b32.xlu0 %v1558_v8, %s5009_s21 }
 0xb45   :  { %287 = vadd.xlane.f32.xlu1 %v286_v12 }
 0xb57   :  { %284 = vadd.xlane.f32.xlu0 %v283_v59 }
 0xb93   :  { %v1575_v33 = vpop.permute.xlu1 %1574 }
 0xbaa   :  { %v1561_v22 = vpop.permute.xlu0 %1560 }
 0xbab   :  { %v1563_v24 = vadd.f32 %v1561_v22, %v5444_v5 }
 0xbad   :  { %v5482_v3 = vmax.f32 %v5471_v49, %v1563_v24 }
 0xbaf   :  { %v1565_v0 = vsub.f32 %v5471_v49, %v5482_v3  ;;  %v1568_v25 = vsub.f32 %v1563_v24, %v5482_v3 }
 0xbb1   :  { %v1566_v26 = vmul.f32 1.442695, %v1565_v0  ;;  %v1569_v29 = vmul.f32 1.442695, %v1568_v25 }
 0xbb3   :  { %4474 = vpow2.f32 %v1566_v26 }
 0xbb4   :  { %4476 = vpow2.f32 %v1569_v29 }
 0xbbd   :  { %v4475_v27 = vpop.eup %4474 }
 0xbbe   :  { %v4477_v40 = vpop.eup %4476  ;;  %v1577_v39 = vmul.f32 %v4475_v27, %v1575_v33  ;;  %v1585_v33 = vsub.f32 0.0, %v5471_v49 }
 0xbbf   :  { %v1571_v41 = vmul.f32 %v4477_v40, %v5450_v18  ;;  %v1579_v5 = vmul.f32 %v4477_v40, %v5452_v43 }
 0xbc0   :  { %v1586_v40 = vmul.f32 1.442695, %v1585_v33 }
 0xbc1   :  { %v5489_v42 = vadd.f32 %v1577_v39, %v1571_v41  ;;  %v5491_v6 = vadd.f32 %v4475_v27, %v1579_v5  ;;  %v5528_v5 = vld [vmem:[#allocation4 + $0x30] sm:$0xff] }
 0xbc3   :  { %1592 = vrot.lane.b32.xlu0 %v5489_v42, %s5009_s21  ;;  %4478 = vrcp.f32 %v5491_v6 }
 0xbcd   :  { %v4479_v37 = vpop.eup %4478 }
 0xbce   :  { %v1582_v38 = vmul.f32 %v4479_v37, %v5491_v6 }
 0xbd0   :  { %v1583_v48 = vsub.f32 2.0, %v1582_v38 }
 0xbd2   :  { %v288_v50 = vpop.xlane.xlu1 %287  ;;  %v1584_v51 = vmul.f32 %v4479_v37, %v1583_v48 }
 0xbd3   :  { %v324_v62 = vmul.f32 0.05, %v288_v50 }
 0xbd4   :  { %1597 = vrot.lane.b32.xlu1 %v1584_v51, %s5009_s21 }
 0xbd5   :  { %v340_v18 = vadd.f32 1e-05, %v324_v62 }
 0xbd7   :  { %4480 = vrsqrt.f32 %v340_v18 }
 0xbe1   :  { %v4481_v43 = vpop.eup %4480 }
 0xbe2   :  { %v372_v63 = vmul.f32 %v4481_v43, %v244_v11 }
 0xbe4   :  { %v392_v1 = vmul.f32 %v5249_v36, %v372_v63  ;;  %v285_v2 = vpop.xlane.xlu0 %284 }
 0xbe5   :  { %v323_v17 = vmul.f32 0.05, %v285_v2 }
 0xbe6   :  { %412 = vst.msk [vmem:[#allocation2 + $0x40] sm:$0xff] %vm173_vm0, %v392_v1 }
 0xbe7   :  { %v339_v13 = vadd.f32 1e-05, %v323_v17  ;;  %v5533_v17 = vld [vmem:[#allocation4 + $0x38] sm:$0xff] }
 0xbe9   :  { %4482 = vrsqrt.f32 %v339_v13  ;;  %v195_v13 = vsel %vm173_vm0, %v5533_v17, 0.0 }
 0xbea   :  { %4484 = vpow2.f32 %v1586_v40  ;;  %v5568_v40 = vld [vmem:[#allocation4 + $0x50] sm:$0xff] }
 0xbed   :  { %v5500_v7 = vld [vmem:[#allocation2 + $0x40] sm:$0xff] }
 0xbee   :  { %776 = vrot.lane.b32.xlu1 %v5500_v7, %s5008_s8  ;;  %v611_v21 = vmul.f32 %v5306_v4, %v5500_v7  ;;  %v560_v59 = vmul.f32 %v5500_v7, %v5294_v60  ;;  %v508_v23 = vmul.f32 %v5500_v7, %v5277_v54 }
 0xbf3   :  { %v4483_v32 = vpop.eup %4482 }
 0xbf4   :  { %v371_v15 = vmul.f32 %v4483_v32, %v243_v19  ;;  %v4485_v39 = vpop.eup %4484  ;;  %v5537_v32 = vld [vmem:[#allocation4 + $0x40] sm:$0xff] }
 0xbf5   :  { %v1588_v41 = vadd.f32 1.0, %v4485_v39  ;;  %v204_v39 = vsel %vm173_vm0, %v5568_v40, 0.0 }
 0xbf6   :  { %v391_v8 = vmul.f32 %v5249_v36, %v371_v15  ;;  %v198_v15 = vsel %vm173_vm0, %v5537_v32, 0.0 }
 0xbf7   :  { %4486 = vrcp.f32 %v1588_v41  ;;  %v5572_v41 = vld [vmem:[#allocation4 + $0x60] sm:$0xff] }
 0xbf8   :  { %411 = vst.msk [vmem:[#allocation2 + $0x38] sm:$0xff] %vm173_vm0, %v391_v8  ;;  %v5541_v8 = vld [vmem:[#allocation4 + $0x48] sm:$0xff] }
 0xbf9   :  { %v201_v10 = vsel %vm173_vm0, %v5541_v8, 0.0 }
 0xbff   :  { %v539_v11 = vld [vmem:[#allocation2 + $0x38] sm:$0xff] }
 0xc00   :  { %v559_v12 = vmul.f32 %v5294_v60, %v539_v11  ;;  %v610_v9 = vmul.f32 %v5306_v4, %v539_v11  ;;  %774 = vrot.lane.b32.xlu0 %v539_v11, %s5008_s8  ;;  %v507_v16 = vmul.f32 %v539_v11, %v5277_v54  ;;  %v455_v19 = vmul.f32 %v539_v11, %v5258_v45 }
 0xc01   :  { %v4487_v37 = vpop.eup %4486 }
 0xc02   :  { %v575_v22 = vadd.f32 %v559_v12, %v5421_v52  ;;  %v626_v24 = vadd.f32 %v610_v9, %v5423_v55  ;;  %v523_v0 = vadd.f32 %v507_v16, %v470_v31  ;;  %v471_v25 = vadd.f32 %v455_v19, %v5273_v53  ;;  %v5545_v31 = vld [vmem:[#allocation4 + $0x58] sm:$0xff] }
 0xc03   :  { %v192_v52 = vsel %vm173_vm0, %v5528_v5, 0.0  ;;  %v207_v19 = vsel %vm173_vm0, %v5545_v31, 0.0 }
 0xc04   :  { %v627_v26 = vadd.f32 %v611_v21, %v575_v22  ;;  %v5523_v29 = vadd.f32 %v560_v59, %v523_v0  ;;  %v5525_v27 = vadd.f32 %v508_v23, %v471_v25  ;;  %v642_v51 = vsub.f32 0.0, %v626_v24  ;;  %v5549_v23 = vld [vmem:[#allocation4 + $0x68] sm:$0xff] }
 0xc05   :  { %v213_v25 = vsel %vm173_vm0, %v5549_v23, 0.0 }
 0xc06   :  { %v643_v49 = vsub.f32 0.0, %v627_v26  ;;  %v662_v62 = vmul.f32 1.442695, %v642_v51 }
 0xc08   :  { %v664_v18 = vmul.f32 1.442695, %v643_v49  ;;  %4488 = vpow2.f32 %v662_v62 }
 0xc0a   :  { %4490 = vpow2.f32 %v664_v18 }
 0xc12   :  { %193 = vadd.xlane.f32.xlu1 %v192_v52  ;;  %v4489_v43 = vpop.eup %4488  ;;  %v210_v52 = vsel %vm173_vm0, %v5572_v41, 0.0 }
 0xc13   :  { %v690_v1 = vadd.f32 1.0, %v4489_v43 }
 0xc14   :  { %v4491_v63 = vpop.eup %4490 }
 0xc15   :  { %v691_v2 = vadd.f32 1.0, %v4491_v63  ;;  %4492 = vrcp.f32 %v690_v1 }
 0xc16   :  { %205 = vadd.xlane.f32.xlu1 %v204_v39 }
 0xc17   :  { %4494 = vrcp.f32 %v691_v2 }
 0xc1a   :  { %211 = vadd.xlane.f32.xlu1 %v210_v52 }
 0xc1f   :  { %v4493_v11 = vpop.eup %4492 }
 0xc20   :  { %v738_v16 = vmul.f32 %v4493_v11, %v626_v24  ;;  %v5557_v24 = vld [vmem:[#allocation4 + $0x78] sm:$0xff] }
 0xc21   :  { %v4495_v12 = vpop.eup %4494 }
 0xc22   :  { %v739_v21 = vmul.f32 %v4495_v12, %v627_v26  ;;  %v219_v26 = vsel %vm173_vm0, %v5557_v24, 0.0 }
 0xc35   :  { %v1593_v55 = vpop.permute.xlu0 %1592 }
 0xc36   :  { %v1595_v38 = vmul.f32 %v4487_v37, %v1593_v55  ;;  %v5576_v55 = vld [vmem:[#allocation4 + $0x70] sm:$0xff] }
 0xc37   :  { %v216_v37 = vsel %vm173_vm0, %v5576_v55, 0.0 }
 0xc38   :  { %217 = vadd.xlane.f32.xlu1 %v216_v37 }
 0xc46   :  { %v1598_v48 = vpop.permute.xlu1 %1597 }
 0xc47   :  { %v1600_v50 = vmul.f32 %v1598_v48, %v1595_v38 }
 0xc49   :  { %1604 = vrot.lane.b32.xlu0 %v1600_v50, %s5011_s27 }
 0xc60   :  { %v777_v9 = vpop.permute.xlu1 %776 }
 0xc61   :  { %v819_v0 = vsel %vm173_vm0, %v739_v21, %v777_v9 }
 0xc68   :  { %196 = vadd.xlane.f32.xlu0 %v195_v13 }
 0xc6c   :  { %199 = vadd.xlane.f32.xlu0 %v198_v15 }
 0xc70   :  { %202 = vadd.xlane.f32.xlu0 %v201_v10 }
 0xc72   :  { %v775_v59 = vpop.permute.xlu0 %774 }
 0xc73   :  { %v818_v22 = vsel %vm173_vm0, %v738_v16, %v775_v59 }
 0xc74   :  { %3968 = vmatprep.mubr.msk.f32.mxu0 %vm835_vm2, %v818_v22  ;;  %208 = vadd.xlane.f32.xlu0 %v207_v19 }
 0xc75   :  { %3969 = vmatmul.mubr.msk.f32.gmra.mrb[4].mxu0 %vm835_vm2, %v819_v0 }
 0xc78   :  { %214 = vadd.xlane.f32.xlu0 %v213_v25 }
 0xc7c   :  { %220 = vadd.xlane.f32.xlu0 %v219_v26 }
 0xcbb   :  { %v1605_v33 = vpop.permute.xlu0 %1604 }
 0xcbc   :  { %4039 = vmatmul.mubr.msk.f32.vlgmr.msra.gmra.mrb[8].mxu1 %vm1070_vm3, %v1605_v33 }
 0xcbd   :  { %4282 = vmatpush3.bf16.msra.mxu1 %v5244_v35  ;;  %4060 = vmatprep.mubr.msk.f32.mxu1 %vm5007_vm1, %v5005_v14 }
 0xcbe   :  { %4283 = vmatprep.subr.bf16.mxu1 %v5006_v20 }
 0xcc1   :  { %4285 = vmatpush3.bf16.msra.mxu1 %v5261_v47 }
 0xcc2   :  { %4292 = vmatprep.subr.bf16.mxu1 %v5006_v20 }
 0xcf5   :  { %v197_v2 = vpop.xlane.xlu0 %196 }
 0xcf6   :  { %v230_v12 = vmul.f32 0.05, %v197_v2  ;;  %v194_v2 = vpop.xlane.xlu1 %193 }
 0xcf8   :  { %v5590_v59 = vsub.f32 %v5533_v17, %v230_v12 }
 0xcf9   :  { %v200_v15 = vpop.xlane.xlu0 %199 }
 0xcfa   :  { %v262_v39 = vmul.f32 %v5590_v59, %v5590_v59 }
 0xcfc   :  { %v292_v37 = vsel %vm173_vm0, %v262_v39, 0.0 }
 0xcfd   :  { %v203_v11 = vpop.xlane.xlu0 %202 }
 0xcfe   :  { %v232_v22 = vmul.f32 0.05, %v203_v11  ;;  %v206_v11 = vpop.xlane.xlu1 %205 }
 0xd00   :  { %v5594_v26 = vsub.f32 %v5541_v8, %v232_v22 }
 0xd01   :  { %v209_v9 = vpop.xlane.xlu0 %208 }
 0xd02   :  { %v234_v33 = vmul.f32 0.05, %v209_v9  ;;  %v264_v17 = vmul.f32 %v5594_v26, %v5594_v26  ;;  %v212_v9 = vpop.xlane.xlu1 %211 }
 0xd04   :  { %v5599_v52 = vsub.f32 %v5545_v31, %v234_v33  ;;  %v298_v8 = vsel %vm173_vm0, %v264_v17, 0.0 }
 0xd05   :  { %v215_v25 = vpop.xlane.xlu0 %214 }
 0xd06   :  { %v218_v33 = vpop.xlane.xlu1 %217 }
 0xd48   :  { %v5580_v38 = vpop.f32.mrb[4].mxu0 }
 0xd49   :  { %v970_v48 = vpop.f32.mrb[5].mxu0 }
 0xd4a   :  { %v1037_v50 = vadd.f32 %v5341_v58, %v970_v48  ;;  %v236_v48 = vmul.f32 0.05, %v215_v25 }
 0xd8f   :  { %v1674_v51 = vpop.f32.mrb[8].mxu1 }
 0xd90   :  { %v5583_v49 = vadd.f32 %v1674_v51, %v1037_v50  ;;  %v4040_v62 = vpop.f32.mrb[9].mxu1  ;;  %v221_v50 = vpop.xlane.xlu0 %220  ;;  %v5605_v51 = vsub.f32 %v5549_v23, %v236_v48 }
 0xd91   :  { %v238_v62 = vmul.f32 0.05, %v221_v50 }
 0xd92   :  { %4496 = vtanh.f32 %v5583_v49  ;;  %v1680_v18 = vand.u32 2147483647, %v5583_v49  ;;  %v1679_v19 = vmin.f32 %v5583_v49, 0.0 }
 0xd93   :  { %v5611_v31 = vsub.f32 %v5557_v24, %v238_v62  ;;  %v231_v24 = vmul.f32 0.05, %v200_v15  ;;  %v235_v15 = vmul.f32 0.05, %v212_v9 }
 0xd94   :  { %v1681_v43 = vsub.f32 0.0, %v1680_v18  ;;  %v266_v18 = vmul.f32 %v5599_v52, %v5599_v52 }
 0xd95   :  { %v270_v23 = vmul.f32 %v5611_v31, %v5611_v31 }
 0xd96   :  { %v1682_v63 = vmul.f32 1.442695, %v1681_v43  ;;  %v304_v43 = vsel %vm173_vm0, %v266_v18, 0.0 }
 0xd98   :  { %4498 = vpow2.f32 %v1682_v63  ;;  %v268_v63 = vmul.f32 %v5605_v51, %v5605_v51 }
 0xd9c   :  { %v4497_v1 = vpop.eup %4496 }
 0xd9d   :  { %1703 = vrot.lane.b32.xlu0 %v4497_v1, %s5010_s22  ;;  %v310_v1 = vsel %vm173_vm0, %v268_v63, 0.0 }
 0xda2   :  { %v4499_v13 = vpop.eup %4498 }
 0xda3   :  { %v1684_v10 = vadd.f32 1.0, %v4499_v13  ;;  %v316_v13 = vsel %vm173_vm0, %v270_v23, 0.0 }
 0xda5   :  { %4500 = vlog2.f32 %v1684_v10  ;;  %v229_v10 = vmul.f32 0.05, %v194_v2 }
 0xda7   :  { %v5621_v12 = vsub.f32 %v5528_v5, %v229_v10 }
 0xdaf   :  { %v4501_v16 = vpop.eup %4500 }
 0xdb0   :  { %v1686_v21 = vmul.f32 0.6931472, %v4501_v16  ;;  %v5624_v16 = vsub.f32 %v5537_v32, %v231_v24  ;;  %v5636_v32 = vsub.f32 %v5572_v41, %v235_v15 }
 0xdb2   :  { %v1687_v0 = vsub.f32 %v1679_v19, %v1686_v21  ;;  %v261_v19 = vmul.f32 %v5621_v12, %v5621_v12  ;;  %v233_v21 = vmul.f32 0.05, %v206_v11  ;;  %v263_v25 = vmul.f32 %v5624_v16, %v5624_v16 }
 0xdb3   :  { %v267_v17 = vmul.f32 %v5636_v32, %v5636_v32 }
 0xdb4   :  { %1689 = vrot.lane.b32.xlu1 %v1687_v0, %s5009_s21  ;;  %v289_v22 = vsel %vm173_vm0, %v261_v19, 0.0  ;;  %v5630_v0 = vsub.f32 %v5568_v40, %v233_v21  ;;  %v295_v5 = vsel %vm173_vm0, %v263_v25, 0.0 }
 0xdb5   :  { %v307_v50 = vsel %vm173_vm0, %v267_v17, 0.0 }
 0xdb6   :  { %v265_v39 = vmul.f32 %v5630_v0, %v5630_v0 }
 0xdb8   :  { %v301_v48 = vsel %vm173_vm0, %v265_v39, 0.0 }
 0xdbc   :  { %293 = vadd.xlane.f32.xlu0 %v292_v37  ;;  %v237_v37 = vmul.f32 0.05, %v218_v33 }
 0xdbe   :  { %v5642_v40 = vsub.f32 %v5576_v55, %v237_v37 }
 0xdc0   :  { %299 = vadd.xlane.f32.xlu0 %v298_v8  ;;  %v269_v41 = vmul.f32 %v5642_v40, %v5642_v40 }
 0xdc2   :  { %v313_v8 = vsel %vm173_vm0, %v269_v41, 0.0 }
 0xdc4   :  { %305 = vadd.xlane.f32.xlu0 %v304_v43 }
 0xdc8   :  { %311 = vadd.xlane.f32.xlu0 %v310_v1 }
 0xdcc   :  { %317 = vadd.xlane.f32.xlu0 %v316_v13 }
 0xdd8   :  { %290 = vadd.xlane.f32.xlu1 %v289_v22 }
 0xddc   :  { %296 = vadd.xlane.f32.xlu1 %v295_v5 }
 0xde0   :  { %302 = vadd.xlane.f32.xlu1 %v301_v48 }
 0xde4   :  { %308 = vadd.xlane.f32.xlu1 %v307_v50 }
 0xde8   :  { %314 = vadd.xlane.f32.xlu1 %v313_v8 }
 0xe0f   :  { %v1704_v13 = vpop.permute.xlu0 %1703 }
 0xe26   :  { %v1690_v62 = vpop.permute.xlu1 %1689 }
 0xe27   :  { %v1692_v18 = vadd.f32 %v1690_v62, %v5482_v3 }
 0xe29   :  { %v5652_v43 = vmax.f32 %v5583_v49, %v1692_v18 }
 0xe2b   :  { %v1694_v55 = vsub.f32 %v5583_v49, %v5652_v43  ;;  %v1697_v63 = vsub.f32 %v1692_v18, %v5652_v43 }
 0xe2d   :  { %v1695_v1 = vmul.f32 1.442695, %v1694_v55  ;;  %v1698_v23 = vmul.f32 1.442695, %v1697_v63 }
 0xe2f   :  { %4502 = vpow2.f32 %v1695_v1 }
 0xe30   :  { %4504 = vpow2.f32 %v1698_v23 }
 0xe39   :  { %v4503_v2 = vpop.eup %4502 }
 0xe3a   :  { %v4505_v10 = vpop.eup %4504  ;;  %v1706_v11 = vmul.f32 %v4503_v2, %v1704_v13 }
 0xe3b   :  { %v1700_v24 = vmul.f32 %v4505_v10, %v5489_v42  ;;  %v1708_v3 = vmul.f32 %v4505_v10, %v5491_v6 }
 0xe3d   :  { %v5659_v9 = vadd.f32 %v1706_v11, %v1700_v24  ;;  %v5661_v19 = vadd.f32 %v4503_v2, %v1708_v3 }
 0xe3f   :  { %1721 = vrot.lane.b32.xlu1 %v5659_v9, %s5009_s21  ;;  %4506 = vrcp.f32 %v5661_v19 }
 0xe49   :  { %v4507_v21 = vpop.eup %4506  ;;  %v294_v22 = vpop.xlane.xlu0 %293 }
 0xe4a   :  { %v326_v25 = vmul.f32 0.05, %v294_v22  ;;  %v1711_v15 = vmul.f32 %v4507_v21, %v5661_v19 }
 0xe4c   :  { %v342_v33 = vadd.f32 1e-05, %v326_v25  ;;  %v1712_v5 = vsub.f32 2.0, %v1711_v15 }
 0xe4d   :  { %v300_v39 = vpop.xlane.xlu0 %299 }
 0xe4e   :  { %4508 = vrsqrt.f32 %v342_v33  ;;  %v328_v42 = vmul.f32 0.05, %v300_v39  ;;  %v1713_v6 = vmul.f32 %v4507_v21, %v1712_v5 }
 0xe50   :  { %v344_v37 = vadd.f32 1e-05, %v328_v42  ;;  %1726 = vrot.lane.b32.xlu0 %v1713_v6, %s5009_s21 }
 0xe51   :  { %v306_v48 = vpop.xlane.xlu0 %305 }
 0xe52   :  { %4510 = vrsqrt.f32 %v344_v37  ;;  %v330_v17 = vmul.f32 0.05, %v306_v48 }
 0xe54   :  { %v346_v50 = vadd.f32 1e-05, %v330_v17 }
 0xe55   :  { %v312_v41 = vpop.xlane.xlu0 %311 }
 0xe56   :  { %4512 = vrsqrt.f32 %v346_v50  ;;  %v332_v8 = vmul.f32 0.05, %v312_v41 }
 0xe58   :  { %v4509_v62 = vpop.eup %4508  ;;  %v348_v18 = vadd.f32 1e-05, %v332_v8 }
 0xe59   :  { %v374_v55 = vmul.f32 %v4509_v62, %v5590_v59  ;;  %v318_v63 = vpop.xlane.xlu0 %317 }
 0xe5a   :  { %4514 = vrsqrt.f32 %v348_v18  ;;  %v334_v1 = vmul.f32 0.05, %v318_v63 }
 0xe5b   :  { %v394_v23 = vmul.f32 %v5249_v36, %v374_v55 }
 0xe5c   :  { %v4511_v2 = vpop.eup %4510  ;;  %v350_v13 = vadd.f32 1e-05, %v334_v1 }
 0xe5d   :  { %414 = vst.msk [vmem:[#allocation2 + $0x50] sm:$0xff] %vm173_vm0, %v394_v23  ;;  %v376_v10 = vmul.f32 %v4511_v2, %v5594_v26 }
 0xe5e   :  { %4516 = vrsqrt.f32 %v350_v13 }
 0xe5f   :  { %v396_v11 = vmul.f32 %v5249_v36, %v376_v10 }
 0xe60   :  { %v4513_v24 = vpop.eup %4512 }
 0xe61   :  { %416 = vst.msk [vmem:[#allocation2 + $0x60] sm:$0xff] %vm173_vm0, %v396_v11  ;;  %v378_v3 = vmul.f32 %v4513_v24, %v5599_v52 }
 0xe63   :  { %v398_v59 = vmul.f32 %v5249_v36, %v378_v3 }
 0xe64   :  { %v4515_v21 = vpop.eup %4514 }
 0xe65   :  { %418 = vst.msk [vmem:[#allocation2 + $0x70] sm:$0xff] %vm173_vm0, %v398_v59  ;;  %v380_v22 = vmul.f32 %v4515_v21, %v5605_v51  ;;  %v291_v25 = vpop.xlane.xlu1 %290 }
 0xe66   :  { %v325_v15 = vmul.f32 0.05, %v291_v25 }
 0xe67   :  { %v400_v33 = vmul.f32 %v5249_v36, %v380_v22  ;;  %v593_v22 = vld [vmem:[#allocation2 + $0x50] sm:$0xff] }
 0xe68   :  { %v4517_v26 = vpop.eup %4516  ;;  %v341_v5 = vadd.f32 1e-05, %v325_v15  ;;  %v5679_v39 = vld [vmem:[#allocation2 + $0x60] sm:$0xff] }
 0xe69   :  { %420 = vst.msk [vmem:[#allocation2 + $0x80] sm:$0xff] %vm173_vm0, %v400_v33  ;;  %v382_v42 = vmul.f32 %v4517_v26, %v5611_v31  ;;  %784 = vrot.lane.b32.xlu0 %v5679_v39, %s5008_s8  ;;  %v297_v52 = vpop.xlane.xlu1 %296 }
 0xe6a   :  { %4518 = vrsqrt.f32 %v341_v5  ;;  %v327_v6 = vmul.f32 0.05, %v297_v52  ;;  %v613_v52 = vmul.f32 %v5306_v4, %v593_v22 }
 0xe6b   :  { %v402_v51 = vmul.f32 %v5249_v36, %v382_v42 }
 0xe6c   :  { %v343_v37 = vadd.f32 1e-05, %v327_v6  ;;  %v5686_v48 = vld [vmem:[#allocation2 + $0x70] sm:$0xff]  ;;  %v562_v6 = vmul.f32 %v593_v22, %v5294_v60 }
 0xe6d   :  { %422 = vst.msk [vmem:[#allocation2 + $0x90] sm:$0xff] %vm173_vm0, %v402_v51  ;;  %788 = vrot.lane.b32.xlu0 %v5686_v48, %s5008_s8  ;;  %v303_v17 = vpop.xlane.xlu1 %302 }
 0xe6e   :  { %4520 = vrsqrt.f32 %v343_v37  ;;  %v329_v50 = vmul.f32 0.05, %v303_v17 }
 0xe70   :  { %v345_v31 = vadd.f32 1e-05, %v329_v50  ;;  %v5691_v41 = vld [vmem:[#allocation2 + $0x80] sm:$0xff] }
 0xe71   :  { %792 = vrot.lane.b32.xlu0 %v5691_v41, %s5008_s8  ;;  %v309_v8 = vpop.xlane.xlu1 %308 }
 0xe72   :  { %4522 = vrsqrt.f32 %v345_v31  ;;  %v331_v62 = vmul.f32 0.05, %v309_v8 }
 0xe74   :  { %v4519_v18 = vpop.eup %4518  ;;  %v347_v55 = vadd.f32 1e-05, %v331_v62  ;;  %v5695_v63 = vld [vmem:[#allocation2 + $0x90] sm:$0xff] }
 0xe75   :  { %v373_v1 = vmul.f32 %v4519_v18, %v5621_v12  ;;  %796 = vrot.lane.b32.xlu0 %v5695_v63, %s5008_s8  ;;  %v315_v23 = vpop.xlane.xlu1 %314  ;;  %v456_v12 = vmul.f32 %v5500_v7, %v5258_v45  ;;  %v510_v18 = vmul.f32 %v593_v22, %v5277_v54 }
 0xe76   :  { %4524 = vrsqrt.f32 %v347_v55  ;;  %v333_v2 = vmul.f32 0.05, %v315_v23 }
 0xe77   :  { %v393_v13 = vmul.f32 %v5249_v36, %v373_v1  ;;  %v472_v26 = vadd.f32 %v456_v12, %v5273_v53 }
 0xe78   :  { %v4521_v10 = vpop.eup %4520  ;;  %v349_v11 = vadd.f32 1e-05, %v333_v2 }
 0xe79   :  { %413 = vst.msk [vmem:[#allocation2 + $0x48] sm:$0xff] %vm173_vm0, %v393_v13  ;;  %v375_v24 = vmul.f32 %v4521_v10, %v5624_v16  ;;  %v458_v16 = vmul.f32 %v593_v22, %v5258_v45 }
 0xe7a   :  { %4526 = vrsqrt.f32 %v349_v11 }
 0xe7b   :  { %v395_v3 = vmul.f32 %v5249_v36, %v375_v24  ;;  %v474_v62 = vadd.f32 %v458_v16, %v5273_v53  ;;  %v615_v24 = vmul.f32 %v5306_v4, %v5679_v39 }
 0xe7c   :  { %v4523_v59 = vpop.eup %4522 }
 0xe7d   :  { %415 = vst.msk [vmem:[#allocation2 + $0x58] sm:$0xff] %vm173_vm0, %v395_v3  ;;  %v377_v21 = vmul.f32 %v4523_v59, %v5630_v0  ;;  %v564_v3 = vmul.f32 %v5679_v39, %v5294_v60 }
 0xe7f   :  { %v397_v25 = vmul.f32 %v5249_v36, %v377_v21 }
 0xe80   :  { %v4525_v15 = vpop.eup %4524  ;;  %v592_v33 = vld [vmem:[#allocation2 + $0x48] sm:$0xff] }
 0xe81   :  { %417 = vst.msk [vmem:[#allocation2 + $0x68] sm:$0xff] %vm173_vm0, %v397_v25  ;;  %v379_v5 = vmul.f32 %v4525_v15, %v5636_v32  ;;  %778 = vrot.lane.b32.xlu1 %v592_v33, %s5008_s8  ;;  %v612_v7 = vmul.f32 %v5306_v4, %v592_v33  ;;  %v561_v42 = vmul.f32 %v592_v33, %v5294_v60 }
 0xe82   :  { %v509_v0 = vmul.f32 %v592_v33, %v5277_v54  ;;  %v457_v51 = vmul.f32 %v592_v33, %v5258_v45  ;;  %v462_v25 = vmul.f32 %v5686_v48, %v5258_v45 }
 0xe83   :  { %v399_v37 = vmul.f32 %v5249_v36, %v379_v5  ;;  %v5722_v17 = vadd.f32 %v612_v7, %v5523_v29  ;;  %v577_v32 = vadd.f32 %v561_v42, %v5525_v27  ;;  %v460_v27 = vmul.f32 %v5679_v39, %v5258_v45 }
 0xe84   :  { %v525_v50 = vadd.f32 %v509_v0, %v472_v26  ;;  %v4527_v31 = vpop.eup %4526  ;;  %v594_v8 = vld [vmem:[#allocation2 + $0x58] sm:$0xff]  ;;  %v473_v55 = vadd.f32 %v457_v51, %v5273_v53  ;;  %v512_v7 = vmul.f32 %v5679_v39, %v5277_v54 }
 0xe85   :  { %419 = vst.msk [vmem:[#allocation2 + $0x78] sm:$0xff] %vm173_vm0, %v399_v37  ;;  %v381_v1 = vmul.f32 %v4527_v31, %v5642_v40  ;;  %780 = vrot.lane.b32.xlu1 %v593_v22, %s5008_s8  ;;  %v5731_v23 = vadd.f32 %v613_v52, %v577_v32  ;;  %v614_v2 = vmul.f32 %v5306_v4, %v594_v8 }
 0xe86   :  { %v578_v29 = vadd.f32 %v562_v6, %v525_v50  ;;  %v511_v13 = vmul.f32 %v594_v8, %v5277_v54  ;;  %v526_v10 = vadd.f32 %v510_v18, %v473_v55  ;;  %v563_v11 = vmul.f32 %v594_v8, %v5294_v60 }
 0xe87   :  { %v401_v40 = vmul.f32 %v5249_v36, %v381_v1  ;;  %v459_v59 = vmul.f32 %v594_v8, %v5258_v45  ;;  %v476_v36 = vadd.f32 %v460_v27, %v5273_v53  ;;  %v566_v52 = vmul.f32 %v5686_v48, %v5294_v60 }
 0xe88   :  { %v5744_v12 = vadd.f32 %v614_v2, %v578_v29  ;;  %v527_v21 = vadd.f32 %v511_v13, %v474_v62  ;;  %v596_v22 = vld [vmem:[#allocation2 + $0x68] sm:$0xff]  ;;  %v579_v15 = vadd.f32 %v563_v11, %v526_v10  ;;  %v478_v50 = vadd.f32 %v462_v25, %v5273_v53 }
 0xe89   :  { %421 = vst.msk [vmem:[#allocation2 + $0x88] sm:$0xff] %vm173_vm0, %v401_v40  ;;  %782 = vrot.lane.b32.xlu1 %v594_v8, %s5008_s8  ;;  %v616_v33 = vmul.f32 %v5306_v4, %v596_v22  ;;  %v513_v26 = vmul.f32 %v596_v22, %v5277_v54  ;;  %v475_v42 = vadd.f32 %v459_v59, %v5273_v53 }
 0xe8a   :  { %v580_v16 = vadd.f32 %v564_v3, %v527_v21  ;;  %v5753_v5 = vadd.f32 %v615_v24, %v579_v15  ;;  %v565_v6 = vmul.f32 %v596_v22, %v5294_v60  ;;  %v461_v51 = vmul.f32 %v596_v22, %v5258_v45 }
 0xe8b   :  { %v529_v0 = vadd.f32 %v513_v26, %v476_v36  ;;  %v528_v31 = vadd.f32 %v512_v7, %v475_v42  ;;  %v514_v8 = vmul.f32 %v5686_v48, %v5277_v54  ;;  %v617_v1 = vmul.f32 %v5306_v4, %v5686_v48 }
 0xe8c   :  { %v5762_v37 = vadd.f32 %v616_v33, %v580_v16  ;;  %v598_v32 = vld [vmem:[#allocation2 + $0x78] sm:$0xff]  ;;  %v477_v55 = vadd.f32 %v461_v51, %v5273_v53  ;;  %v568_v29 = vmul.f32 %v5691_v41, %v5294_v60  ;;  %v619_v59 = vmul.f32 %v5306_v4, %v5691_v41 }
 0xe8d   :  { %786 = vrot.lane.b32.xlu1 %v596_v22, %s5008_s8  ;;  %v582_v39 = vadd.f32 %v566_v52, %v529_v0  ;;  %v618_v62 = vmul.f32 %v5306_v4, %v598_v32  ;;  %v515_v18 = vmul.f32 %v598_v32, %v5277_v54  ;;  %v581_v27 = vadd.f32 %v565_v6, %v528_v31 }
 0xe8e   :  { %v530_v10 = vadd.f32 %v514_v8, %v477_v55  ;;  %v567_v11 = vmul.f32 %v598_v32, %v5294_v60  ;;  %v463_v3 = vmul.f32 %v598_v32, %v5258_v45  ;;  %v516_v25 = vmul.f32 %v5691_v41, %v5277_v54 }
 0xe8f   :  { %v5775_v2 = vadd.f32 %v618_v62, %v582_v39  ;;  %v531_v13 = vadd.f32 %v515_v18, %v478_v50  ;;  %v5778_v40 = vadd.f32 %v617_v1, %v581_v27  ;;  %v621_v16 = vmul.f32 %v5306_v4, %v5695_v63 }
 0xe90   :  { %v600_v24 = vld [vmem:[#allocation2 + $0x88] sm:$0xff]  ;;  %v583_v22 = vadd.f32 %v567_v11, %v530_v10  ;;  %v479_v15 = vadd.f32 %v463_v3, %v5273_v53  ;;  %v1714_v0 = vsub.f32 0.0, %v5583_v49  ;;  %v644_v50 = vsub.f32 0.0, %v5722_v17 }
 0xe91   :  { %790 = vrot.lane.b32.xlu1 %v598_v32, %s5008_s8  ;;  %v584_v48 = vadd.f32 %v568_v29, %v531_v13  ;;  %v620_v21 = vmul.f32 %v5306_v4, %v600_v24  ;;  %v569_v33 = vmul.f32 %v600_v24, %v5294_v60  ;;  %v645_v4 = vsub.f32 0.0, %v5731_v23 }
 0xe92   :  { %v5791_v26 = vadd.f32 %v619_v59, %v583_v22  ;;  %v532_v45 = vadd.f32 %v516_v25, %v479_v15  ;;  %v1715_v54 = vmul.f32 1.442695, %v1714_v0  ;;  %v666_v63 = vmul.f32 1.442695, %v644_v50 }
 0xe93   :  { %v5789_v36 = vadd.f32 %v620_v21, %v584_v48  ;;  %v668_v31 = vmul.f32 1.442695, %v645_v4  ;;  %v646_v49 = vsub.f32 0.0, %v5744_v12  ;;  %v647_v8 = vsub.f32 0.0, %v5753_v5 }
 0xe94   :  { %v585_v7 = vadd.f32 %v569_v33, %v532_v45  ;;  %4528 = vpow2.f32 %v1715_v54  ;;  %v648_v62 = vsub.f32 0.0, %v5762_v37  ;;  %v649_v55 = vsub.f32 0.0, %v5778_v40 }
 0xe95   :  { %794 = vrot.lane.b32.xlu1 %v600_v24, %s5008_s8  ;;  %v670_v39 = vmul.f32 1.442695, %v646_v49  ;;  %v672_v18 = vmul.f32 1.442695, %v647_v8  ;;  %v650_v1 = vsub.f32 0.0, %v5775_v2  ;;  %v651_v10 = vsub.f32 0.0, %v5791_v26 }
 0xe96   :  { %v5796_v42 = vadd.f32 %v621_v16, %v585_v7  ;;  %v674_v29 = vmul.f32 1.442695, %v648_v62  ;;  %v676_v13 = vmul.f32 1.442695, %v649_v55  ;;  %v652_v59 = vsub.f32 0.0, %v5789_v36 }
 0xe97   :  { %v678_v11 = vmul.f32 1.442695, %v650_v1  ;;  %v680_v48 = vmul.f32 1.442695, %v651_v10 }
 0xe98   :  { %v653_v21 = vsub.f32 0.0, %v5796_v42  ;;  %v682_v25 = vmul.f32 1.442695, %v652_v59 }
 0xe9a   :  { %v684_v15 = vmul.f32 1.442695, %v653_v21 }
 0xe9e   :  { %v4529_v53 = vpop.eup %4528 }
 0xe9f   :  { %v1717_v41 = vadd.f32 1.0, %v4529_v53 }
 0xea1   :  { %4530 = vrcp.f32 %v1717_v41 }
 0xea2   :  { %4532 = vpow2.f32 %v666_v63 }
 0xea3   :  { %4534 = vpow2.f32 %v668_v31 }
 0xea4   :  { %4536 = vpow2.f32 %v670_v39 }
 0xea5   :  { %4538 = vpow2.f32 %v672_v18 }
 0xea6   :  { %4540 = vpow2.f32 %v674_v29 }
 0xea7   :  { %4542 = vpow2.f32 %v676_v13 }
 0xea8   :  { %4544 = vpow2.f32 %v678_v11 }
 0xeab   :  { %v4531_v52 = vpop.eup %4530 }
 0xeac   :  { %v4533_v27 = vpop.eup %4532 }
 0xead   :  { %v4535_v24 = vpop.eup %4534  ;;  %v692_v3 = vadd.f32 1.0, %v4533_v27 }
 0xeae   :  { %v693_v22 = vadd.f32 1.0, %v4535_v24  ;;  %v4537_v33 = vpop.eup %4536 }
 0xeaf   :  { %4546 = vrcp.f32 %v692_v3  ;;  %v4539_v45 = vpop.eup %4538  ;;  %v694_v16 = vadd.f32 1.0, %v4537_v33 }
 0xeb0   :  { %4548 = vpow2.f32 %v680_v48  ;;  %v4541_v7 = vpop.eup %4540  ;;  %v695_v0 = vadd.f32 1.0, %v4539_v45 }
 0xeb1   :  { %v1722_v60 = vpop.permute.xlu1 %1721  ;;  %4550 = vrcp.f32 %v693_v22  ;;  %v4543_v54 = vpop.eup %4542  ;;  %v696_v41 = vadd.f32 1.0, %v4541_v7 }
 0xeb2   :  { %v1724_v6 = vmul.f32 %v4531_v52, %v1722_v60  ;;  %4552 = vpow2.f32 %v682_v25  ;;  %v4545_v53 = vpop.eup %4544  ;;  %v697_v52 = vadd.f32 1.0, %v4543_v54 }
 0xeb3   :  { %4554 = vpow2.f32 %v684_v15 }
 0xeb4   :  { %4556 = vrcp.f32 %v694_v16 }
 0xeb5   :  { %4558 = vrcp.f32 %v695_v0 }
 0xeb6   :  { %4560 = vrcp.f32 %v696_v41 }
 0xeb7   :  { %4562 = vrcp.f32 %v697_v52 }
 0xeb9   :  { %v4547_v60 = vpop.eup %4546 }
 0xeba   :  { %v740_v63 = vmul.f32 %v4547_v60, %v5722_v17 }
 0xec2   :  { %v1727_v51 = vpop.permute.xlu0 %1726 }
 0xec3   :  { %v1729_v32 = vmul.f32 %v1727_v51, %v1724_v6  ;;  %v4549_v6 = vpop.eup %4548 }
 0xec4   :  { %v4551_v51 = vpop.eup %4550  ;;  %v699_v4 = vadd.f32 1.0, %v4549_v6 }
 0xec5   :  { %1733 = vrot.lane.b32.xlu1 %v1729_v32, %s5011_s27  ;;  %v698_v32 = vadd.f32 1.0, %v4545_v53  ;;  %v4553_v50 = vpop.eup %4552  ;;  %v741_v55 = vmul.f32 %v4551_v51, %v5731_v23 }
 0xec6   :  { %v4555_v31 = vpop.eup %4554  ;;  %v700_v62 = vadd.f32 1.0, %v4553_v50 }
 0xec7   :  { %4564 = vrcp.f32 %v698_v32  ;;  %v701_v18 = vadd.f32 1.0, %v4555_v31  ;;  %v4557_v1 = vpop.eup %4556 }
 0xec8   :  { %4566 = vrcp.f32 %v699_v4  ;;  %v4559_v27 = vpop.eup %4558  ;;  %v742_v10 = vmul.f32 %v4557_v1, %v5744_v12 }
 0xec9   :  { %4568 = vrcp.f32 %v700_v62  ;;  %v4561_v11 = vpop.eup %4560  ;;  %v743_v24 = vmul.f32 %v4559_v27, %v5753_v5  ;;  %v1038_v62 = vadd.f32 %v5580_v38, %v5341_v58 }
 0xeca   :  { %4570 = vrcp.f32 %v701_v18  ;;  %v4563_v59 = vpop.eup %4562  ;;  %v744_v21 = vmul.f32 %v4561_v11, %v5762_v37 }
 0xecb   :  { %v745_v25 = vmul.f32 %v4563_v59, %v5778_v40 }
 0xed1   :  { %v4565_v22 = vpop.eup %4564 }
 0xed2   :  { %v4567_v12 = vpop.eup %4566  ;;  %v746_v16 = vmul.f32 %v4565_v22, %v5775_v2 }
 0xed3   :  { %v4569_v7 = vpop.eup %4568  ;;  %v747_v0 = vmul.f32 %v4567_v12, %v5791_v26 }
 0xed4   :  { %v4571_v54 = vpop.eup %4570  ;;  %v748_v60 = vmul.f32 %v4569_v7, %v5789_v36 }
 0xed5   :  { %v749_v52 = vmul.f32 %v4571_v54, %v5796_v42 }
 0xedb   :  { %v785_v8 = vpop.permute.xlu0 %784 }
 0xedc   :  { %v823_v23 = vsel %vm173_vm0, %v743_v24, %v785_v8 }
 0xedf   :  { %v789_v17 = vpop.permute.xlu0 %788 }
 0xee0   :  { %v825_v45 = vsel %vm173_vm0, %v745_v25, %v789_v17 }
 0xee3   :  { %v793_v33 = vpop.permute.xlu0 %792 }
 0xee4   :  { %v827_v53 = vsel %vm173_vm0, %v747_v0, %v793_v33 }
 0xee7   :  { %v797_v41 = vpop.permute.xlu0 %796 }
 0xee8   :  { %v829_v26 = vsel %vm173_vm0, %v749_v52, %v797_v41 }
 0xef3   :  { %v779_v49 = vpop.permute.xlu1 %778 }
 0xef4   :  { %v820_v39 = vsel %vm173_vm0, %v740_v63, %v779_v49 }
 0xef5   :  { %3971 = vmatprep.mubr.msk.f32.mxu0 %vm835_vm2, %v820_v39 }
 0xef7   :  { %v781_v29 = vpop.permute.xlu1 %780 }
 0xef8   :  { %v821_v13 = vsel %vm173_vm0, %v741_v55, %v781_v29 }
 0xef9   :  { %3972 = vmatmul.mubr.msk.f32.gmra.mrb[6].mxu0 %vm835_vm2, %v821_v13 }
 0xefb   :  { %v783_v3 = vpop.permute.xlu1 %782 }
 0xefc   :  { %v822_v48 = vsel %vm173_vm0, %v742_v10, %v783_v3 }
 0xefd   :  { %3974 = vmatprep.mubr.msk.f32.mxu0 %vm835_vm2, %v822_v48 }
 0xefe   :  { %3975 = vmatmul.mubr.msk.f32.gmra.mrb[8].mxu0 %vm835_vm2, %v823_v23 }
 0xeff   :  { %v787_v15 = vpop.permute.xlu1 %786 }
 0xf00   :  { %v824_v5 = vsel %vm173_vm0, %v744_v21, %v787_v15 }
 0xf01   :  { %3977 = vmatprep.mubr.msk.f32.mxu0 %vm835_vm2, %v824_v5 }
 0xf02   :  { %3978 = vmatmul.mubr.msk.f32.gmra.mrb[10].mxu0 %vm835_vm2, %v825_v45 }
 0xf03   :  { %v791_v37 = vpop.permute.xlu1 %790 }
 0xf04   :  { %v826_v40 = vsel %vm173_vm0, %v746_v16, %v791_v37 }
 0xf05   :  { %3980 = vmatprep.mubr.msk.f32.mxu0 %vm835_vm2, %v826_v40 }
 0xf06   :  { %3981 = vmatmul.mubr.msk.f32.gmra.mrb[12].mxu0 %vm835_vm2, %v827_v53 }
 0xf07   :  { %v795_v6 = vpop.permute.xlu1 %794 }
 0xf08   :  { %v828_v2 = vsel %vm173_vm0, %v748_v60, %v795_v6 }
 0xf09   :  { %3983 = vmatprep.mubr.msk.f32.mxu0 %vm835_vm2, %v828_v2 }
 0xf0a   :  { %3984 = vmatmul.mubr.msk.f32.gmra.mrb[14].mxu0 %vm835_vm2, %v829_v26 }
 0xf0b   :  { %4049 = vmatprep.mubr.msk.f32.mxu0 %vm5007_vm1, %v5005_v14 }
 0xf37   :  { %v1734_v51 = vpop.permute.xlu1 %1733 }
 0xf38   :  { %4050 = vmatmul.mubr.msk.f32.vlgmr.msra.gmra.mrb[16].mxu0 %vm1070_vm3, %v1734_v51 }
 0xf39   :  { %4288 = vmatpush3.bf16.msra.mxu0 %v5244_v35  ;;  %4071 = vmatprep.mubr.msk.f32.mxu0 %vm5007_vm1, %v5005_v14 }
 0xf3a   :  { %4289 = vmatprep.subr.bf16.mxu0 %v5006_v20 }
 0xf3d   :  { %4291 = vmatpush3.bf16.msra.mxu0 %v5261_v47 }
 0xf3e   :  { %4298 = vmatprep.subr.bf16.mxu0 %v5006_v20 }
 0xfcc   :  { %v5849_v36 = vpop.f32.mrb[6].mxu0 }
 0xfcd   :  { %v5851_v42 = vpop.f32.mrb[7].mxu0 }
 0xfd1   :  { %v5853_v32 = vpop.f32.mrb[8].mxu0 }
 0xfd2   :  { %v5855_v50 = vpop.f32.mrb[9].mxu0 }
 0xfd5   :  { %v5857_v4 = vpop.f32.mrb[10].mxu0 }
 0xfd6   :  { %v5859_v63 = vpop.f32.mrb[11].mxu0 }
 0xfd9   :  { %v5861_v31 = vpop.f32.mrb[12].mxu0 }
 0xfda   :  { %v5863_v49 = vpop.f32.mrb[13].mxu0 }
 0xfdd   :  { %v5865_v8 = vpop.f32.mrb[14].mxu0 }
 0xfde   :  { %v5867_v39 = vpop.f32.mrb[15].mxu0 }
0x100b   :  { %v1803_v18 = vpop.f32.mrb[16].mxu0 }
0x100c   :  { %v1807_v55 = vadd.f32 %v1803_v18, %v1038_v62  ;;  %v4051_v1 = vpop.f32.mrb[17].mxu0 }
0x100e   :  { %4572 = vtanh.f32 %v1807_v55  ;;  %v1809_v29 = vand.u32 2147483647, %v1807_v55  ;;  %v1808_v3 = vmin.f32 %v1807_v55, 0.0  ;;  %v1843_v60 = vsub.f32 0.0, %v1807_v55 }
0x1010   :  { %v1810_v27 = vsub.f32 0.0, %v1809_v29  ;;  %v1844_v52 = vmul.f32 1.442695, %v1843_v60 }
0x1012   :  { %v1811_v13 = vmul.f32 1.442695, %v1810_v27 }
0x1014   :  { %4574 = vpow2.f32 %v1811_v13 }
0x1018   :  { %v4573_v17 = vpop.eup %4572 }
0x1019   :  { %1832 = vrot.lane.b32.xlu1 %v4573_v17, %s5010_s22 }
0x101e   :  { %v4575_v10 = vpop.eup %4574 }
0x101f   :  { %v1813_v11 = vadd.f32 1.0, %v4575_v10 }
0x1021   :  { %4576 = vlog2.f32 %v1813_v11 }
0x102b   :  { %v4577_v24 = vpop.eup %4576 }
0x102c   :  { %v1815_v59 = vmul.f32 0.6931472, %v4577_v24 }
0x102e   :  { %v1816_v48 = vsub.f32 %v1808_v3, %v1815_v59 }
0x1030   :  { %1818 = vrot.lane.b32.xlu0 %v1816_v48, %s5009_s21 }
0x108b   :  { %v1833_v5 = vpop.permute.xlu1 %1832 }
0x10a2   :  { %v1819_v38 = vpop.permute.xlu0 %1818 }
0x10a3   :  { %v1821_v23 = vadd.f32 %v1819_v38, %v5652_v43 }
0x10a5   :  { %v1822_v21 = vmax.f32 %v1807_v55, %v1821_v23 }
0x10a7   :  { %v1823_v22 = vsub.f32 %v1807_v55, %v1822_v21  ;;  %v1826_v25 = vsub.f32 %v1821_v23, %v1822_v21  ;;  %v1039_v55 = vadd.f32 %v5341_v58, %v5851_v42 }
0x10a9   :  { %v1824_v15 = vmul.f32 1.442695, %v1823_v22  ;;  %v1827_v12 = vmul.f32 1.442695, %v1826_v25 }
0x10ab   :  { %4578 = vpow2.f32 %v1824_v15 }
0x10ac   :  { %4580 = vpow2.f32 %v1827_v12 }
0x10b5   :  { %v4579_v33 = vpop.eup %4578 }
0x10b6   :  { %v4581_v45 = vpop.eup %4580  ;;  %v1835_v16 = vmul.f32 %v4579_v33, %v1833_v5 }
0x10b7   :  { %v1829_v7 = vmul.f32 %v4581_v45, %v5659_v9  ;;  %v1837_v0 = vmul.f32 %v4581_v45, %v5661_v19 }
0x10b9   :  { %v1836_v37 = vadd.f32 %v1835_v16, %v1829_v7  ;;  %v1838_v54 = vadd.f32 %v4579_v33, %v1837_v0 }
0x10bb   :  { %1850 = vrot.lane.b32.xlu0 %v1836_v37, %s5009_s21  ;;  %4582 = vrcp.f32 %v1838_v54 }
0x10bc   :  { %4584 = vpow2.f32 %v1844_v52 }
0x10c5   :  { %v4583_v43 = vpop.eup %4582 }
0x10c6   :  { %v1840_v40 = vmul.f32 %v4583_v43, %v1838_v54  ;;  %v4585_v6 = vpop.eup %4584 }
0x10c7   :  { %v1846_v2 = vadd.f32 1.0, %v4585_v6 }
0x10c8   :  { %v1841_v53 = vsub.f32 2.0, %v1840_v40 }
0x10c9   :  { %4586 = vrcp.f32 %v1846_v2 }
0x10ca   :  { %v1842_v41 = vmul.f32 %v4583_v43, %v1841_v53 }
0x10cc   :  { %1855 = vrot.lane.b32.xlu1 %v1842_v41, %s5009_s21 }
0x10d3   :  { %v4587_v26 = vpop.eup %4586 }
0x112d   :  { %v1851_v9 = vpop.permute.xlu0 %1850 }
0x112e   :  { %v1853_v19 = vmul.f32 %v4587_v26, %v1851_v9 }
0x113e   :  { %v1856_v51 = vpop.permute.xlu1 %1855 }
0x113f   :  { %v1858_v62 = vmul.f32 %v1856_v51, %v1853_v19 }
0x1141   :  { %1862 = vrot.lane.b32.xlu0 %v1858_v62, %s5011_s27 }
0x11b3   :  { %v1863_v18 = vpop.permute.xlu0 %1862 }
0x11b4   :  { %4061 = vmatmul.mubr.msk.f32.vlgmr.msra.gmra.mrb[10].mxu1 %vm1070_vm3, %v1863_v18 }
0x11b5   :  { %4294 = vmatpush3.bf16.msra.mxu1 %v5244_v35  ;;  %4082 = vmatprep.mubr.msk.f32.mxu1 %vm5007_vm1, %v5005_v14 }
0x11b6   :  { %4295 = vmatprep.subr.bf16.mxu1 %v5006_v20 }
0x11b9   :  { %4297 = vmatpush3.bf16.msra.mxu1 %v5261_v47 }
0x11ba   :  { %4304 = vmatprep.subr.bf16.mxu1 %v5006_v20 }
0x1287   :  { %v1932_v1 = vpop.f32.mrb[10].mxu1 }
0x1288   :  { %v1936_v29 = vadd.f32 %v1932_v1, %v1039_v55  ;;  %v4062_v27 = vpop.f32.mrb[11].mxu1  ;;  %v1040_v1 = vadd.f32 %v5849_v36, %v5341_v58 }
0x128a   :  { %4588 = vtanh.f32 %v1936_v29  ;;  %v1938_v13 = vand.u32 2147483647, %v1936_v29  ;;  %v1937_v48 = vmin.f32 %v1936_v29, 0.0  ;;  %v1972_v2 = vsub.f32 0.0, %v1936_v29 }
0x128c   :  { %v1939_v17 = vsub.f32 0.0, %v1938_v13  ;;  %v1973_v9 = vmul.f32 1.442695, %v1972_v2 }
0x128e   :  { %v1940_v10 = vmul.f32 1.442695, %v1939_v17 }
0x1290   :  { %4590 = vpow2.f32 %v1940_v10 }
0x1294   :  { %v4589_v11 = vpop.eup %4588 }
0x1295   :  { %1961 = vrot.lane.b32.xlu0 %v4589_v11, %s5010_s22 }
0x129a   :  { %v4591_v24 = vpop.eup %4590 }
0x129b   :  { %v1942_v3 = vadd.f32 1.0, %v4591_v24 }
0x129d   :  { %4592 = vlog2.f32 %v1942_v3 }
0x12a7   :  { %v4593_v59 = vpop.eup %4592 }
0x12a8   :  { %v1944_v38 = vmul.f32 0.6931472, %v4593_v59 }
0x12aa   :  { %v1945_v23 = vsub.f32 %v1937_v48, %v1944_v38 }
0x12ac   :  { %1947 = vrot.lane.b32.xlu1 %v1945_v23, %s5009_s21 }
0x1307   :  { %v1962_v16 = vpop.permute.xlu0 %1961 }
0x131e   :  { %v1948_v42 = vpop.permute.xlu1 %1947 }
0x131f   :  { %v1950_v22 = vadd.f32 %v1948_v42, %v1822_v21 }
0x1321   :  { %v1951_v25 = vmax.f32 %v1936_v29, %v1950_v22 }
0x1323   :  { %v1952_v15 = vsub.f32 %v1936_v29, %v1951_v25  ;;  %v1955_v12 = vsub.f32 %v1950_v22, %v1951_v25 }
0x1325   :  { %v1953_v33 = vmul.f32 1.442695, %v1952_v15  ;;  %v1956_v5 = vmul.f32 1.442695, %v1955_v12 }
0x1327   :  { %4594 = vpow2.f32 %v1953_v33 }
0x1328   :  { %4596 = vpow2.f32 %v1956_v5 }
0x1331   :  { %v4595_v45 = vpop.eup %4594 }
0x1332   :  { %v4597_v7 = vpop.eup %4596  ;;  %v1964_v0 = vmul.f32 %v4595_v45, %v1962_v16 }
0x1333   :  { %v1958_v43 = vmul.f32 %v4597_v7, %v1836_v37  ;;  %v1966_v40 = vmul.f32 %v4597_v7, %v1838_v54 }
0x1335   :  { %v1965_v53 = vadd.f32 %v1964_v0, %v1958_v43  ;;  %v1967_v41 = vadd.f32 %v4595_v45, %v1966_v40 }
0x1337   :  { %1979 = vrot.lane.b32.xlu1 %v1965_v53, %s5009_s21  ;;  %4598 = vrcp.f32 %v1967_v41 }
0x1338   :  { %4600 = vpow2.f32 %v1973_v9 }
0x1341   :  { %v4599_v60 = vpop.eup %4598 }
0x1342   :  { %v1969_v21 = vmul.f32 %v4599_v60, %v1967_v41  ;;  %v4601_v26 = vpop.eup %4600 }
0x1343   :  { %v1975_v19 = vadd.f32 1.0, %v4601_v26 }
0x1344   :  { %v1970_v52 = vsub.f32 2.0, %v1969_v21 }
0x1345   :  { %4602 = vrcp.f32 %v1975_v19 }
0x1346   :  { %v1971_v6 = vmul.f32 %v4599_v60, %v1970_v52 }
0x1348   :  { %1984 = vrot.lane.b32.xlu0 %v1971_v6, %s5009_s21 }
0x134f   :  { %v4603_v37 = vpop.eup %4602 }
0x13a9   :  { %v1980_v51 = vpop.permute.xlu1 %1979 }
0x13aa   :  { %v1982_v54 = vmul.f32 %v4603_v37, %v1980_v51 }
0x13ba   :  { %v1985_v62 = vpop.permute.xlu0 %1984 }
0x13bb   :  { %v1987_v18 = vmul.f32 %v1985_v62, %v1982_v54 }
0x13bd   :  { %1991 = vrot.lane.b32.xlu1 %v1987_v18, %s5011_s27 }
0x142f   :  { %v1992_v55 = vpop.permute.xlu1 %1991 }
0x1430   :  { %4072 = vmatmul.mubr.msk.f32.vlgmr.msra.gmra.mrb[18].mxu0 %vm1070_vm3, %v1992_v55 }
0x1431   :  { %4300 = vmatpush3.bf16.msra.mxu0 %v5244_v35  ;;  %4093 = vmatprep.mubr.msk.f32.mxu0 %vm5007_vm1, %v5005_v14 }
0x1432   :  { %4301 = vmatprep.subr.bf16.mxu0 %v5006_v20 }
0x1435   :  { %4303 = vmatpush3.bf16.msra.mxu0 %v5261_v47 }
0x1436   :  { %4310 = vmatprep.subr.bf16.mxu0 %v5006_v20 }
0x1503   :  { %v2061_v29 = vpop.f32.mrb[18].mxu0 }
0x1504   :  { %v2065_v27 = vadd.f32 %v2061_v29, %v1040_v1  ;;  %v4073_v13 = vpop.f32.mrb[19].mxu0  ;;  %v1041_v1 = vadd.f32 %v5341_v58, %v5855_v50 }
0x1506   :  { %4604 = vtanh.f32 %v2065_v27  ;;  %v2067_v17 = vand.u32 2147483647, %v2065_v27  ;;  %v2066_v38 = vmin.f32 %v2065_v27, 0.0  ;;  %v2101_v26 = vsub.f32 0.0, %v2065_v27 }
0x1508   :  { %v2068_v10 = vsub.f32 0.0, %v2067_v17  ;;  %v2102_v19 = vmul.f32 1.442695, %v2101_v26 }
0x150a   :  { %v2069_v11 = vmul.f32 1.442695, %v2068_v10 }
0x150c   :  { %4606 = vpow2.f32 %v2069_v11 }
0x1510   :  { %v4605_v24 = vpop.eup %4604 }
0x1511   :  { %2090 = vrot.lane.b32.xlu1 %v4605_v24, %s5010_s22 }
0x1516   :  { %v4607_v3 = vpop.eup %4606 }
0x1517   :  { %v2071_v59 = vadd.f32 1.0, %v4607_v3 }
0x1519   :  { %4608 = vlog2.f32 %v2071_v59 }
0x1523   :  { %v4609_v48 = vpop.eup %4608 }
0x1524   :  { %v2073_v23 = vmul.f32 0.6931472, %v4609_v48 }
0x1526   :  { %v2074_v42 = vsub.f32 %v2066_v38, %v2073_v23 }
0x1528   :  { %2076 = vrot.lane.b32.xlu0 %v2074_v42, %s5009_s21 }
0x1583   :  { %v2091_v7 = vpop.permute.xlu1 %2090 }
0x159a   :  { %v2077_v36 = vpop.permute.xlu0 %2076 }
0x159b   :  { %v2079_v22 = vadd.f32 %v2077_v36, %v1951_v25 }
0x159d   :  { %v2080_v15 = vmax.f32 %v2065_v27, %v2079_v22 }
0x159f   :  { %v2081_v12 = vsub.f32 %v2065_v27, %v2080_v15  ;;  %v2084_v33 = vsub.f32 %v2079_v22, %v2080_v15 }
0x15a1   :  { %v2082_v5 = vmul.f32 1.442695, %v2081_v12  ;;  %v2085_v45 = vmul.f32 1.442695, %v2084_v33 }
0x15a3   :  { %4610 = vpow2.f32 %v2082_v5 }
0x15a4   :  { %4612 = vpow2.f32 %v2085_v45 }
0x15ad   :  { %v4611_v16 = vpop.eup %4610 }
0x15ae   :  { %v4613_v0 = vpop.eup %4612  ;;  %v2093_v43 = vmul.f32 %v4611_v16, %v2091_v7 }
0x15af   :  { %v2087_v40 = vmul.f32 %v4613_v0, %v1965_v53  ;;  %v2095_v60 = vmul.f32 %v4613_v0, %v1967_v41 }
0x15b1   :  { %v2094_v21 = vadd.f32 %v2093_v43, %v2087_v40  ;;  %v2096_v52 = vadd.f32 %v4611_v16, %v2095_v60 }
0x15b3   :  { %2108 = vrot.lane.b32.xlu0 %v2094_v21, %s5009_s21  ;;  %4614 = vrcp.f32 %v2096_v52 }
0x15b4   :  { %4616 = vpow2.f32 %v2102_v19 }
0x15bd   :  { %v4615_v6 = vpop.eup %4614 }
0x15be   :  { %v2098_v25 = vmul.f32 %v4615_v6, %v2096_v52  ;;  %v4617_v51 = vpop.eup %4616 }
0x15bf   :  { %v2104_v37 = vadd.f32 1.0, %v4617_v51 }
0x15c0   :  { %v2099_v2 = vsub.f32 2.0, %v2098_v25 }
0x15c1   :  { %4618 = vrcp.f32 %v2104_v37 }
0x15c2   :  { %v2100_v9 = vmul.f32 %v4615_v6, %v2099_v2 }
0x15c4   :  { %2113 = vrot.lane.b32.xlu1 %v2100_v9, %s5009_s21 }
0x15cb   :  { %v4619_v53 = vpop.eup %4618 }
0x1625   :  { %v2109_v54 = vpop.permute.xlu0 %2108 }
0x1626   :  { %v2111_v41 = vmul.f32 %v4619_v53, %v2109_v54 }
0x1636   :  { %v2114_v62 = vpop.permute.xlu1 %2113 }
0x1637   :  { %v2116_v18 = vmul.f32 %v2114_v62, %v2111_v41 }
0x1639   :  { %2120 = vrot.lane.b32.xlu0 %v2116_v18, %s5011_s27 }
0x16ab   :  { %v2121_v55 = vpop.permute.xlu0 %2120 }
0x16ac   :  { %4083 = vmatmul.mubr.msk.f32.vlgmr.msra.gmra.mrb[12].mxu1 %vm1070_vm3, %v2121_v55  ;;  %v1042_v55 = vadd.f32 %v5853_v32, %v5341_v58 }
0x16ad   :  { %4306 = vmatpush3.bf16.msra.mxu1 %v5244_v35  ;;  %4104 = vmatprep.mubr.msk.f32.mxu1 %vm5007_vm1, %v5005_v14 }
0x16ae   :  { %4307 = vmatprep.subr.bf16.mxu1 %v5006_v20 }
0x16b1   :  { %4309 = vmatpush3.bf16.msra.mxu1 %v5261_v47 }
0x16b2   :  { %4316 = vmatprep.subr.bf16.mxu1 %v5006_v20 }
0x177f   :  { %v2190_v29 = vpop.f32.mrb[12].mxu1 }
0x1780   :  { %v2194_v27 = vadd.f32 %v2190_v29, %v1041_v1  ;;  %v4084_v13 = vpop.f32.mrb[13].mxu1 }
0x1782   :  { %4620 = vtanh.f32 %v2194_v27  ;;  %v2196_v17 = vand.u32 2147483647, %v2194_v27  ;;  %v2195_v38 = vmin.f32 %v2194_v27, 0.0  ;;  %v2230_v19 = vsub.f32 0.0, %v2194_v27 }
0x1784   :  { %v2197_v10 = vsub.f32 0.0, %v2196_v17  ;;  %v2231_v51 = vmul.f32 1.442695, %v2230_v19 }
0x1786   :  { %v2198_v11 = vmul.f32 1.442695, %v2197_v10 }
0x1788   :  { %4622 = vpow2.f32 %v2198_v11 }
0x178c   :  { %v4621_v24 = vpop.eup %4620 }
0x178d   :  { %2219 = vrot.lane.b32.xlu0 %v4621_v24, %s5010_s22 }
0x1792   :  { %v4623_v3 = vpop.eup %4622 }
0x1793   :  { %v2200_v59 = vadd.f32 1.0, %v4623_v3 }
0x1795   :  { %4624 = vlog2.f32 %v2200_v59 }
0x179f   :  { %v4625_v48 = vpop.eup %4624 }
0x17a0   :  { %v2202_v23 = vmul.f32 0.6931472, %v4625_v48 }
0x17a2   :  { %v2203_v42 = vsub.f32 %v2195_v38, %v2202_v23 }
0x17a4   :  { %2205 = vrot.lane.b32.xlu1 %v2203_v42, %s5009_s21 }
0x17ff   :  { %v2220_v7 = vpop.permute.xlu0 %2219 }
0x1816   :  { %v2206_v50 = vpop.permute.xlu1 %2205 }
0x1817   :  { %v2208_v36 = vadd.f32 %v2206_v50, %v2080_v15 }
0x1819   :  { %v2209_v22 = vmax.f32 %v2194_v27, %v2208_v36 }
0x181b   :  { %v2210_v12 = vsub.f32 %v2194_v27, %v2209_v22  ;;  %v2213_v33 = vsub.f32 %v2208_v36, %v2209_v22 }
0x181d   :  { %v2211_v5 = vmul.f32 1.442695, %v2210_v12  ;;  %v2214_v45 = vmul.f32 1.442695, %v2213_v33 }
0x181f   :  { %4626 = vpow2.f32 %v2211_v5 }
0x1820   :  { %4628 = vpow2.f32 %v2214_v45 }
0x1829   :  { %v4627_v16 = vpop.eup %4626 }
0x182a   :  { %v4629_v0 = vpop.eup %4628  ;;  %v2222_v43 = vmul.f32 %v4627_v16, %v2220_v7 }
0x182b   :  { %v2216_v40 = vmul.f32 %v4629_v0, %v2094_v21  ;;  %v2224_v60 = vmul.f32 %v4629_v0, %v2096_v52 }
0x182d   :  { %v2223_v6 = vadd.f32 %v2222_v43, %v2216_v40  ;;  %v2225_v25 = vadd.f32 %v4627_v16, %v2224_v60 }
0x182f   :  { %2237 = vrot.lane.b32.xlu1 %v2223_v6, %s5009_s21  ;;  %4630 = vrcp.f32 %v2225_v25 }
0x1830   :  { %4632 = vpow2.f32 %v2231_v51 }
0x1839   :  { %v4631_v2 = vpop.eup %4630 }
0x183a   :  { %v2227_v15 = vmul.f32 %v4631_v2, %v2225_v25  ;;  %v4633_v37 = vpop.eup %4632 }
0x183b   :  { %v2233_v54 = vadd.f32 1.0, %v4633_v37 }
0x183c   :  { %v2228_v9 = vsub.f32 2.0, %v2227_v15 }
0x183d   :  { %4634 = vrcp.f32 %v2233_v54 }
0x183e   :  { %v2229_v26 = vmul.f32 %v4631_v2, %v2228_v9 }
0x1840   :  { %2242 = vrot.lane.b32.xlu0 %v2229_v26, %s5009_s21 }
0x1847   :  { %v4635_v21 = vpop.eup %4634 }
0x18a1   :  { %v2238_v53 = vpop.permute.xlu1 %2237 }
0x18a2   :  { %v2240_v52 = vmul.f32 %v4635_v21, %v2238_v53 }
0x18b2   :  { %v2243_v41 = vpop.permute.xlu0 %2242 }
0x18b3   :  { %v2245_v62 = vmul.f32 %v2243_v41, %v2240_v52 }
0x18b5   :  { %2249 = vrot.lane.b32.xlu1 %v2245_v62, %s5011_s27  ;;  %v1043_v62 = vadd.f32 %v5341_v58, %v5859_v63 }
0x1927   :  { %v2250_v18 = vpop.permute.xlu1 %2249 }
0x1928   :  { %4094 = vmatmul.mubr.msk.f32.vlgmr.msra.gmra.mrb[20].mxu0 %vm1070_vm3, %v2250_v18 }
0x1929   :  { %4312 = vmatpush3.bf16.msra.mxu0 %v5244_v35  ;;  %4115 = vmatprep.mubr.msk.f32.mxu0 %vm5007_vm1, %v5005_v14 }
0x192a   :  { %4313 = vmatprep.subr.bf16.mxu0 %v5006_v20 }
0x192d   :  { %4315 = vmatpush3.bf16.msra.mxu0 %v5261_v47 }
0x192e   :  { %4322 = vmatprep.subr.bf16.mxu0 %v5006_v20 }
0x19fb   :  { %v2319_v1 = vpop.f32.mrb[20].mxu0 }
0x19fc   :  { %v2323_v29 = vadd.f32 %v2319_v1, %v1042_v55  ;;  %v4095_v27 = vpop.f32.mrb[21].mxu0 }
0x19fe   :  { %4636 = vtanh.f32 %v2323_v29  ;;  %v2325_v13 = vand.u32 2147483647, %v2323_v29  ;;  %v2324_v48 = vmin.f32 %v2323_v29, 0.0  ;;  %v2359_v19 = vsub.f32 0.0, %v2323_v29 }
0x1a00   :  { %v2326_v17 = vsub.f32 0.0, %v2325_v13  ;;  %v2360_v51 = vmul.f32 1.442695, %v2359_v19 }
0x1a02   :  { %v2327_v10 = vmul.f32 1.442695, %v2326_v17 }
0x1a04   :  { %4638 = vpow2.f32 %v2327_v10 }
0x1a08   :  { %v4637_v11 = vpop.eup %4636 }
0x1a09   :  { %2348 = vrot.lane.b32.xlu1 %v4637_v11, %s5010_s22 }
0x1a0e   :  { %v4639_v24 = vpop.eup %4638 }
0x1a0f   :  { %v2329_v3 = vadd.f32 1.0, %v4639_v24 }
0x1a11   :  { %4640 = vlog2.f32 %v2329_v3 }
0x1a1b   :  { %v4641_v59 = vpop.eup %4640 }
0x1a1c   :  { %v2331_v38 = vmul.f32 0.6931472, %v4641_v59 }
0x1a1e   :  { %v2332_v23 = vsub.f32 %v2324_v48, %v2331_v38 }
0x1a20   :  { %2334 = vrot.lane.b32.xlu0 %v2332_v23, %s5009_s21 }
0x1a7b   :  { %v2349_v16 = vpop.permute.xlu1 %2348 }
0x1a92   :  { %v2335_v32 = vpop.permute.xlu0 %2334 }
0x1a93   :  { %v2337_v42 = vadd.f32 %v2335_v32, %v2209_v22 }
0x1a95   :  { %v2338_v50 = vmax.f32 %v2323_v29, %v2337_v42 }
0x1a97   :  { %v2339_v36 = vsub.f32 %v2323_v29, %v2338_v50  ;;  %v2342_v12 = vsub.f32 %v2337_v42, %v2338_v50 }
0x1a99   :  { %v2340_v33 = vmul.f32 1.442695, %v2339_v36  ;;  %v2343_v5 = vmul.f32 1.442695, %v2342_v12 }
0x1a9b   :  { %4642 = vpow2.f32 %v2340_v33 }
0x1a9c   :  { %4644 = vpow2.f32 %v2343_v5 }
0x1aa5   :  { %v4643_v45 = vpop.eup %4642 }
0x1aa6   :  { %v4645_v7 = vpop.eup %4644  ;;  %v2351_v0 = vmul.f32 %v4643_v45, %v2349_v16 }
0x1aa7   :  { %v2353_v43 = vmul.f32 %v4645_v7, %v2225_v25  ;;  %v2345_v40 = vmul.f32 %v4645_v7, %v2223_v6 }
0x1aa9   :  { %v2352_v60 = vadd.f32 %v2351_v0, %v2345_v40  ;;  %v2354_v2 = vadd.f32 %v4643_v45, %v2353_v43 }
0x1aab   :  { %2366 = vrot.lane.b32.xlu0 %v2352_v60, %s5009_s21  ;;  %4646 = vrcp.f32 %v2354_v2 }
0x1aac   :  { %4648 = vpow2.f32 %v2360_v51 }
0x1ab5   :  { %v4647_v15 = vpop.eup %4646 }
0x1ab6   :  { %v2356_v22 = vmul.f32 %v4647_v15, %v2354_v2  ;;  %v4649_v37 = vpop.eup %4648 }
0x1ab7   :  { %v2362_v54 = vadd.f32 1.0, %v4649_v37 }
0x1ab8   :  { %v2357_v9 = vsub.f32 2.0, %v2356_v22 }
0x1ab9   :  { %4650 = vrcp.f32 %v2362_v54 }
0x1aba   :  { %v2358_v26 = vmul.f32 %v4647_v15, %v2357_v9 }
0x1abc   :  { %2371 = vrot.lane.b32.xlu1 %v2358_v26, %s5009_s21 }
0x1ac3   :  { %v4651_v25 = vpop.eup %4650 }
0x1b1d   :  { %v2367_v53 = vpop.permute.xlu0 %2366 }
0x1b1e   :  { %v2369_v6 = vmul.f32 %v4651_v25, %v2367_v53 }
0x1b2e   :  { %v2372_v21 = vpop.permute.xlu1 %2371 }
0x1b2f   :  { %v2374_v52 = vmul.f32 %v2372_v21, %v2369_v6  ;;  %v1044_v21 = vadd.f32 %v5857_v4, %v5341_v58 }
0x1b31   :  { %2378 = vrot.lane.b32.xlu0 %v2374_v52, %s5011_s27 }
0x1ba3   :  { %v2379_v41 = vpop.permute.xlu0 %2378 }
0x1ba4   :  { %4105 = vmatmul.mubr.msk.f32.vlgmr.msra.gmra.mrb[14].mxu1 %vm1070_vm3, %v2379_v41 }
0x1ba5   :  { %4318 = vmatpush3.bf16.msra.mxu1 %v5244_v35  ;;  %4126 = vmatprep.mubr.msk.f32.mxu1 %vm5007_vm1, %v5005_v14 }
0x1ba6   :  { %4319 = vmatprep.subr.bf16.mxu1 %v5006_v20 }
0x1ba9   :  { %4321 = vmatpush3.bf16.msra.mxu1 %v5261_v47 }
0x1baa   :  { %4328 = vmatprep.subr.bf16.mxu1 %v5006_v20 }
0x1c77   :  { %v2448_v18 = vpop.f32.mrb[14].mxu1 }
0x1c78   :  { %v2452_v55 = vadd.f32 %v2448_v18, %v1043_v62  ;;  %v4106_v1 = vpop.f32.mrb[15].mxu1 }
0x1c7a   :  { %4652 = vtanh.f32 %v2452_v55  ;;  %v2454_v29 = vand.u32 2147483647, %v2452_v55  ;;  %v2453_v3 = vmin.f32 %v2452_v55, 0.0  ;;  %v2488_v26 = vsub.f32 0.0, %v2452_v55 }
0x1c7c   :  { %v2455_v27 = vsub.f32 0.0, %v2454_v29  ;;  %v2489_v19 = vmul.f32 1.442695, %v2488_v26 }
0x1c7e   :  { %v2456_v13 = vmul.f32 1.442695, %v2455_v27 }
0x1c80   :  { %4654 = vpow2.f32 %v2456_v13 }
0x1c84   :  { %v4653_v17 = vpop.eup %4652 }
0x1c85   :  { %2477 = vrot.lane.b32.xlu0 %v4653_v17, %s5010_s22 }
0x1c8a   :  { %v4655_v10 = vpop.eup %4654 }
0x1c8b   :  { %v2458_v11 = vadd.f32 1.0, %v4655_v10 }
0x1c8d   :  { %4656 = vlog2.f32 %v2458_v11 }
0x1c97   :  { %v4657_v24 = vpop.eup %4656 }
0x1c98   :  { %v2460_v59 = vmul.f32 0.6931472, %v4657_v24 }
0x1c9a   :  { %v2461_v48 = vsub.f32 %v2453_v3, %v2460_v59 }
0x1c9c   :  { %2463 = vrot.lane.b32.xlu1 %v2461_v48, %s5009_s21 }
0x1cf7   :  { %v2478_v5 = vpop.permute.xlu0 %2477 }
0x1d0e   :  { %v2464_v63 = vpop.permute.xlu1 %2463 }
0x1d0f   :  { %v2466_v38 = vadd.f32 %v2464_v63, %v2338_v50 }
0x1d11   :  { %v2467_v23 = vmax.f32 %v2452_v55, %v2466_v38 }
0x1d13   :  { %v2468_v32 = vsub.f32 %v2452_v55, %v2467_v23  ;;  %v2471_v42 = vsub.f32 %v2466_v38, %v2467_v23 }
0x1d15   :  { %v2469_v36 = vmul.f32 1.442695, %v2468_v32  ;;  %v2472_v12 = vmul.f32 1.442695, %v2471_v42 }
0x1d17   :  { %4658 = vpow2.f32 %v2469_v36 }
0x1d18   :  { %4660 = vpow2.f32 %v2472_v12 }
0x1d21   :  { %v4659_v33 = vpop.eup %4658 }
0x1d22   :  { %v4661_v45 = vpop.eup %4660  ;;  %v2480_v16 = vmul.f32 %v4659_v33, %v2478_v5 }
0x1d23   :  { %v2482_v7 = vmul.f32 %v4661_v45, %v2354_v2  ;;  %v2474_v0 = vmul.f32 %v4661_v45, %v2352_v60 }
0x1d25   :  { %v2481_v43 = vadd.f32 %v2480_v16, %v2474_v0  ;;  %v2483_v40 = vadd.f32 %v4659_v33, %v2482_v7 }
0x1d27   :  { %2495 = vrot.lane.b32.xlu1 %v2481_v43, %s5009_s21  ;;  %4662 = vrcp.f32 %v2483_v40 }
0x1d28   :  { %4664 = vpow2.f32 %v2489_v19 }
0x1d31   :  { %v4663_v15 = vpop.eup %4662 }
0x1d32   :  { %v2485_v50 = vmul.f32 %v4663_v15, %v2483_v40  ;;  %v4665_v51 = vpop.eup %4664 }
0x1d33   :  { %v2491_v37 = vadd.f32 1.0, %v4665_v51 }
0x1d34   :  { %v2486_v22 = vsub.f32 2.0, %v2485_v50 }
0x1d35   :  { %4666 = vrcp.f32 %v2491_v37 }
0x1d36   :  { %v2487_v9 = vmul.f32 %v4663_v15, %v2486_v22 }
0x1d38   :  { %2500 = vrot.lane.b32.xlu0 %v2487_v9, %s5009_s21 }
0x1d3f   :  { %v4667_v2 = vpop.eup %4666 }
0x1d99   :  { %v2496_v54 = vpop.permute.xlu1 %2495 }
0x1d9a   :  { %v2498_v60 = vmul.f32 %v4667_v2, %v2496_v54 }
0x1daa   :  { %v2501_v53 = vpop.permute.xlu0 %2500 }
0x1dab   :  { %v2503_v25 = vmul.f32 %v2501_v53, %v2498_v60  ;;  %v1045_v60 = vadd.f32 %v5341_v58, %v5863_v49 }
0x1dad   :  { %2507 = vrot.lane.b32.xlu1 %v2503_v25, %s5011_s27 }
0x1e1f   :  { %v2508_v6 = vpop.permute.xlu1 %2507 }
0x1e20   :  { %4116 = vmatmul.mubr.msk.f32.vlgmr.msra.gmra.mrb[22].mxu0 %vm1070_vm3, %v2508_v6 }
0x1e21   :  { %4324 = vmatpush3.bf16.msra.mxu0 %v5244_v35  ;;  %4137 = vmatprep.mubr.msk.f32.mxu0 %vm5007_vm1, %v5005_v14 }
0x1e22   :  { %4325 = vmatprep.subr.bf16.mxu0 %v5006_v20 }
0x1e25   :  { %4327 = vmatpush3.bf16.msra.mxu0 %v5261_v47 }
0x1e26   :  { %4334 = vmatprep.subr.bf16.mxu0 %v5006_v20 }
0x1ef3   :  { %v2577_v52 = vpop.f32.mrb[22].mxu0 }
0x1ef4   :  { %v2581_v41 = vadd.f32 %v2577_v52, %v1044_v21  ;;  %v4117_v62 = vpop.f32.mrb[23].mxu0 }
0x1ef6   :  { %4668 = vtanh.f32 %v2581_v41  ;;  %v2583_v18 = vand.u32 2147483647, %v2581_v41  ;;  %v2582_v10 = vmin.f32 %v2581_v41, 0.0  ;;  %v2617_v22 = vsub.f32 0.0, %v2581_v41 }
0x1ef8   :  { %v2584_v55 = vsub.f32 0.0, %v2583_v18  ;;  %v2618_v9 = vmul.f32 1.442695, %v2617_v22 }
0x1efa   :  { %v2585_v1 = vmul.f32 1.442695, %v2584_v55 }
0x1efc   :  { %4670 = vpow2.f32 %v2585_v1 }
0x1f00   :  { %v4669_v29 = vpop.eup %4668 }
0x1f01   :  { %2606 = vrot.lane.b32.xlu1 %v4669_v29, %s5010_s22 }
0x1f06   :  { %v4671_v27 = vpop.eup %4670 }
0x1f07   :  { %v2587_v13 = vadd.f32 1.0, %v4671_v27 }
0x1f09   :  { %4672 = vlog2.f32 %v2587_v13 }
0x1f13   :  { %v4673_v17 = vpop.eup %4672 }
0x1f14   :  { %v2589_v11 = vmul.f32 0.6931472, %v4673_v17 }
0x1f16   :  { %v2590_v24 = vsub.f32 %v2582_v10, %v2589_v11 }
0x1f18   :  { %2592 = vrot.lane.b32.xlu0 %v2590_v24, %s5009_s21 }
0x1f73   :  { %v2607_v36 = vpop.permute.xlu1 %2606 }
0x1f8a   :  { %v2593_v4 = vpop.permute.xlu0 %2592 }
0x1f8b   :  { %v2595_v3 = vadd.f32 %v2593_v4, %v2467_v23 }
0x1f8d   :  { %v2596_v59 = vmax.f32 %v2581_v41, %v2595_v3 }
0x1f8f   :  { %v2597_v48 = vsub.f32 %v2581_v41, %v2596_v59  ;;  %v2600_v63 = vsub.f32 %v2595_v3, %v2596_v59 }
0x1f91   :  { %v2598_v38 = vmul.f32 1.442695, %v2597_v48  ;;  %v2601_v32 = vmul.f32 1.442695, %v2600_v63 }
0x1f93   :  { %4674 = vpow2.f32 %v2598_v38 }
0x1f94   :  { %4676 = vpow2.f32 %v2601_v32 }
0x1f9d   :  { %v4675_v42 = vpop.eup %4674 }
0x1f9e   :  { %v4677_v12 = vpop.eup %4676  ;;  %v2609_v33 = vmul.f32 %v4675_v42, %v2607_v36 }
0x1f9f   :  { %v2611_v5 = vmul.f32 %v4677_v12, %v2483_v40  ;;  %v2603_v45 = vmul.f32 %v4677_v12, %v2481_v43 }
0x1fa1   :  { %v2610_v16 = vadd.f32 %v2609_v33, %v2603_v45  ;;  %v2612_v7 = vadd.f32 %v4675_v42, %v2611_v5 }
0x1fa3   :  { %2624 = vrot.lane.b32.xlu0 %v2610_v16, %s5009_s21  ;;  %4678 = vrcp.f32 %v2612_v7 }
0x1fa4   :  { %4680 = vpow2.f32 %v2618_v9 }
0x1fad   :  { %v4679_v0 = vpop.eup %4678 }
0x1fae   :  { %v2614_v23 = vmul.f32 %v4679_v0, %v2612_v7  ;;  %v4681_v26 = vpop.eup %4680 }
0x1faf   :  { %v2620_v19 = vadd.f32 1.0, %v4681_v26 }
0x1fb0   :  { %v2615_v15 = vsub.f32 2.0, %v2614_v23 }
0x1fb1   :  { %4682 = vrcp.f32 %v2620_v19 }
0x1fb2   :  { %v2616_v50 = vmul.f32 %v4679_v0, %v2615_v15 }
0x1fb4   :  { %2629 = vrot.lane.b32.xlu1 %v2616_v50, %s5009_s21 }
0x1fbb   :  { %v4683_v40 = vpop.eup %4682 }
0x2015   :  { %v2625_v51 = vpop.permute.xlu0 %2624 }
0x2016   :  { %v2627_v43 = vmul.f32 %v4683_v40, %v2625_v51  ;;  %v1046_v40 = vadd.f32 %v5861_v31, %v5341_v58 }
0x2026   :  { %v2630_v37 = vpop.permute.xlu1 %2629 }
0x2027   :  { %v2632_v54 = vmul.f32 %v2630_v37, %v2627_v43 }
0x2029   :  { %2636 = vrot.lane.b32.xlu0 %v2632_v54, %s5011_s27 }
0x209b   :  { %v2637_v2 = vpop.permute.xlu0 %2636 }
0x209c   :  { %4127 = vmatmul.mubr.msk.f32.vlgmr.msra.gmra.mrb[16].mxu1 %vm1070_vm3, %v2637_v2 }
0x209d   :  { %4330 = vmatpush3.bf16.msra.mxu1 %v5244_v35  ;;  %4148 = vmatprep.mubr.msk.f32.mxu1 %vm5007_vm1, %v5005_v14 }
0x209e   :  { %4331 = vmatprep.subr.bf16.mxu1 %v5006_v20 }
0x20a1   :  { %4333 = vmatpush3.bf16.msra.mxu1 %v5261_v47 }
0x20a2   :  { %4346 = vmatprep.subr.bf16.mxu1 %v5006_v20 }
0x216f   :  { %v2706_v53 = vpop.f32.mrb[16].mxu1 }
0x2170   :  { %v2710_v25 = vadd.f32 %v2706_v53, %v1045_v60  ;;  %v4128_v6 = vpop.f32.mrb[17].mxu1 }
0x2172   :  { %4684 = vtanh.f32 %v2710_v25  ;;  %v2712_v21 = vand.u32 2147483647, %v2710_v25  ;;  %v2711_v29 = vmin.f32 %v2710_v25, 0.0  ;;  %v2746_v23 = vsub.f32 0.0, %v2710_v25 }
0x2174   :  { %v2713_v52 = vsub.f32 0.0, %v2712_v21  ;;  %v2747_v15 = vmul.f32 1.442695, %v2746_v23 }
0x2176   :  { %v2714_v41 = vmul.f32 1.442695, %v2713_v52 }
0x2178   :  { %4686 = vpow2.f32 %v2714_v41 }
0x217c   :  { %v4685_v62 = vpop.eup %4684 }
0x217d   :  { %2735 = vrot.lane.b32.xlu0 %v4685_v62, %s5010_s22 }
0x2182   :  { %v4687_v18 = vpop.eup %4686 }
0x2183   :  { %v2716_v55 = vadd.f32 1.0, %v4687_v18 }
0x2185   :  { %4688 = vlog2.f32 %v2716_v55 }
0x218f   :  { %v4689_v1 = vpop.eup %4688 }
0x2190   :  { %v2718_v27 = vmul.f32 0.6931472, %v4689_v1 }
0x2192   :  { %v2719_v13 = vsub.f32 %v2711_v29, %v2718_v27 }
0x2194   :  { %2721 = vrot.lane.b32.xlu1 %v2719_v13, %s5009_s21 }
0x21ef   :  { %v2736_v63 = vpop.permute.xlu0 %2735 }
0x2206   :  { %v2722_v49 = vpop.permute.xlu1 %2721 }
0x2207   :  { %v2724_v17 = vadd.f32 %v2722_v49, %v2596_v59 }
0x2209   :  { %v2725_v10 = vmax.f32 %v2710_v25, %v2724_v17 }
0x220b   :  { %v2726_v11 = vsub.f32 %v2710_v25, %v2725_v10  ;;  %v2729_v24 = vsub.f32 %v2724_v17, %v2725_v10 }
0x220d   :  { %v2727_v4 = vmul.f32 1.442695, %v2726_v11  ;;  %v2730_v3 = vmul.f32 1.442695, %v2729_v24 }
0x220f   :  { %4690 = vpow2.f32 %v2727_v4 }
0x2210   :  { %4692 = vpow2.f32 %v2730_v3 }
0x2219   :  { %v4691_v48 = vpop.eup %4690 }
0x221a   :  { %v4693_v38 = vpop.eup %4692  ;;  %v2738_v32 = vmul.f32 %v4691_v48, %v2736_v63 }
0x221b   :  { %v2740_v42 = vmul.f32 %v4693_v38, %v2612_v7  ;;  %v2732_v36 = vmul.f32 %v4693_v38, %v2610_v16 }
0x221d   :  { %v2739_v12 = vadd.f32 %v2738_v32, %v2732_v36  ;;  %v2741_v33 = vadd.f32 %v4691_v48, %v2740_v42 }
0x221f   :  { %2753 = vrot.lane.b32.xlu1 %v2739_v12, %s5009_s21  ;;  %4694 = vrcp.f32 %v2741_v33 }
0x2220   :  { %4696 = vpow2.f32 %v2747_v15 }
0x2229   :  { %v4695_v5 = vpop.eup %4694 }
0x222a   :  { %v2743_v59 = vmul.f32 %v4695_v5, %v2741_v33  ;;  %v4697_v50 = vpop.eup %4696 }
0x222b   :  { %v2749_v22 = vadd.f32 1.0, %v4697_v50  ;;  %v1047_v50 = vadd.f32 %v5341_v58, %v5867_v39 }
0x222c   :  { %v2744_v45 = vsub.f32 2.0, %v2743_v59 }
0x222d   :  { %4698 = vrcp.f32 %v2749_v22 }
0x222e   :  { %v2745_v0 = vmul.f32 %v4695_v5, %v2744_v45 }
0x2230   :  { %2758 = vrot.lane.b32.xlu0 %v2745_v0, %s5009_s21 }
0x2237   :  { %v4699_v7 = vpop.eup %4698 }
0x2291   :  { %v2754_v9 = vpop.permute.xlu1 %2753 }
0x2292   :  { %v2756_v16 = vmul.f32 %v4699_v7, %v2754_v9 }
0x22a2   :  { %v2759_v26 = vpop.permute.xlu0 %2758 }
0x22a3   :  { %v2761_v19 = vmul.f32 %v2759_v26, %v2756_v16 }
0x22a5   :  { %2765 = vrot.lane.b32.xlu1 %v2761_v19, %s5011_s27 }
0x2317   :  { %v2766_v51 = vpop.permute.xlu1 %2765 }
0x2318   :  { %4138 = vmatmul.mubr.msk.f32.vlgmr.msra.gmra.mrb[24].mxu0 %vm1070_vm3, %v2766_v51 }
0x2319   :  { %4336 = vmatpush3.bf16.msra.mxu0 %v5244_v35  ;;  %4159 = vmatprep.mubr.msk.f32.mxu0 %vm5007_vm1, %v5005_v14 }
0x231a   :  { %4337 = vmatprep.subr.bf16.mxu0 %v5006_v20 }
0x231d   :  { %4339 = vmatpush3.bf16.msra.mxu0 %v5261_v47 }
0x231e   :  { %4340 = vmatprep.subr.bf16.mxu0 %v5006_v20 }
0x23eb   :  { %v2835_v43 = vpop.f32.mrb[24].mxu0 }
0x23ec   :  { %v2839_v37 = vadd.f32 %v2835_v43, %v1046_v40  ;;  %v4139_v54 = vpop.f32.mrb[25].mxu0 }
0x23ee   :  { %4700 = vtanh.f32 %v2839_v37  ;;  %v2841_v2 = vand.u32 2147483647, %v2839_v37  ;;  %v2840_v21 = vmin.f32 %v2839_v37, 0.0  ;;  %v2875_v42 = vsub.f32 0.0, %v2839_v37 }
0x23f0   :  { %v2842_v60 = vsub.f32 0.0, %v2841_v2  ;;  %v2876_v36 = vmul.f32 1.442695, %v2875_v42 }
0x23f2   :  { %v2843_v53 = vmul.f32 1.442695, %v2842_v60 }
0x23f4   :  { %4702 = vpow2.f32 %v2843_v53 }
0x23f8   :  { %v4701_v35 = vpop.eup %4700 }
0x23f9   :  { %2864 = vrot.lane.b32.xlu1 %v4701_v35, %s5010_s22 }
0x23fe   :  { %v4703_v25 = vpop.eup %4702 }
0x23ff   :  { %v2845_v6 = vadd.f32 1.0, %v4703_v25 }
0x2401   :  { %4704 = vlog2.f32 %v2845_v6 }
0x240b   :  { %v4705_v47 = vpop.eup %4704 }
0x240c   :  { %v2847_v52 = vmul.f32 0.6931472, %v4705_v47 }
0x240e   :  { %v2848_v41 = vsub.f32 %v2840_v21, %v2847_v52 }
0x2410   :  { %2850 = vrot.lane.b32.xlu0 %v2848_v41, %s5009_s21 }
0x246b   :  { %v2865_v49 = vpop.permute.xlu1 %2864 }
0x2482   :  { %v2851_v31 = vpop.permute.xlu0 %2850 }
0x2483   :  { %v2853_v62 = vadd.f32 %v2851_v31, %v2725_v10 }
0x2485   :  { %v2854_v18 = vmax.f32 %v2839_v37, %v2853_v62 }
0x2487   :  { %v2855_v55 = vsub.f32 %v2839_v37, %v2854_v18  ;;  %v2858_v1 = vsub.f32 %v2853_v62, %v2854_v18 }
0x2489   :  { %v2856_v29 = vmul.f32 1.442695, %v2855_v55  ;;  %v2859_v27 = vmul.f32 1.442695, %v2858_v1 }
0x248b   :  { %4706 = vpow2.f32 %v2856_v29 }
0x248c   :  { %4708 = vpow2.f32 %v2859_v27 }
0x2495   :  { %v4707_v13 = vpop.eup %4706 }
0x2496   :  { %v4709_v17 = vpop.eup %4708  ;;  %v2867_v11 = vmul.f32 %v4707_v13, %v2865_v49 }
0x2497   :  { %v2869_v24 = vmul.f32 %v4709_v17, %v2741_v33  ;;  %v2861_v4 = vmul.f32 %v4709_v17, %v2739_v12 }
0x2499   :  { %v2868_v3 = vadd.f32 %v2867_v11, %v2861_v4  ;;  %v2870_v48 = vadd.f32 %v4707_v13, %v2869_v24 }
0x249b   :  { %2882 = vrot.lane.b32.xlu0 %v2868_v3, %s5009_s21  ;;  %4710 = vrcp.f32 %v2870_v48 }
0x249c   :  { %4712 = vpow2.f32 %v2876_v36  ;;  %v1048_v36 = vadd.f32 %v5865_v8, %v5341_v58 }
0x24a5   :  { %v4711_v63 = vpop.eup %4710 }
0x24a6   :  { %v2872_v10 = vmul.f32 %v4711_v63, %v2870_v48  ;;  %v4713_v5 = vpop.eup %4712 }
0x24a7   :  { %v2878_v59 = vadd.f32 1.0, %v4713_v5 }
0x24a8   :  { %v2873_v38 = vsub.f32 2.0, %v2872_v10 }
0x24a9   :  { %4714 = vrcp.f32 %v2878_v59 }
0x24aa   :  { %v2874_v32 = vmul.f32 %v4711_v63, %v2873_v38 }
0x24ac   :  { %2887 = vrot.lane.b32.xlu1 %v2874_v32, %s5009_s21 }
0x24b3   :  { %v4715_v33 = vpop.eup %4714 }
0x250d   :  { %v2883_v45 = vpop.permute.xlu0 %2882 }
0x250e   :  { %v2885_v12 = vmul.f32 %v4715_v33, %v2883_v45 }
0x251e   :  { %v2888_v0 = vpop.permute.xlu1 %2887 }
0x251f   :  { %v2890_v23 = vmul.f32 %v2888_v0, %v2885_v12 }
0x2521   :  { %2894 = vrot.lane.b32.xlu0 %v2890_v23, %s5011_s27 }
0x2593   :  { %v2895_v15 = vpop.permute.xlu0 %2894 }
0x2594   :  { %4149 = vmatmul.mubr.msk.f32.vlgmr.msra.gmra.mrb[18].mxu1 %vm1070_vm3, %v2895_v15 }
0x2595   :  { %4186 = vmatprep.mubr.msk.f32.mxu1 %vm5007_vm1, %v5005_v14 }
0x2667   :  { %v2964_v22 = vpop.f32.mrb[18].mxu1 }
0x2668   :  { %v2968_v9 = vadd.f32 %v2964_v22, %v1047_v50  ;;  %v4150_v7 = vpop.f32.mrb[19].mxu1 }
0x266a   :  { %4716 = vtanh.f32 %v2968_v9  ;;  %v2970_v16 = vand.u32 2147483647, %v2968_v9  ;;  %v2969_v54 = vmin.f32 %v2968_v9, 0.0  ;;  %v3004_v11 = vsub.f32 0.0, %v2968_v9 }
0x266c   :  { %v2971_v26 = vsub.f32 0.0, %v2970_v16  ;;  %v3005_v24 = vmul.f32 1.442695, %v3004_v11 }
0x266e   :  { %v2972_v19 = vmul.f32 1.442695, %v2971_v26 }
0x2670   :  { %4718 = vpow2.f32 %v2972_v19 }
0x2674   :  { %v4717_v51 = vpop.eup %4716 }
0x2675   :  { %2993 = vrot.lane.b32.xlu0 %v4717_v51, %s5010_s22 }
0x267a   :  { %v4719_v40 = vpop.eup %4718 }
0x267b   :  { %v2974_v43 = vadd.f32 1.0, %v4719_v40 }
0x267d   :  { %4720 = vlog2.f32 %v2974_v43 }
0x2687   :  { %v4721_v37 = vpop.eup %4720 }
0x2688   :  { %v2976_v2 = vmul.f32 0.6931472, %v4721_v37 }
0x268a   :  { %v2977_v60 = vsub.f32 %v2969_v54, %v2976_v2 }
0x268c   :  { %2979 = vrot.lane.b32.xlu1 %v2977_v60, %s5009_s21 }
0x26e7   :  { %v2994_v41 = vpop.permute.xlu0 %2993 }
0x26fe   :  { %v2980_v39 = vpop.permute.xlu1 %2979 }
0x26ff   :  { %v2982_v53 = vadd.f32 %v2980_v39, %v2854_v18 }
0x2701   :  { %v2983_v35 = vmax.f32 %v2968_v9, %v2982_v53 }
0x2703   :  { %v2984_v25 = vsub.f32 %v2968_v9, %v2983_v35  ;;  %v2987_v6 = vsub.f32 %v2982_v53, %v2983_v35 }
0x2705   :  { %v2985_v47 = vmul.f32 1.442695, %v2984_v25  ;;  %v2988_v21 = vmul.f32 1.442695, %v2987_v6 }
0x2707   :  { %4722 = vpow2.f32 %v2985_v47  ;;  %v3149_v47 = vld [vmem:[#allocation12] sm:$0xff] }
0x2708   :  { %4724 = vpow2.f32 %v2988_v21 }
0x2711   :  { %v4723_v52 = vpop.eup %4722 }
0x2712   :  { %v4725_v31 = vpop.eup %4724  ;;  %v2996_v62 = vmul.f32 %v4723_v52, %v2994_v41  ;;  %v3151_v41 = vld [vmem:[#allocation12 + $0x10] sm:$0xf] }
0x2713   :  { %v2998_v55 = vmul.f32 %v4725_v31, %v2870_v48  ;;  %v2990_v1 = vmul.f32 %v4725_v31, %v2868_v3 }
0x2715   :  { %v2997_v29 = vadd.f32 %v2996_v62, %v2990_v1  ;;  %v2999_v27 = vadd.f32 %v4723_v52, %v2998_v55 }
0x2717   :  { %3011 = vrot.lane.b32.xlu1 %v2997_v29, %s5009_s21  ;;  %4726 = vrcp.f32 %v2999_v27 }
0x2718   :  { %4728 = vpow2.f32 %v3005_v24 }
0x2721   :  { %v4727_v13 = vpop.eup %4726 }
0x2722   :  { %v3001_v18 = vmul.f32 %v4727_v13, %v2999_v27  ;;  %v4729_v4 = vpop.eup %4728 }
0x2723   :  { %v3007_v63 = vadd.f32 1.0, %v4729_v4 }
0x2724   :  { %v3002_v49 = vsub.f32 2.0, %v3001_v18 }
0x2725   :  { %4730 = vrcp.f32 %v3007_v63 }
0x2726   :  { %v3003_v17 = vmul.f32 %v4727_v13, %v3002_v49 }
0x2728   :  { %3016 = vrot.lane.b32.xlu0 %v3003_v17, %s5009_s21 }
0x272f   :  { %v4731_v48 = vpop.eup %4730 }
0x2789   :  { %v3012_v10 = vpop.permute.xlu1 %3011 }
0x278a   :  { %v3014_v3 = vmul.f32 %v4731_v48, %v3012_v10 }
0x279a   :  { %v3017_v38 = vpop.permute.xlu0 %3016 }
0x279b   :  { %v3019_v32 = vmul.f32 %v3017_v38, %v3014_v3 }
0x279d   :  { %3023 = vrot.lane.b32.xlu1 %v3019_v32, %s5011_s27 }
0x280f   :  { %v3024_v42 = vpop.permute.xlu1 %3023 }
0x2810   :  { %4160 = vmatmul.mubr.msk.f32.vlgmr.msra.gmra.mrb[26].mxu0 %vm1070_vm3, %v3024_v42  ;;  %v3320_v42 = vsub.s32 3, %v5238_v28 }
0x2811   :  { %4168 = vmatprep.mubr.msk.f32.mxu0 %vm5007_vm1, %v5005_v14 }
0x28e3   :  { %v3093_v5 = vpop.f32.mrb[26].mxu0 }
0x28e4   :  { %v3097_v59 = vadd.f32 %v3093_v5, %v1048_v36  ;;  %v4161_v45 = vpop.f32.mrb[27].mxu0  ;;  %v6026_v36 = vld [vmem:[#allocation7] sm:$0xff] }
0x28e5   :  { %v3321_v5 = vrot.slane %v6026_v36, %v3320_v42 }
0x28e6   :  { %4732 = vtanh.f32 %v3097_v59  ;;  %v3099_v33 = vand.u32 2147483647, %v3097_v59  ;;  %v3098_v9 = vmin.f32 %v3097_v59, 0.0  ;;  %v3133_v1 = vsub.f32 0.0, %v3097_v59 }
0x28e8   :  { %v3100_v12 = vsub.f32 0.0, %v3099_v33 }
0x28ea   :  { %v3101_v0 = vmul.f32 1.442695, %v3100_v12 }
0x28ec   :  { %4734 = vpow2.f32 %v3101_v0 }
0x28f0   :  { %v4733_v23 = vpop.eup %4732 }
0x28f1   :  { %3122 = vrot.lane.b32.xlu1 %v4733_v23, %s5010_s22 }
0x28f6   :  { %v4735_v15 = vpop.eup %4734 }
0x28f7   :  { %v3103_v50 = vadd.f32 1.0, %v4735_v15 }
0x28f9   :  { %4736 = vlog2.f32 %v3103_v50 }
0x2903   :  { %v4737_v22 = vpop.eup %4736 }
0x2904   :  { %v3105_v7 = vmul.f32 0.6931472, %v4737_v22  ;;  %v3328_v22 = vld [vmem:[#allocation4 + $0x78] sm:$0xff] }
0x2906   :  { %v3106_v16 = vsub.f32 %v3098_v9, %v3105_v7 }
0x2908   :  { %3108 = vrot.lane.b32.xlu0 %v3106_v16, %s5009_s21 }
0x2963   :  { %v3123_v54 = vpop.permute.xlu1 %3122 }
0x297a   :  { %v3109_v58 = vpop.permute.xlu0 %3108 }
0x297b   :  { %v3111_v8 = vadd.f32 %v3109_v58, %v2983_v35  ;;  %v3150_v35 = vld [vmem:[#allocation12 + $0x8] sm:$0xff] }
0x297c   :  { %v4341_v21 = vpack.c.bf16 %v3150_v35, %v3149_v47  ;;  %v3463_v35 = vld [vmem:[#allocation15] sm:$0xff] }
0x297d   :  { %v3112_v26 = vmax.f32 %v3097_v59, %v3111_v8 }
0x297e   :  { %4342 = vmatpush3.bf16.msra.mxu0 %v4341_v21 }
0x297f   :  { %v3113_v19 = vsub.f32 %v3097_v59, %v3112_v26  ;;  %v3116_v51 = vsub.f32 %v3111_v8, %v3112_v26  ;;  %4166 = vmatprep.subr.mxu0 %v5005_v14 }
0x2981   :  { %v3114_v40 = vmul.f32 1.442695, %v3113_v19  ;;  %v3117_v43 = vmul.f32 1.442695, %v3116_v51 }
0x2982   :  { %4167 = vmatpush3.msk.msra.mxu0 %vm3157_vm4, %v3151_v41 }
0x2983   :  { %4738 = vpow2.f32 %v3114_v40  ;;  %4343 = vmatprep.subr.bf16.mxu0 %v5006_v20  ;;  %v3352_v40 = vld [vmem:[#allocation13] sm:$0xff] }
0x2984   :  { %4740 = vpow2.f32 %v3117_v43  ;;  %v3353_v43 = vld [vmem:[#allocation13 + $0x8] sm:$0xff] }
0x298d   :  { %v4739_v37 = vpop.eup %4738 }
0x298e   :  { %v4741_v2 = vpop.eup %4740  ;;  %v3125_v60 = vmul.f32 %v4739_v37, %v3123_v54  ;;  %v3354_v54 = vld [vmem:[#allocation13 + $0x10] sm:$0xf] }
0x298f   :  { %v3119_v39 = vmul.f32 %v4741_v2, %v2997_v29  ;;  %v3127_v53 = vmul.f32 %v4741_v2, %v2999_v27  ;;  %v3134_v29 = vmul.f32 1.442695, %v3133_v1  ;;  %v3468_v1 = vld [vmem:[#allocation15 + $0x28] sm:$0xff] }
0x2991   :  { %v3126_v25 = vadd.f32 %v3125_v60, %v3119_v39  ;;  %v3128_v6 = vadd.f32 %v4739_v37, %v3127_v53  ;;  %v4347_v37 = vpack.c.bf16 %v3353_v43, %v3352_v40  ;;  %v3350_v53 = vrot.slane %v6026_v36, %v446_v34 }
0x2993   :  { %3140 = vrot.lane.b32.xlu0 %v3126_v25, %s5009_s21  ;;  %4742 = vrcp.f32 %v3128_v6  ;;  %4348 = vmatpush3.bf16.msra.mxu1 %v4347_v37 }
0x2994   :  { %4744 = vpow2.f32 %v3134_v29  ;;  %4184 = vmatprep.subr.mxu1 %v5005_v14  ;;  %v3469_v29 = vld [vmem:[#allocation15 + $0x30] sm:$0xff] }
0x2997   :  { %4185 = vmatpush3.msk.msra.mxu1 %vm3157_vm4, %v3354_v54 }
0x2998   :  { %4361 = vmatprep.subr.bf16.mxu1 %v5006_v20 }
0x299d   :  { %v4743_v52 = vpop.eup %4742 }
0x299e   :  { %v3130_v31 = vmul.f32 %v4743_v52, %v3128_v6  ;;  %v4745_v27 = vpop.eup %4744 }
0x299f   :  { %v3136_v13 = vadd.f32 1.0, %v4745_v27  ;;  %v3470_v27 = vld [vmem:[#allocation15 + $0x38] sm:$0xff] }
0x29a0   :  { %v3131_v62 = vsub.f32 2.0, %v3130_v31  ;;  %v3466_v31 = vld [vmem:[#allocation15 + $0x18] sm:$0xff] }
0x29a1   :  { %4746 = vrcp.f32 %v3136_v13  ;;  %v4359_v13 = vpack.c.bf16 %v3470_v27, %v3469_v29 }
0x29a2   :  { %v3132_v55 = vmul.f32 %v4743_v52, %v3131_v62  ;;  %v3465_v52 = vld [vmem:[#allocation15 + $0x10] sm:$0xff] }
0x29a3   :  { %v4353_v62 = vpack.c.bf16 %v3466_v31, %v3465_v52  ;;  %v3566_v52 = vld [vmem:[#allocation16 + $0x10] sm:$0xf] }
0x29a4   :  { %3145 = vrot.lane.b32.xlu1 %v3132_v55, %s5009_s21  ;;  %v3467_v55 = vld [vmem:[#allocation15 + $0x20] sm:$0xff] }
0x29a5   :  { %v4356_v34 = vpack.c.bf16 %v3468_v1, %v3467_v55  ;;  %v3670_v55 = vld [vmem:[#allocation18] sm:$0xff]  ;;  %v3671_v1 = vld [vmem:[#allocation18 + $0x8] sm:$0xff] }
0x29a6   :  { %v4365_v27 = vpack.c.bf16 %v3671_v1, %v3670_v55 }
0x29ab   :  { %v4747_v49 = vpop.eup %4746 }
0x2a05   :  { %v3141_v18 = vpop.permute.xlu0 %3140 }
0x2a06   :  { %v3143_v17 = vmul.f32 %v4747_v49, %v3141_v18 }
0x2a16   :  { %v3146_v11 = vpop.permute.xlu1 %3145 }
0x2a17   :  { %v3148_v24 = vmul.f32 %v3146_v11, %v3143_v17 }
0x2a19   :  { %3153 = vrot.lane.b32.xlu0 %v3148_v24, %s5011_s27 }
0x2a8b   :  { %v3154_v4 = vpop.permute.xlu0 %3153 }
0x2a8c   :  { %4169 = vmatmul.mubr.msk.f32.vlgmr.msra.gmra.mrb[28].mxu0 %vm173_vm0, %v3154_v4 }
0x2a8d   :  { %4345 = vmatpush3.bf16.msra.mxu0 %v4341_v21  ;;  %4177 = vmatprep.mubr.msk.f32.mxu0 %vm5007_vm1, %v5005_v14  ;;  %v3464_v21 = vld [vmem:[#allocation15 + $0x8] sm:$0xff] }
0x2a8e   :  { %4175 = vmatprep.subr.mxu0 %v5005_v14 }
0x2a91   :  { %4176 = vmatpush3.msk.msra.mxu0 %vm3157_vm4, %v3151_v41  ;;  %v4350_v41 = vpack.c.bf16 %v3464_v21, %v3463_v35  ;;  %v3565_v35 = vld [vmem:[#allocation16 + $0x8] sm:$0xff] }
0x2a92   :  { %4349 = vmatprep.subr.bf16.mxu0 %v5006_v20 }
0x2b5f   :  { %v3227_v63 = vpop.f32.mrb[28].mxu0 }
0x2b60   :  { %3232 = vrot.lane.b32.xlu1 %v3227_v63, %s5009_s21  ;;  %v4170_v10 = vpop.f32.mrb[29].mxu0 }
0x2bd2   :  { %v3233_v48 = vpop.permute.xlu1 %3232 }
0x2bd3   :  { %v3235_v3 = vsub.f32 %v3148_v24, %v3233_v48 }
0x2bd5   :  { %v3236_v38 = vmul.f32 %v3235_v3, %v3235_v3 }
0x2bd7   :  { %3238 = vrot.lane.b32.xlu0 %v3236_v38, %s5011_s27 }
0x2bdb   :  { %3323 = vrot.lane.b32.xlu0 %v3321_v5, %s5009_s21 }
0x2c49   :  { %v3239_v32 = vpop.permute.xlu0 %3238 }
0x2c4a   :  { %4178 = vmatmul.mubr.msk.f32.vlgmr.msra.gmra.mrb[30].mxu0 %vm173_vm0, %v3239_v32 }
0x2c4b   :  { %4205 = vmatprep.mubr.msk.f32.mxu0 %vm5007_vm1, %v5005_v14  ;;  %4351 = vmatpush3.bf16.msra.mxu0 %v4350_v41 }
0x2c4c   :  { %4352 = vmatprep.subr.bf16.mxu0 %v5006_v20 }
0x2c4d   :  { %v3324_v23 = vpop.permute.xlu0 %3323 }
0x2c4f   :  { %4354 = vmatpush3.bf16.msra.mxu0 %v4353_v62  ;;  %v3562_v62 = vrot.slane %v6026_v36, %v499_v46  ;;  %v3674_v46 = vld [vmem:[#allocation18 + $0x20] sm:$0xff] }
0x2c50   :  { %4355 = vmatprep.subr.bf16.mxu0 %v5006_v20 }
0x2c53   :  { %4357 = vmatpush3.bf16.msra.mxu0 %v4356_v34 }
0x2c54   :  { %4358 = vmatprep.subr.bf16.mxu0 %v5006_v20 }
0x2c57   :  { %4360 = vmatpush3.bf16.msra.mxu0 %v4359_v13 }
0x2d1d   :  { %v3308_v59 = vpop.f32.mrb[30].mxu0 }
0x2d1e   :  { %v3309_v45 = vadd.f32 1e-05, %v3308_v59  ;;  %v4179_v33 = vpop.f32.mrb[31].mxu0 }
0x2d20   :  { %4748 = vrsqrt.f32 %v3309_v45 }
0x2d2a   :  { %v4749_v12 = vpop.eup %4748 }
0x2d2b   :  { %3314 = vrot.lane.b32.xlu1 %v4749_v12, %s5009_s21 }
0x2d9d   :  { %v3315_v0 = vpop.permute.xlu1 %3314 }
0x2d9e   :  { %v3317_v15 = vmul.f32 %v3315_v0, %v3235_v3 }
0x2da0   :  { %v3326_v50 = vmul.f32 %v3324_v23, %v3317_v15 }
0x2da2   :  { %3330 = vrot.lane.b32.xlu1 %v3326_v50, %s5011_s27 }
0x2e14   :  { %v3331_v9 = vpop.permute.xlu1 %3330 }
0x2e15   :  { %v6034_v7 = vadd.f32 %v3331_v9, %v3328_v22  ;;  %v5012_v9 = vmov -1.0  }
0x2e17   :  { %v3334_v16 = vsel %vm173_vm0, %v6034_v7, 0.0 }
0x2e18   :  { %3335 = vadd.xlane.f32.xlu0 %v3334_v16 }
0x2ea5   :  { %v3336_v58 = vpop.xlane.xlu0 %3335 }
0x2ea6   :  { %v3337_v8 = vmul.f32 0.05, %v3336_v58 }
0x2ea8   :  { %v3338_v26 = vsub.f32 %v6034_v7, %v3337_v8 }
0x2eaa   :  { %v3339_v19 = vmul.f32 %v3338_v26, %v3338_v26 }
0x2eac   :  { %v3340_v51 = vsel %vm173_vm0, %v3339_v19, 0.0 }
0x2ead   :  { %3341 = vadd.xlane.f32.xlu1 %v3340_v51 }
0x2f3a   :  { %v3342_v2 = vpop.xlane.xlu1 %3341 }
0x2f3b   :  { %v3343_v60 = vmul.f32 0.05, %v3342_v2 }
0x2f3d   :  { %v3344_v39 = vadd.f32 1e-05, %v3343_v60 }
0x2f3f   :  { %4750 = vrsqrt.f32 %v3344_v39 }
0x2f49   :  { %v4751_v25 = vpop.eup %4750 }
0x2f4a   :  { %v3346_v6 = vmul.f32 %v4751_v25, %v3338_v26 }
0x2f4c   :  { %v3351_v47 = vmul.f32 %v3350_v53, %v3346_v6 }
0x2f4e   :  { %4187 = vmatmul.mubr.msk.f32.vlgmr.msra.gmra.mrb[20].mxu1 %vm173_vm0, %v3351_v47  ;;  %v3564_v47 = vld [vmem:[#allocation16] sm:$0xff] }
0x2f4f   :  { %4214 = vmatprep.mubr.msk.f32.mxu1 %vm5007_vm1, %v5005_v14  ;;  %v4362_v21 = vpack.c.bf16 %v3565_v35, %v3564_v47 }
0x2f51   :  { %4363 = vmatpush3.bf16.msra.mxu1 %v4362_v21 }
0x2f52   :  { %4212 = vmatprep.subr.mxu1 %v5005_v14 }
0x2f55   :  { %4213 = vmatpush3.msk.msra.mxu1 %vm3157_vm4, %v3566_v52 }
0x2f56   :  { %4364 = vmatprep.subr.bf16.mxu1 %v5006_v20 }
0x3021   :  { %v3427_v18 = vpop.f32.mrb[20].mxu1 }
0x3022   :  { %3459 = vrot.lane.b32.xlu0 %v3427_v18, %s5010_s22  ;;  %v4188_v49 = vpop.f32.mrb[21].mxu1  ;;  %v3432_v17 = vmul.f32 0.70710677, %v3427_v18  ;;  %v3431_v26 = vmul.f32 0.5, %v3427_v18  ;;  %v3672_v18 = vld [vmem:[#allocation18 + $0x10] sm:$0xff] }
0x3023   :  { %v3673_v49 = vld [vmem:[#allocation18 + $0x18] sm:$0xff] }
0x3024   :  { %v3435_v11 = vand.u32 2147483647, %v3432_v17  ;;  %vm3433_vm5 = vcmp.ge.f32.partialorder %v3432_v17, 0.0  ;;  %v4368_v17 = vpack.c.bf16 %v3673_v49, %v3672_v18 }
0x3025   :  { %v3434_v16 = vsel %vm3433_vm5, 1.0, %v5012_v9 }
0x3026   :  { %v3436_v24 = vmul.f32 0.3275911, %v3435_v11  ;;  %v3449_v32 = vsub.f32 0.0, %v3435_v11 }
0x3028   :  { %v3437_v4 = vadd.f32 1.0, %v3436_v24  ;;  %v3450_v59 = vmul.f32 %v3449_v32, %v3435_v11  ;;  %v3675_v11 = vld [vmem:[#allocation18 + $0x28] sm:$0xff] }
0x3029   :  { %v4371_v24 = vpack.c.bf16 %v3675_v11, %v3674_v46 }
0x302a   :  { %4752 = vrcp.f32 %v3437_v4  ;;  %v3451_v33 = vmul.f32 1.442695, %v3450_v59  ;;  %v3676_v4 = vld [vmem:[#allocation18 + $0x30] sm:$0xff] }
0x302c   :  { %4754 = vpow2.f32 %v3451_v33 }
0x3034   :  { %v4753_v63 = vpop.eup %4752 }
0x3035   :  { %v3440_v10 = vmul.f32 1.0614054, %v4753_v63 }
0x3036   :  { %v4755_v15 = vpop.eup %4754 }
0x3037   :  { %v3441_v48 = vadd.f32 -1.4531521, %v3440_v10 }
0x3039   :  { %v3442_v3 = vmul.f32 %v4753_v63, %v3441_v48  ;;  %v4761_v48 = vld [vmem:[#allocation7 + $0x8] sm:$0xff] }
0x303a   :  { %v3650_v32 = vrot.slane %v4761_v48, %v425_v44  ;;  %v3681_v44 = vrot.slane %v4761_v48, %v3320_v42 }
0x303b   :  { %v3443_v38 = vadd.f32 1.4214138, %v3442_v3  ;;  %v3570_v3 = vrot.slane %v6026_v36, %v552_v56 }
0x303d   :  { %v3444_v5 = vmul.f32 %v4753_v63, %v3443_v38 }
0x303f   :  { %v3445_v45 = vadd.f32 -0.28449672, %v3444_v5 }
0x3041   :  { %v3446_v12 = vmul.f32 %v4753_v63, %v3445_v45 }
0x3043   :  { %v3447_v0 = vadd.f32 0.2548296, %v3446_v12  ;;  %v3662_v12 = vrot.slane %v6026_v36, %v604_v61 }
0x3045   :  { %v3448_v23 = vmul.f32 %v4753_v63, %v3447_v0  ;;  %v3677_v63 = vld [vmem:[#allocation18 + $0x38] sm:$0xff] }
0x3046   :  { %v4374_v10 = vpack.c.bf16 %v3677_v63, %v3676_v4 }
0x3047   :  { %v3453_v50 = vmul.f32 %v4755_v15, %v3448_v23  ;;  %v3667_v23 = vrot.slane %v4761_v48, %v385_v30 }
0x3049   :  { %v3454_v22 = vsub.f32 1.0, %v3453_v50 }
0x304b   :  { %v3455_v58 = vmul.f32 %v3454_v22, %v3434_v16 }
0x304d   :  { %v3456_v8 = vadd.f32 1.0, %v3455_v58 }
0x304f   :  { %v3457_v19 = vmul.f32 %v3456_v8, %v3431_v26 }
0x3094   :  { %v3460_v51 = vpop.permute.xlu0 %3459 }
0x3095   :  { %v3462_v40 = vmul.f32 %v3460_v51, %v3457_v19 }
0x3097   :  { %4206 = vmatmul.mubr.msk.f32.vlgmr.msra.gmra.mrb[32].mxu0 %vm3471_vm6, %v3462_v40 }
0x316a   :  { %v3541_v43 = vpop.f32.mrb[32].mxu0 }
0x316b   :  { %v3545_v37 = vadd.f32 %v3541_v43, %v6034_v7  ;;  %v4207_v54 = vpop.f32.mrb[33].mxu0 }
0x316d   :  { %v3546_v2 = vsel %vm173_vm0, %v3545_v37, 0.0 }
0x316e   :  { %3547 = vadd.xlane.f32.xlu1 %v3546_v2 }
0x31fb   :  { %v3548_v60 = vpop.xlane.xlu1 %3547 }
0x31fc   :  { %v3549_v39 = vmul.f32 0.05, %v3548_v60 }
0x31fe   :  { %v3550_v53 = vsub.f32 %v3545_v37, %v3549_v39 }
0x3200   :  { %v3551_v25 = vmul.f32 %v3550_v53, %v3550_v53 }
0x3202   :  { %v3552_v6 = vsel %vm173_vm0, %v3551_v25, 0.0 }
0x3203   :  { %3553 = vadd.xlane.f32.xlu1 %v3552_v6 }
0x3290   :  { %v3554_v7 = vpop.xlane.xlu1 %3553 }
0x3291   :  { %v3555_v41 = vmul.f32 0.05, %v3554_v7 }
0x3293   :  { %v3556_v31 = vadd.f32 1e-05, %v3555_v41 }
0x3295   :  { %4756 = vrsqrt.f32 %v3556_v31 }
0x329f   :  { %v4757_v34 = vpop.eup %4756 }
0x32a0   :  { %v3558_v29 = vmul.f32 %v4757_v34, %v3550_v53 }
0x32a2   :  { %v3563_v13 = vmul.f32 %v3562_v62, %v3558_v29 }
0x32a4   :  { %4215 = vmatmul.mubr.msk.f32.vlgmr.msra.gmra.mrb[22].mxu1 %vm173_vm0, %v3563_v13 }
0x32a5   :  { %4366 = vmatpush3.bf16.msra.mxu1 %v4365_v27  ;;  %4233 = vmatprep.mubr.msk.f32.mxu1 %vm5007_vm1, %v5005_v14  ;;  %v3652_v14 = vadd.f32 1e-05, %v4761_v48 }
0x32a6   :  { %4367 = vmatprep.subr.bf16.mxu1 %v5006_v20 }
0x32a7   :  { %4758 = vrsqrt.f32 %v3652_v14 }
0x32a9   :  { %4369 = vmatpush3.bf16.msra.mxu1 %v4368_v17 }
0x32aa   :  { %4370 = vmatprep.subr.bf16.mxu1 %v5006_v20 }
0x32ad   :  { %4372 = vmatpush3.bf16.msra.mxu1 %v4371_v24 }
0x32ae   :  { %4373 = vmatprep.subr.bf16.mxu1 %v5006_v20 }
0x32b1   :  { %4375 = vmatpush3.bf16.msra.mxu1 %v4374_v10  ;;  %v4759_v38 = vpop.eup %4758 }
0x32b2   :  { %v3657_v20 = vrot.slane %v4759_v38, %v1031_v57 }
0x3377   :  { %v3643_v5 = vpop.f32.mrb[22].mxu1 }
0x3378   :  { %v3644_v59 = vadd.f32 %v3643_v5, %v3570_v3  ;;  %v4216_v45 = vpop.f32.mrb[23].mxu1 }
0x337a   :  { %v3651_v33 = vsub.f32 %v3644_v59, %v3650_v32 }
0x337c   :  { %v3658_v0 = vmul.f32 %v3657_v20, %v3651_v33 }
0x337e   :  { %v3663_v56 = vmul.f32 %v3662_v12, %v3658_v0 }
0x3380   :  { %v3668_v15 = vadd.f32 %v3667_v23, %v3663_v56 }
0x3382   :  { %v3669_v50 = vmax.f32 %v3668_v15, 0.0 }
0x3384   :  { %4234 = vmatmul.mubr.msk.f32.vlgmr.msra.gmra.mrb[24].mxu1 %vm3471_vm6, %v3669_v50 }
0x3457   :  { %v3751_v57 = vpop.f32.mrb[24].mxu1 }
0x3458   :  { %v3752_v22 = vadd.f32 %v3751_v57, %v3681_v44  ;;  %v4235_v9 = vpop.f32.mrb[25].mxu1 }
0x345a   :  { %3756 = vst.msk [vmem:[#allocation19] sm:$0xff] %vm3755_vm7, %v3752_v22 }
0x345b   :  { %4971 = shalt.err (!%p4968_p6)
}
0x345c   :  { %s4972_s29 = scalar_lea.hbm %s6105_s9, 128 }
0x345d   :  { %p4973_p7 = scmp.ne.s32.totalorder %s6105_s9, %s4972_s29  ;;  %p4976_p8 = scmp.lt.u32.totalorder %s4972_s29, %s6105_s9 }
0x345f   :  { %p4978_p9 = pnand %p4976_p8, %p4973_p7 }
0x3461   :  { %4981 = shalt.err (!%p4978_p9)
}
0x3462   :  { %3766 = dma.vmem_to_hbm [thread:$0]  %s3764_s2, 128, %s6105_s9, [#allocation6]  }
0x3463   :  { %4992 = dma.done.wait [#allocation6], 128  }
0x3464   :  { %4993 = vsyncadd [#allocation6], 4294967168 }
0x3465   :  { %3770 = vsyncpa [#allocation5], 1 }
0x3466   :  { %3771 = vsyncpa [#allocation8], 1 }
0x3467   :  { %3772 = vsyncpa [#allocation11], 1 }
0x3468   :  { %3773 = vsyncpa [#allocation14], 1 }
0x3469   :  { %3774 = vsyncpa [#allocation17], 1 }
0x346a   :  { %3775 = vsyncpa [#allocation6], 1 }

</bundles_post_ra>
